<compile_context>
chip_gen: v7x
topology: tpu7x:2x2x1
jax: 0.10.0
libtpu: 0.0.40
codegen_flags: <defaults>
</compile_context>

<pallas_src>
import functools

import jax
import jax.numpy as jnp
from jax.experimental import pallas as pl
from jax.experimental.pallas import tpu as pltpu

EPS = 1e-5


def _adaattn_flash_kernel(f_ref, gt_ref, hc_ref, cn_ref, o_ref, m_sc, l_sc, acc_sc):
    """One (batch, Nc-tile, Ns-tile) grid step of the AdaAttN attention core.

    f_ref  : (1, tnc, Ck)       F tile (resident across the Ns axis)
    gt_ref : (1, Ck, tns)       G^T tile (streamed over Ns, no in-kernel transpose)
    hc_ref : (1, tns, 2*Cin)    fused [H | H*H] value operand (streamed over Ns)
    cn_ref : (1, tnc, Cin)      mean-variance-normalized content (f32)
    o_ref  : (1, tnc, Cin)      output tile (written on the last Ns step)
    m_sc / l_sc / acc_sc        online-softmax running max / sum / accumulator
    """
    ns_idx = pl.program_id(2)

    @pl.when(ns_idx == 0)
    def _init():
        m_sc[...] = jnp.full(m_sc.shape, -jnp.inf, jnp.float32)
        l_sc[...] = jnp.zeros(l_sc.shape, jnp.float32)
        acc_sc[...] = jnp.zeros(acc_sc.shape, jnp.float32)

    # Attention logits for this tile pair: (tnc, Ck) @ (Ck, tns) -> (tnc, tns).
    s = jnp.dot(f_ref[0], gt_ref[0], preferred_element_type=jnp.float32)

    m_prev = m_sc[...]
    m_new = jnp.maximum(m_prev, jnp.max(s, axis=-1, keepdims=True))
    alpha = jnp.exp(m_prev - m_new)          # == 0 on the first step (m_prev = -inf)
    p = jnp.exp(s - m_new)

    l_sc[...] = alpha * l_sc[...] + jnp.sum(p, axis=-1, keepdims=True)
    # Fused S @ [H | H*H] -> accumulates [mean | E[x^2]] in one MXU pass.
    acc_sc[...] = alpha * acc_sc[...] + jnp.dot(
        p.astype(hc_ref.dtype), hc_ref[0], preferred_element_type=jnp.float32)
    m_sc[...] = m_new

    @pl.when(ns_idx == pl.num_programs(2) - 1)
    def _finalize():
        cin = o_ref.shape[-1]
        l = l_sc[...]
        inv_l = pl.reciprocal(l, approx=True)      # EUP slot (otherwise idle here)
        inv_l = inv_l * (2.0 - l * inv_l)          # one Newton step -> ~f32 accuracy
        att = acc_sc[...] * inv_l                  # (tnc, 2*Cin) = [mean | E[x^2]]
        mean = att[:, :cin]
        sq = att[:, cin:]
        std = jnp.sqrt(jnp.maximum(sq - mean * mean, 0.0))   # relu == max(., 0)
        o_ref[0] = (std * cn_ref[0] + mean).astype(o_ref.dtype)


def _pick_tile(n, preferred, quantum):
    """Largest divisor of n that is a multiple of `quantum` and <= preferred."""
    if n <= preferred:
        return n
    t = (preferred // quantum) * quantum
    while t >= quantum:
        if n % t == 0:
            return t
        t -= quantum
    return n  # no aligned divisor: fall back to the full axis


@functools.partial(jax.jit, static_argnames=("matmul_dtype", "tnc_pref", "tns_pref"))
def adaattn_pallas(content, style, content_key, style_key, params,
                   matmul_dtype=jnp.float32, tnc_pref=256, tns_pref=512):
    """AdaAttN forward.  content/style: (b, Cin, h, w); keys: (b, Ck, h, w)."""
    b, cin, h, w = content.shape
    _, _, hs, ws = style.shape
    ckp = content_key.shape[1]
    nc = h * w
    ns = hs * ws
    # TODO(synk): the max_sample randperm subsampling branch (Ns > 96*96) of the
    # PyTorch module is not implemented; this covers the dense (else) branch.

    wf, bf, wg, bg, wh, bh = params

    def flat(x):  # NCHW -> (b, HW, C), row-major spatial flattening
        return jnp.transpose(x, (0, 2, 3, 1)).reshape(x.shape[0], -1, x.shape[1])

    def mvn(x):  # per-channel mean/std over the spatial axis (unbiased, as torch)
        mean = jnp.mean(x, axis=1, keepdims=True)
        var = jnp.var(x, axis=1, keepdims=True, ddof=1) + EPS
        return (x - mean) / jnp.sqrt(var)

    c_f = flat(content).astype(jnp.float32)
    s_f = flat(style).astype(jnp.float32)
    ck_f = flat(content_key).astype(jnp.float32)
    sk_f = flat(style_key).astype(jnp.float32)

    # 1x1 convs as channels-last matmuls with pre-transposed (in, out) weights.
    # These are O(N*C^2) -- negligible next to the O(Nc*Ns*C) attention -- and
    # the style-side ones must be computed exactly once per batch, not per Nc
    # tile, so they live in the XLA wrapper rather than inside the tiled kernel.
    F = jnp.einsum('bnc,co->bno', mvn(ck_f), wf.T) + bf[None, None, :]
    G = jnp.einsum('bnc,co->bno', mvn(sk_f), wg.T) + bg[None, None, :]
    H = jnp.einsum('bnc,co->bno', s_f, wh.T) + bh[None, None, :]
    gt = jnp.transpose(G, (0, 2, 1))               # (b, Ck, Ns): lane-dense keys
    hcat = jnp.concatenate([H, H * H], axis=-1)    # fused value operand (b, Ns, 2*Cin)
    cn = mvn(c_f)                                  # (b, Nc, Cin), kept f32

    F = F.astype(matmul_dtype)
    gt = gt.astype(matmul_dtype)
    hcat = hcat.astype(matmul_dtype)

    tnc = _pick_tile(nc, tnc_pref, 8)
    tns = _pick_tile(ns, tns_pref, 128)
    n_nc = nc // tnc
    n_ns = ns // tns

    # Explicit VMEM budget (v7x: 64 MiB physical, 32 MiB scoped default).
    isz = jnp.dtype(matmul_dtype).itemsize
    est = 2 * isz * (tnc * ckp + ckp * tns + tns * 2 * cin)   # double-buffered MXU inputs
    est += 2 * 2 * 4 * tnc * cin                              # cn input + output blocks
    est += 4 * tnc * (2 * cin + 2)                            # scratch acc / m / l
    est += 4 * 4 * tnc * tns                                  # logits / exp temporaries
    vmem_limit = int(min(max(2 * est, 16 * 1024 * 1024), 56 * 1024 * 1024))

    out_flat = pl.pallas_call(
        _adaattn_flash_kernel,
        out_shape=jax.ShapeDtypeStruct((b, nc, cin), jnp.float32),
        grid_spec=pltpu.PrefetchScalarGridSpec(
            num_scalar_prefetch=0,
            grid=(b, n_nc, n_ns),
            in_specs=[
                pl.BlockSpec((1, tnc, ckp), lambda ib, ic, ik: (ib, ic, 0)),      # F
                pl.BlockSpec((1, ckp, tns), lambda ib, ic, ik: (ib, 0, ik)),      # G^T
                pl.BlockSpec((1, tns, 2 * cin), lambda ib, ic, ik: (ib, ik, 0)),  # [H|H^2]
                pl.BlockSpec((1, tnc, cin), lambda ib, ic, ik: (ib, ic, 0)),      # mvn(content)
            ],
            out_specs=pl.BlockSpec((1, tnc, cin), lambda ib, ic, ik: (ib, ic, 0)),
            scratch_shapes=[
                pltpu.VMEM((tnc, 1), jnp.float32),         # running max
                pltpu.VMEM((tnc, 1), jnp.float32),         # running sum
                pltpu.VMEM((tnc, 2 * cin), jnp.float32),   # fused [mean | E[x^2]] accumulator
            ]),
        compiler_params=pltpu.CompilerParams(
            dimension_semantics=("parallel", "parallel", "arbitrary"),
            vmem_limit_bytes=vmem_limit),
    )(F, gt, hcat, cn)

    return jnp.transpose(out_flat.reshape(b, h, w, cin), (0, 3, 1, 2))


def adaattn_ref(content, style, content_key, style_key, params):
    """Pure-JAX reference mirroring the PyTorch module (NCHW)."""
    def mvn4(x):
        mean = jnp.mean(x, axis=(2, 3), keepdims=True)
        var = jnp.var(x, axis=(2, 3), keepdims=True, ddof=1) + EPS
        return (x - mean) / jnp.sqrt(var)

    wf, bf, wg_, bg, wh, bh = params

    def conv1x1(x, wgt, bias):
        return jnp.einsum('bchw,oc->bohw', x, wgt) + bias[None, :, None, None]

    F = conv1x1(mvn4(content_key), wf, bf)
    G = conv1x1(mvn4(style_key), wg_, bg)
    H = conv1x1(style, wh, bh)
    b, ck, h, w = F.shape
    _, cin, hg, wgsz = H.shape
    Fm = F.reshape(b, ck, h * w).transpose(0, 2, 1)
    Gm = G.reshape(b, ck, hg * wgsz)
    Hm = H.reshape(b, cin, hg * wgsz).transpose(0, 2, 1)
    S = jax.nn.softmax(jnp.einsum('bnc,bcm->bnm', Fm, Gm), axis=-1)
    mean = jnp.einsum('bnm,bmc->bnc', S, Hm)
    std = jnp.sqrt(jnp.maximum(jnp.einsum('bnm,bmc->bnc', S, Hm ** 2) - mean ** 2, 0.0))
    mean = mean.reshape(b, h, w, cin).transpose(0, 3, 1, 2)
    std = std.reshape(b, h, w, cin).transpose(0, 3, 1, 2)
    return std * mvn4(content) + mean


if __name__ == "__main__":
    # Small shapes: batch=2, in_planes=key_planes=32, content 16x16 (Nc=256),
    # style 32x32 (Ns=1024) so the online-softmax loop runs over >1 key tile.
    b, cin, ckp = 2, 32, 32
    h = w = 16
    hs = ws = 32

    key = jax.random.PRNGKey(0)
    ks = jax.random.split(key, 10)

    content = jax.random.normal(ks[0], (b, cin, h, w), jnp.float32)
    style = jax.random.normal(ks[1], (b, cin, hs, ws), jnp.float32)
    content_key = jax.random.normal(ks[2], (b, ckp, h, w), jnp.float32)
    style_key = jax.random.normal(ks[3], (b, ckp, hs, ws), jnp.float32)

    # Conv2d 1x1 weights stored as (out, in), biases as (out,).
    params = (
        0.1 * jax.random.normal(ks[4], (ckp, ckp), jnp.float32),   # Wf
        0.05 * jax.random.normal(ks[5], (ckp,), jnp.float32),      # bf
        0.1 * jax.random.normal(ks[6], (ckp, ckp), jnp.float32),   # Wg
        0.05 * jax.random.normal(ks[7], (ckp,), jnp.float32),      # bg
        0.1 * jax.random.normal(ks[8], (cin, cin), jnp.float32),   # Wh
        0.05 * jax.random.normal(ks[9], (cin,), jnp.float32),      # bh
    )

    ref = jax.block_until_ready(
        adaattn_ref(content, style, content_key, style_key, params))

    # f32 MXU operands: tight check of the flash/online-softmax restructuring
    # (tile prefs chosen so the demo exercises 2 Nc tiles x 2 Ns tiles).
    out_f32 = jax.block_until_ready(
        adaattn_pallas(content, style, content_key, style_key, params,
                       matmul_dtype=jnp.float32, tnc_pref=128, tns_pref=512))
    assert out_f32.shape == (b, cin, h, w), out_f32.shape
    assert jnp.allclose(out_f32, ref, atol=1e-3, rtol=1e-3), (
        float(jnp.max(jnp.abs(out_f32 - ref))))

    # bf16 MXU operands (v6e/v7x fast path), f32 accumulation: looser tolerance.
    out_bf16 = jax.block_until_ready(
        adaattn_pallas(content, style, content_key, style_key, params,
                       matmul_dtype=jnp.bfloat16, tnc_pref=128, tns_pref=512))
    assert jnp.allclose(out_bf16, ref, atol=5e-2, rtol=5e-2), (
        float(jnp.max(jnp.abs(out_bf16 - ref))))

    print("KERNEL_OK")
</pallas_src>

<mosaic_0001>
module attributes {stable_mosaic.version = 11 : i64} {
  func.func @_adaattn_flash_kernel(%arg0: i32, %arg1: i32, %arg2: i32, %arg3: memref<1x128x32xf32, #tpu.memory_space<vmem>>, %arg4: memref<1x32x512xf32, #tpu.memory_space<vmem>>, %arg5: memref<1x512x64xf32, #tpu.memory_space<vmem>>, %arg6: memref<1x128x32xf32, #tpu.memory_space<vmem>>, %arg7: memref<1x128x32xf32, #tpu.memory_space<vmem>>, %arg8: memref<128x1xf32, #tpu.memory_space<vmem>>, %arg9: memref<128x1xf32, #tpu.memory_space<vmem>>, %arg10: memref<128x64xf32, #tpu.memory_space<vmem>>) attributes {dimension_semantics = [#tpu.dimension_semantics<parallel>, #tpu.dimension_semantics<parallel>, #tpu.dimension_semantics<arbitrary>], iteration_bounds = array<i64: 2, 2, 2>, scalar_prefetch = 0 : i64, scratch_operands = 3 : i64, tpu.core_type = #tpu.core_type<tc>, window_params = [{transform_indices = @transform_0, window_bounds = array<i64: 1, 128, 32>}, {transform_indices = @transform_1, window_bounds = array<i64: 1, 32, 512>}, {transform_indices = @transform_2, window_bounds = array<i64: 1, 512, 64>}, {transform_indices = @transform_3, window_bounds = array<i64: 1, 128, 32>}, {transform_indices = @transform_4, window_bounds = array<i64: 1, 128, 32>}]} {
    %c0_i32 = arith.constant 0 : i32
    %0 = arith.cmpi eq, %arg2, %c0_i32 : i32
    %1 = arith.extui %0 : i1 to i32
    %c0_i32_0 = arith.constant 0 : i32
    %2 = arith.cmpi ne, %1, %c0_i32_0 : i32
    scf.if %2 {
      %cst_25 = arith.constant 0xFF800000 : f32
      %35 = vector.broadcast %cst_25 : f32 to vector<128x1xf32>
      %c0_26 = arith.constant 0 : index
      %c0_27 = arith.constant 0 : index
      %36 = vector.load %arg8[%c0_26, %c0_27] : memref<128x1xf32, #tpu.memory_space<vmem>>, vector<128x1xf32>
      tpu.vector_store %arg8[%c0_26, %c0_27], %35 {strides = array<i32>} : memref<128x1xf32, #tpu.memory_space<vmem>>, vector<128x1xf32>,
      %cst_28 = arith.constant 0.000000e+00 : f32
      %37 = vector.broadcast %cst_28 : f32 to vector<128x1xf32>
      %c0_29 = arith.constant 0 : index
      %c0_30 = arith.constant 0 : index
      %38 = vector.load %arg9[%c0_29, %c0_30] : memref<128x1xf32, #tpu.memory_space<vmem>>, vector<128x1xf32>
      tpu.vector_store %arg9[%c0_29, %c0_30], %37 {strides = array<i32>} : memref<128x1xf32, #tpu.memory_space<vmem>>, vector<128x1xf32>,
      %cst_31 = arith.constant 0.000000e+00 : f32
      %39 = vector.broadcast %cst_31 : f32 to vector<128x64xf32>
      %c0_32 = arith.constant 0 : index
      %c0_33 = arith.constant 0 : index
      %40 = vector.load %arg10[%c0_32, %c0_33] : memref<128x64xf32, #tpu.memory_space<vmem>>, vector<128x64xf32>
      tpu.vector_store %arg10[%c0_32, %c0_33], %39 {strides = array<i32>} : memref<128x64xf32, #tpu.memory_space<vmem>>, vector<128x64xf32>,
    } else {
    }
    %c0 = arith.constant 0 : index
    %c0_1 = arith.constant 0 : index
    %c0_2 = arith.constant 0 : index
    %3 = vector.load %arg3[%c0, %c0_1, %c0_2] : memref<1x128x32xf32, #tpu.memory_space<vmem>>, vector<1x128x32xf32>
    %4 = vector.shape_cast %3 : vector<1x128x32xf32> to vector<128x32xf32>
    %c0_3 = arith.constant 0 : index
    %c0_4 = arith.constant 0 : index
    %c0_5 = arith.constant 0 : index
    %5 = vector.load %arg4[%c0_3, %c0_4, %c0_5] : memref<1x32x512xf32, #tpu.memory_space<vmem>>, vector<1x32x512xf32>
    %6 = vector.shape_cast %5 : vector<1x32x512xf32> to vector<32x512xf32>
    %cst = arith.constant dense<0.000000e+00> : vector<128x512xf32>
    %7 = tpu.matmul %4, %6, %cst {dimension_numbers = #tpu.dot_dimension_numbers<[1], [0], [0], [1], [0, 0, 1, 1], [], []>} : vector<128x32xf32>, vector<32x512xf32>, vector<128x512xf32> -> vector<128x512xf32>
    %c0_6 = arith.constant 0 : index
    %c0_7 = arith.constant 0 : index
    %8 = vector.load %arg8[%c0_6, %c0_7] : memref<128x1xf32, #tpu.memory_space<vmem>>, vector<128x1xf32>
    %cst_8 = arith.constant dense<0xFF800000> : vector<128xf32>
    %9 = vector.multi_reduction <maximumf>, %7, %cst_8 [1] : vector<128x512xf32> to vector<128xf32>
    %10 = vector.shape_cast %9 : vector<128xf32> to vector<128x1xf32>
    %11 = arith.maximumf %8, %10 : vector<128x1xf32>
    %12 = arith.subf %8, %11 : vector<128x1xf32>
    %13 = math.exp %12 : vector<128x1xf32>
    %14 = vector.broadcast %11 : vector<128x1xf32> to vector<128x512xf32>
    %15 = arith.subf %7, %14 : vector<128x512xf32>
    %16 = math.exp %15 : vector<128x512xf32>
    %c0_9 = arith.constant 0 : index
    %c0_10 = arith.constant 0 : index
    %17 = vector.load %arg9[%c0_9, %c0_10] : memref<128x1xf32, #tpu.memory_space<vmem>>, vector<128x1xf32>
    %18 = arith.mulf %13, %17 : vector<128x1xf32>
    %cst_11 = arith.constant dense<0.000000e+00> : vector<128xf32>
    %19 = vector.multi_reduction <add>, %16, %cst_11 [1] : vector<128x512xf32> to vector<128xf32>
    %20 = vector.shape_cast %19 : vector<128xf32> to vector<128x1xf32>
    %21 = arith.addf %18, %20 : vector<128x1xf32>
    %c0_12 = arith.constant 0 : index
    %c0_13 = arith.constant 0 : index
    %22 = vector.load %arg9[%c0_12, %c0_13] : memref<128x1xf32, #tpu.memory_space<vmem>>, vector<128x1xf32>
    tpu.vector_store %arg9[%c0_12, %c0_13], %21 {strides = array<i32>} : memref<128x1xf32, #tpu.memory_space<vmem>>, vector<128x1xf32>,
    %c0_14 = arith.constant 0 : index
    %c0_15 = arith.constant 0 : index
    %23 = vector.load %arg10[%c0_14, %c0_15] : memref<128x64xf32, #tpu.memory_space<vmem>>, vector<128x64xf32>
    %24 = vector.broadcast %13 : vector<128x1xf32> to vector<128x64xf32>
    %25 = arith.mulf %24, %23 : vector<128x64xf32>
    %c0_16 = arith.constant 0 : index
    %c0_17 = arith.constant 0 : index
    %c0_18 = arith.constant 0 : index
    %26 = vector.load %arg5[%c0_16, %c0_17, %c0_18] : memref<1x512x64xf32, #tpu.memory_space<vmem>>, vector<1x512x64xf32>
    %27 = vector.shape_cast %26 : vector<1x512x64xf32> to vector<512x64xf32>
    %cst_19 = arith.constant dense<0.000000e+00> : vector<128x64xf32>
    %28 = tpu.matmul %16, %27, %cst_19 {dimension_numbers = #tpu.dot_dimension_numbers<[1], [0], [0], [1], [0, 0, 1, 1], [], []>} : vector<128x512xf32>, vector<512x64xf32>, vector<128x64xf32> -> vector<128x64xf32>
    %29 = arith.addf %25, %28 : vector<128x64xf32>
    %c0_20 = arith.constant 0 : index
    %c0_21 = arith.constant 0 : index
    %30 = vector.load %arg10[%c0_20, %c0_21] : memref<128x64xf32, #tpu.memory_space<vmem>>, vector<128x64xf32>
    tpu.vector_store %arg10[%c0_20, %c0_21], %29 {strides = array<i32>} : memref<128x64xf32, #tpu.memory_space<vmem>>, vector<128x64xf32>,
    %c0_22 = arith.constant 0 : index
    %c0_23 = arith.constant 0 : index
    %31 = vector.load %arg8[%c0_22, %c0_23] : memref<128x1xf32, #tpu.memory_space<vmem>>, vector<128x1xf32>
    tpu.vector_store %arg8[%c0_22, %c0_23], %11 {strides = array<i32>} : memref<128x1xf32, #tpu.memory_space<vmem>>, vector<128x1xf32>,
    %c1_i32 = arith.constant 1 : i32
    %32 = arith.cmpi eq, %arg2, %c1_i32 : i32
    %33 = arith.extui %32 : i1 to i32
    %c0_i32_24 = arith.constant 0 : i32
    %34 = arith.cmpi ne, %33, %c0_i32_24 : i32
    scf.if %34 {
      %c0_25 = arith.constant 0 : index
      %c0_26 = arith.constant 0 : index
      %35 = vector.load %arg9[%c0_25, %c0_26] : memref<128x1xf32, #tpu.memory_space<vmem>>, vector<128x1xf32>
      %36 = tpu.reciprocal %35 {approx = true} : vector<128x1xf32> -> vector<128x1xf32>
      %37 = arith.mulf %35, %36 : vector<128x1xf32>
      %cst_27 = arith.constant 2.000000e+00 : f32
      %38 = vector.broadcast %cst_27 : f32 to vector<128x1xf32>
      %39 = arith.subf %38, %37 : vector<128x1xf32>
      %40 = arith.mulf %36, %39 : vector<128x1xf32>
      %c0_28 = arith.constant 0 : index
      %c0_29 = arith.constant 0 : index
      %41 = vector.load %arg10[%c0_28, %c0_29] : memref<128x64xf32, #tpu.memory_space<vmem>>, vector<128x64xf32>
      %42 = vector.broadcast %40 : vector<128x1xf32> to vector<128x64xf32>
      %43 = arith.mulf %41, %42 : vector<128x64xf32>
      %44 = vector.extract_strided_slice %43 {offsets = [0, 0], sizes = [128, 32], strides = [1, 1]} : vector<128x64xf32> to vector<128x32xf32>
      %45 = vector.extract_strided_slice %43 {offsets = [0, 32], sizes = [128, 32], strides = [1, 1]} : vector<128x64xf32> to vector<128x32xf32>
      %46 = arith.mulf %44, %44 : vector<128x32xf32>
      %47 = arith.subf %45, %46 : vector<128x32xf32>
      %cst_30 = arith.constant 0.000000e+00 : f32
      %48 = vector.broadcast %cst_30 : f32 to vector<128x32xf32>
      %49 = arith.maximumf %47, %48 : vector<128x32xf32>
      %50 = math.sqrt %49 : vector<128x32xf32>
      %c0_31 = arith.constant 0 : index
      %c0_32 = arith.constant 0 : index
      %c0_33 = arith.constant 0 : index
      %51 = vector.load %arg6[%c0_31, %c0_32, %c0_33] : memref<1x128x32xf32, #tpu.memory_space<vmem>>, vector<1x128x32xf32>
      %52 = vector.shape_cast %51 : vector<1x128x32xf32> to vector<128x32xf32>
      %53 = arith.mulf %50, %52 : vector<128x32xf32>
      %54 = arith.addf %53, %44 : vector<128x32xf32>
      %c0_34 = arith.constant 0 : index
      %c0_35 = arith.constant 0 : index
      %c0_36 = arith.constant 0 : index
      %55 = vector.load %arg7[%c0_34, %c0_35, %c0_36] : memref<1x128x32xf32, #tpu.memory_space<vmem>>, vector<1x128x32xf32>
      %56 = vector.shape_cast %55 : vector<1x128x32xf32> to vector<128x32xf32>
      %57 = vector.shape_cast %54 : vector<128x32xf32> to vector<1x128x32xf32>
      tpu.vector_store %arg7[%c0_34, %c0_35, %c0_36], %57 {strides = array<i32>} : memref<1x128x32xf32, #tpu.memory_space<vmem>>, vector<1x128x32xf32>,
    } else {
    }
    return
  }
  func.func @transform_0(%arg0: i32, %arg1: i32, %arg2: i32) -> (i32, i32, i32) {
    %c0_i32 = arith.constant 0 : i32
    %c0_i32_0 = arith.constant 0 : i32
    return %arg0, %arg1, %c0_i32 : i32, i32, i32
  }
  func.func @transform_1(%arg0: i32, %arg1: i32, %arg2: i32) -> (i32, i32, i32) {
    %c0_i32 = arith.constant 0 : i32
    %c0_i32_0 = arith.constant 0 : i32
    return %arg0, %c0_i32, %arg2 : i32, i32, i32
  }
  func.func @transform_2(%arg0: i32, %arg1: i32, %arg2: i32) -> (i32, i32, i32) {
    %c0_i32 = arith.constant 0 : i32
    %c0_i32_0 = arith.constant 0 : i32
    return %arg0, %arg2, %c0_i32 : i32, i32, i32
  }
  func.func @transform_3(%arg0: i32, %arg1: i32, %arg2: i32) -> (i32, i32, i32) {
    %c0_i32 = arith.constant 0 : i32
    %c0_i32_0 = arith.constant 0 : i32
    return %arg0, %arg1, %c0_i32 : i32, i32, i32
  }
  func.func @transform_4(%arg0: i32, %arg1: i32, %arg2: i32) -> (i32, i32, i32) {
    %c0_i32 = arith.constant 0 : i32
    %c0_i32_0 = arith.constant 0 : i32
    return %arg0, %arg1, %c0_i32 : i32, i32, i32
  }
}

</mosaic_0001>

<bundles_post_ra>
// kernel: adaattn_pallas.1
= control target key start
LH: loop header
LB: loop body
LE: loop exit
PB: predicated region body
PF: predicated region fallthrough
CT: control target
= control target key end

     0   :  { %s4992_s0 = inlined_call_operand.vmem [shape: f32[2,256,32], index: 0, kind: input, shape index: {}]   ;;  %s4993_s1 = inlined_call_operand.vmem [shape: f32[2,32,1024], index: 1, kind: input, shape index: {}]   ;;  %s4994_s2 = inlined_call_operand.vmem [shape: f32[2,1024,64], index: 2, kind: input, shape index: {}]   ;;  %s4995_s3 = inlined_call_operand.vmem [shape: f32[2,256,32], index: 3, kind: input, shape index: {}]   ;;  %s4996_s4 = inlined_call_operand.hbm [shape: f32[2,256,32], index: 4, kind: output, shape index: {}]  }
   0x1   :  { %5039 = sst [smem:[#allocation52_spill]] %s4993_s1 }
   0x2   :  { %9 = vsyncpa [#allocation7], 0 }
   0x3   :  { %11 = vsyncpa [#allocation7 + $0x1], 0  ;;  %s3570_s15 = smov 0   ;;  %s3572_s16 = smov 0  }
   0x4   :  { %s3574_s17 = smov 0   ;;  %s3576_s18 = smov 0  }
   0x5   :  { %s3578_s19 = smov 0   ;;  %s3580_s20 = smov 0  }
   0x6   :  { %s3582_s21 = smov 0   ;;  %s3584_s22 = smov 0  }
   0x7   :  { %s3586_s23 = smov 0   ;;  %s3588_s24 = smov 0  }
   0x8   :  { %s3590_s25 = smov 0   ;;  %s3592_s26 = smov 0  }
   0x9 LB: > { %5040 = sst [smem:[#allocation9_spill]] %s3497_s17  ;;  %s2767_s27 = sadd.s32 4294967295, %s3533_s26   ;;  %s3533_s26 = sphi %s3592_s26, %s17_s26   ;;  %s3529_s25 = sphi %s3590_s25, %s5132_s25   ;;  %s3525_s24 = sphi %s3588_s24, %s5131_s24   ;;  %s3521_s23 = sphi %s3586_s23, %s5130_s23   ;;  %s3517_s22 = sphi %s3584_s22, %s5129_s22   ;;  %s3513_s21 = sphi %s3582_s21, %s5128_s21   ;;  %s3509_s20 = sphi %s3580_s20, %s5135_s20   ;;  %s3505_s19 = sphi %s3578_s19, %s5126_s19   ;;  %s3501_s18 = sphi %s3576_s18, %s5125_s18   ;;  %s3497_s17 = sphi %s3574_s17, %s5124_s17   ;;  %s3493_s16 = sphi %s3572_s16, %s5134_s16   ;;  %s3489_s15 = sphi %s3570_s15, %s5133_s15  }
   0xa   : > { %5041 = sst [smem:[#allocation10_spill]] %s3505_s19  ;;  %s29_s28 = sadd.s32 1, %s3521_s23 }
   0xb   : > { %5042 = sst [smem:[#allocation11_spill]] %s3521_s23  ;;  %p30_p0 = scmp.ge.s32.totalorder %s29_s28, 2 }
   0xc   : > { %5043 = sst [smem:[#allocation12_spill]] %s3525_s24  ;;  %s32_s29 = sadd.s32 1, %s3525_s24 }
   0xd   : > { %5044 = sst [smem:[#allocation13_spill]] %s3529_s25  ;;  %s2768_s30 = sadd.s32 4294967294, %s3533_s26  }
   0xe   : > { %p80_p1 = scmp.ne.s32.totalorder %s3505_s19, %s3501_s18  ;;  %s5137_s28 = smov (%p30_p0, %s29_s28), 0 }
   0xf   : > { %5045 = sst [smem:[#allocation14_spill]] %s5137_s28  ;;  %s5139_s29 = smov (!%p30_p0, %s32_s29), %s3525_s24 }
  0x10   : > { %s36_s5 = sadd.s32 1, %s3529_s25  ;;  %p81_p2 = scmp.eq.s32.totalorder %s3533_s26, 0 }
  0x11   : > { %p34_p3 = scmp.ge.s32.totalorder %s5139_s29, 2  ;;  %s69_s6 = ssub.s32 %s3521_s23, %s5137_s28 }
  0x12   : > { %p3643_p4 = por %p81_p2, %p80_p1  ;;  %p167_p5 = scmp.ne.s32.totalorder %s3497_s17, %s3493_s16 }
  0x13   : > { %s5141_s29 = smov (%p34_p3, %s5139_s29), 0  ;;  %s5143_s5 = smov (!%p34_p3, %s36_s5), %s3529_s25 }
  0x14   : > { %5047 = sst [smem:[#allocation15_spill]] %s5141_s29  ;;  %s153_s8 = ssub.s32 %s3525_s24, %s5141_s29 }
  0x15   : > { %p168_p6 = scmp.eq.s32.totalorder %s2767_s27, 7  ;;  %p38_p7 = scmp.ge.s32.totalorder %s5143_s5, 2 }
  0x16   : > { %p173_p8 = scmp.ne.s32.totalorder %s3493_s16, %s3489_s15  ;;  %p174_p10 = scmp.eq.s32.totalorder %s2768_s30, 7 }
  0x17   : > { %p3656_p9 = por %p168_p6, %p167_p5  ;;  %s5145_s5 = smov (%p38_p7, %s5143_s5), 0 }
  0x18   : > { %5049 = sst [smem:[#allocation16_spill]] %s5145_s5  ;;  %s73_s10 = sadd.s32 1, %s3505_s19 }
  0x19   : > { %p3663_p11 = por %p174_p10, %p173_p8  ;;  %s68_s12 = ssub.s32 %s3529_s25, %s5145_s5 }
  0x1a   : > { %s157_s13 = sadd.s32 1, %s3497_s17  ;;  %s70_s14 = sor.u32 %s69_s6, %s68_s12 }
  0x1b   : > { %s5050_s11 = scalar_select %p3663_p11, 1, 0 }
  0x1c   : > { %s154_s29 = sor.u32 %s153_s8, %s68_s12  ;;  %p71_p12 = scmp.eq.s32.totalorder %s70_s14, 0 }
  0x1d   : > { %5051 = sst [smem:[#allocation17_spill]] %s5050_s11  ;;  %p155_p13 = scmp.eq.s32.totalorder %s154_s29, 0 }
  0x1e   : > { %s3671_s27 = scalar_select %p71_p12, %s3505_s19, %s73_s10  }
  0x1f   : > { %s3674_s28 = scalar_select %p155_p13, %s3497_s17, %s157_s13  }
  0x20   : > { %5052 = sst [smem:[#allocation18_spill]] %s3671_s27  ;;  %p2770_p0 = scmp.ge.s32.totalorder %s3533_s26, 8 }
  0x21   : > { %5053 = sst [smem:[#allocation19_spill]] %s3674_s28 }
  0x22   : > { %190 = sbr.rel (%p2770_p0) target bundleno = 59 (0x3b), region = 16 }
  0x29   : > { %206 = sbr.rel (!%p3643_p4) target bundleno = 59 (0x3b), region = 24  ;;  %s208_s30 = sand.u32 (%p3643_p4), 1, %s3505_s19  }
  0x2a   : > { %s2772_s5 = sshll.u32 (%p3643_p4), %s3521_s23, 2  ;;  %s2771_s24 = sshll.u32 (%p3643_p4), %s208_s30, 7 }
  0x2b   : > { %s2773_s6 = sshll.u32 (%p3643_p4), %s3529_s25, 5  ;;  %s5054_s1 = sld [smem:[#allocation52_spill]] (%p3643_p4) }
  0x2c   : > { %s213_s8 = sadd.s32 (%p3643_p4), %s2773_s6, %s2772_s5  ;;  %s210_s7 = scalar_lea.vmem (%p3643_p4), [#allocation5], %s2771_s24 }
  0x2d   : > { %s2774_s12 = sshll.u32 (%p3643_p4), %s213_s8, 3 }
  0x31   : > { %s3685_s13 = scalar_lea.vmem %s5054_s1, %s2774_s12 }
  0x32   : > { %v228_v0 = vld [vmem:[%s3685_s13] sm:$0xff]  ;;  %v230_v1 = vld [vmem:[%s3685_s13 + $0x8] sm:$0xff]  ;;  %v232_v2 = vld [vmem:[%s3685_s13 + $0x10] sm:$0xff] }
  0x33   : > { %229 = vst [vmem:[%s210_s7] sm:$0xff] %v228_v0  ;;  %231 = vst [vmem:[%s210_s7 + $0x8] sm:$0xff] %v230_v1  ;;  %v234_v3 = vld [vmem:[%s3685_s13 + $0x18] sm:$0xff]  ;;  %v236_v4 = vld [vmem:[%s3685_s13 + $0x40] sm:$0xff] }
  0x34   : > { %233 = vst [vmem:[%s210_s7 + $0x10] sm:$0xff] %v232_v2  ;;  %v238_v5 = vld [vmem:[%s3685_s13 + $0x48] sm:$0xff]  ;;  %235 = vst [vmem:[%s210_s7 + $0x18] sm:$0xff] %v234_v3  ;;  %v240_v6 = vld [vmem:[%s3685_s13 + $0x50] sm:$0xff] }
  0x35   : > { %237 = vst [vmem:[%s210_s7 + $0x20] sm:$0xff] %v236_v4  ;;  %239 = vst [vmem:[%s210_s7 + $0x28] sm:$0xff] %v238_v5  ;;  %v242_v7 = vld [vmem:[%s3685_s13 + $0x58] sm:$0xff]  ;;  %v244_v8 = vld [vmem:[%s3685_s13 + $0x80] sm:$0xff] }
  0x36   : > { %241 = vst [vmem:[%s210_s7 + $0x30] sm:$0xff] %v240_v6  ;;  %243 = vst [vmem:[%s210_s7 + $0x38] sm:$0xff] %v242_v7  ;;  %v246_v9 = vld [vmem:[%s3685_s13 + $0x88] sm:$0xff]  ;;  %v248_v10 = vld [vmem:[%s3685_s13 + $0x90] sm:$0xff] }
  0x37   : > { %245 = vst [vmem:[%s210_s7 + $0x40] sm:$0xff] %v244_v8  ;;  %v250_v11 = vld [vmem:[%s3685_s13 + $0x98] sm:$0xff]  ;;  %247 = vst [vmem:[%s210_s7 + $0x48] sm:$0xff] %v246_v9  ;;  %v252_v12 = vld [vmem:[%s3685_s13 + $0xc0] sm:$0xff] }
  0x38   : > { %249 = vst [vmem:[%s210_s7 + $0x50] sm:$0xff] %v248_v10  ;;  %251 = vst [vmem:[%s210_s7 + $0x58] sm:$0xff] %v250_v11  ;;  %v254_v13 = vld [vmem:[%s3685_s13 + $0xc8] sm:$0xff]  ;;  %v256_v14 = vld [vmem:[%s3685_s13 + $0xd0] sm:$0xff] }
  0x39   : > { %253 = vst [vmem:[%s210_s7 + $0x60] sm:$0xff] %v252_v12  ;;  %255 = vst [vmem:[%s210_s7 + $0x68] sm:$0xff] %v254_v13  ;;  %v258_v15 = vld [vmem:[%s3685_s13 + $0xd8] sm:$0xff] }
  0x3a   : > { %257 = vst [vmem:[%s210_s7 + $0x70] sm:$0xff] %v256_v14  ;;  %259 = vst [vmem:[%s210_s7 + $0x78] sm:$0xff] %v258_v15 }
  0x3b PF: > { %p2775_p1 = scmp.ge.s32.totalorder %s3533_s26, 1  ;;  %p290_p2 = scmp.lt.s32.totalorder %s3533_s26, 9 }
  0x3d   : > { %p291_p3 = pnand %p2775_p1, %p290_p2 }
  0x3f   : > { %294 = sbr.rel (%p291_p3) target bundleno = 1355 (0x54b), region = 55 }
  0x46   : > { %s297_s24 = sand.u32 1, %s3501_s18   ;;  %s5002_s5 = sand.u32 1, %s3493_s16  }
  0x47   : > { %s2776_s14 = sshll.u32 %s297_s24, 7  ;;  %s2777_s30 = sshll.u32 %s5002_s5, 7 }
  0x48   : > { %s3710_s6 = sshll.u32 %s3513_s21, 4  ;;  %p350_p4 = scmp.lt.s32.totalorder %s3517_s22, 1 }
  0x49   : > { %p352_p5 = scmp.lt.s32.totalorder %s3710_s6, 31  ;;  %s2781_s8 = sshll.u32 %s3509_s20, 6 }
  0x4a   : > { %s351_s12 = scalar_select %p350_p4, %s3517_s22, 1 }
  0x4b   : > { %s353_s29 = scalar_select %p352_p5, %s3710_s6, 31 }
  0x4c   : > { %s2779_s10 = sshll.u32 %s351_s12, 5  ;;  %p363_p6 = scmp.lt.s32.totalorder %s2781_s8, 127 }
  0x4d   : > { %s355_s13 = sadd.s32 %s2779_s10, %s353_s29  ;;  %s2782_s1 = sshll.u32 %s351_s12, 7 }
  0x4e   : > { %s2780_s7 = sshll.u32 %s355_s13, 3  ;;  %s5147_s8 = smov (!%p363_p6, %s2781_s8), 127 }
  0x4f   : > { %s3720_s24 = scalar_lea.vmem %s4992_s0, %s2780_s7  ;;  %s3725_s23 = scalar_lea.vmem %s4995_s3, %s2780_s7 }
  0x50   : > { %s366_s27 = sadd.s32 %s2782_s1, %s5147_s8  ;;  %s3732_s29 = scalar_lea.vmem [#allocation5], %s2776_s14 }
  0x51   : > { %s2783_s19 = sshll.u32 %s366_s27, 3  ;;  %s3734_s12 = scalar_lea.vmem [#allocation6], %s2777_s30 }
  0x52   : > { %s3730_s11 = scalar_lea.vmem %s4994_s2, %s2783_s19  ;;  %p2787_p7 = scmp.ne.s32.totalorder %s3509_s20, 0 }
  0x53   : > { %vm385_vm0 = vcmask (!%p2787_p7), 7168   ;;  %vm418_vm1 = vcmask (!%p2787_p7), 523264   ;;  %v3535_v16 = vmov (!%p2787_p7), -inf   ;;  %v3536_v17 = vmov (!%p2787_p7), 0.0  }
  0x54   : > { %384 = sbr.rel (%p2787_p7) target bundleno = 108 (0x6c), region = 63  ;;  %386 = vst.msk [vmem:[#allocation2] sm:$0xff] (!%p2787_p7), %vm385_vm0, %v3535_v16  ;;  %387 = vst.msk [vmem:[#allocation2 + $0x8] sm:$0xff] (!%p2787_p7), %vm385_vm0, %v3535_v16 }
  0x55   : > { %388 = vst.msk [vmem:[#allocation2 + $0x10] sm:$0xff] (!%p2787_p7), %vm385_vm0, %v3535_v16  ;;  %389 = vst.msk [vmem:[#allocation2 + $0x18] sm:$0xff] (!%p2787_p7), %vm385_vm0, %v3535_v16 }
  0x56   : > { %390 = vst.msk [vmem:[#allocation2 + $0x20] sm:$0xff] (!%p2787_p7), %vm385_vm0, %v3535_v16  ;;  %391 = vst.msk [vmem:[#allocation2 + $0x28] sm:$0xff] (!%p2787_p7), %vm385_vm0, %v3535_v16 }
  0x57   : > { %392 = vst.msk [vmem:[#allocation2 + $0x30] sm:$0xff] (!%p2787_p7), %vm385_vm0, %v3535_v16  ;;  %393 = vst.msk [vmem:[#allocation2 + $0x38] sm:$0xff] (!%p2787_p7), %vm385_vm0, %v3535_v16 }
  0x58   : > { %394 = vst.msk [vmem:[#allocation2 + $0x40] sm:$0xff] (!%p2787_p7), %vm385_vm0, %v3535_v16  ;;  %395 = vst.msk [vmem:[#allocation2 + $0x48] sm:$0xff] (!%p2787_p7), %vm385_vm0, %v3535_v16 }
  0x59   : > { %396 = vst.msk [vmem:[#allocation2 + $0x50] sm:$0xff] (!%p2787_p7), %vm385_vm0, %v3535_v16  ;;  %397 = vst.msk [vmem:[#allocation2 + $0x58] sm:$0xff] (!%p2787_p7), %vm385_vm0, %v3535_v16 }
  0x5a   : > { %398 = vst.msk [vmem:[#allocation2 + $0x60] sm:$0xff] (!%p2787_p7), %vm385_vm0, %v3535_v16  ;;  %399 = vst.msk [vmem:[#allocation2 + $0x68] sm:$0xff] (!%p2787_p7), %vm385_vm0, %v3535_v16 }
  0x5b   : > { %400 = vst.msk [vmem:[#allocation2 + $0x70] sm:$0xff] %vm385_vm0, %v3535_v16  ;;  %401 = vst.msk [vmem:[#allocation2 + $0x78] sm:$0xff] %vm385_vm0, %v3535_v16 }
  0x5c   : > { %402 = vst.msk [vmem:[#allocation3] sm:$0xff] %vm385_vm0, %v3536_v17  ;;  %403 = vst.msk [vmem:[#allocation3 + $0x8] sm:$0xff] %vm385_vm0, %v3536_v17 }
  0x5d   : > { %404 = vst.msk [vmem:[#allocation3 + $0x10] sm:$0xff] %vm385_vm0, %v3536_v17  ;;  %405 = vst.msk [vmem:[#allocation3 + $0x18] sm:$0xff] %vm385_vm0, %v3536_v17 }
  0x5e   : > { %406 = vst.msk [vmem:[#allocation3 + $0x20] sm:$0xff] %vm385_vm0, %v3536_v17  ;;  %407 = vst.msk [vmem:[#allocation3 + $0x28] sm:$0xff] %vm385_vm0, %v3536_v17 }
  0x5f   : > { %408 = vst.msk [vmem:[#allocation3 + $0x30] sm:$0xff] %vm385_vm0, %v3536_v17  ;;  %409 = vst.msk [vmem:[#allocation3 + $0x38] sm:$0xff] %vm385_vm0, %v3536_v17 }
  0x60   : > { %410 = vst.msk [vmem:[#allocation3 + $0x40] sm:$0xff] %vm385_vm0, %v3536_v17  ;;  %411 = vst.msk [vmem:[#allocation3 + $0x48] sm:$0xff] %vm385_vm0, %v3536_v17 }
  0x61   : > { %412 = vst.msk [vmem:[#allocation3 + $0x50] sm:$0xff] %vm385_vm0, %v3536_v17  ;;  %413 = vst.msk [vmem:[#allocation3 + $0x58] sm:$0xff] %vm385_vm0, %v3536_v17 }
  0x62   : > { %414 = vst.msk [vmem:[#allocation3 + $0x60] sm:$0xff] %vm385_vm0, %v3536_v17  ;;  %415 = vst.msk [vmem:[#allocation3 + $0x68] sm:$0xff] %vm385_vm0, %v3536_v17 }
  0x63   : > { %416 = vst.msk [vmem:[#allocation3 + $0x70] sm:$0xff] %vm385_vm0, %v3536_v17  ;;  %417 = vst.msk [vmem:[#allocation3 + $0x78] sm:$0xff] %vm385_vm0, %v3536_v17 }
  0x64   : > { %419 = vst.msk [vmem:[#allocation4] sm:$0xff] %vm418_vm1, %v3536_v17  ;;  %420 = vst.msk [vmem:[#allocation4 + $0x8] sm:$0xff] %vm418_vm1, %v3536_v17 }
  0x65   : > { %421 = vst.msk [vmem:[#allocation4 + $0x10] sm:$0xff] %vm418_vm1, %v3536_v17  ;;  %422 = vst.msk [vmem:[#allocation4 + $0x18] sm:$0xff] %vm418_vm1, %v3536_v17 }
  0x66   : > { %423 = vst.msk [vmem:[#allocation4 + $0x20] sm:$0xff] %vm418_vm1, %v3536_v17  ;;  %424 = vst.msk [vmem:[#allocation4 + $0x28] sm:$0xff] %vm418_vm1, %v3536_v17 }
  0x67   : > { %425 = vst.msk [vmem:[#allocation4 + $0x30] sm:$0xff] %vm418_vm1, %v3536_v17  ;;  %426 = vst.msk [vmem:[#allocation4 + $0x38] sm:$0xff] %vm418_vm1, %v3536_v17 }
  0x68   : > { %427 = vst.msk [vmem:[#allocation4 + $0x40] sm:$0xff] %vm418_vm1, %v3536_v17  ;;  %428 = vst.msk [vmem:[#allocation4 + $0x48] sm:$0xff] %vm418_vm1, %v3536_v17 }
  0x69   : > { %429 = vst.msk [vmem:[#allocation4 + $0x50] sm:$0xff] %vm418_vm1, %v3536_v17  ;;  %430 = vst.msk [vmem:[#allocation4 + $0x58] sm:$0xff] %vm418_vm1, %v3536_v17 }
  0x6a   : > { %431 = vst.msk [vmem:[#allocation4 + $0x60] sm:$0xff] %vm418_vm1, %v3536_v17  ;;  %432 = vst.msk [vmem:[#allocation4 + $0x68] sm:$0xff] %vm418_vm1, %v3536_v17 }
  0x6b   : > { %433 = vst.msk [vmem:[#allocation4 + $0x70] sm:$0xff] %vm418_vm1, %v3536_v17  ;;  %434 = vst.msk [vmem:[#allocation4 + $0x78] sm:$0xff] %vm418_vm1, %v3536_v17 }
  0x6c PF: > { %v452_v18 = vld [vmem:[%s3732_s29 + $0x8] sm:$0xff]  ;;  %v451_v20 = vld [vmem:[%s3732_s29] sm:$0xff]  ;;  %v454_v23 = vld [vmem:[%s3732_s29 + $0x18] sm:$0xff]  ;;  %v3537_v25 = vmov 0.0   ;;  %vm467_vm2 = vcmask 261120   ;;  %vm1398_vm3 = vcmask 7168  }
  0x6d   : > { %v456_v19 = vld [vmem:[%s3732_s29 + $0x28] sm:$0xff]  ;;  %v455_v22 = vld [vmem:[%s3732_s29 + $0x20] sm:$0xff]  ;;  %v458_v24 = vld [vmem:[%s3732_s29 + $0x38] sm:$0xff]  ;;  %580 = vmatprep.mubr.f32.mxu0 %v3537_v25  ;;  %741 = vmatprep.mubr.f32.mxu1 %v3537_v25  ;;  %vm1897_vm4 = vcmask 523264   ;;  %p2820_p8 = scmp.ne.s32.totalorder %s3509_s20, 1 }
  0x6e   : > { %v2987_v21 = vpack.c.bf16 %v456_v19, %v452_v18  ;;  %v2989_v26 = vpack.c.bf16 %v455_v22, %v451_v20  ;;  %v2995_v27 = vpack.c.bf16 %v458_v24, %v454_v23  ;;  %v453_v28 = vld [vmem:[%s3732_s29 + $0x10] sm:$0xff]  ;;  %v460_v30 = vld [vmem:[%s3732_s29 + $0x48] sm:$0xff]  ;;  %v459_v33 = vld [vmem:[%s3732_s29 + $0x40] sm:$0xff]  ;;  %s3540_s1 = smov (!%p2820_p8), 32   ;;  %s3541_s17 = smov (!%p2820_p8), 96  }
  0x6f   : > { %v457_v29 = vld [vmem:[%s3732_s29 + $0x30] sm:$0xff]  ;;  %v464_v32 = vld [vmem:[%s3732_s29 + $0x68] sm:$0xff]  ;;  %v463_v34 = vld [vmem:[%s3732_s29 + $0x60] sm:$0xff] }
  0x70   : > { %2988 = vmatprep.subr.bf16.mxu0 %v2987_v21  ;;  %v2997_v31 = vpack.c.bf16 %v457_v29, %v453_v28  ;;  %2996 = vmatprep.subr.bf16.mxu1 %v2995_v27  ;;  %v2991_v35 = vpack.c.bf16 %v464_v32, %v460_v30  ;;  %v2993_v36 = vpack.c.bf16 %v463_v34, %v459_v33  ;;  %v462_v37 = vld [vmem:[%s3732_s29 + $0x58] sm:$0xff]  ;;  %v461_v39 = vld [vmem:[%s3732_s29 + $0x50] sm:$0xff]  ;;  %v435_v43 = vld [vmem:[%s3720_s24] sm:$0xff] }
  0x71   : > { %2990 = vmatpush1.bf16.msra.mxu0 %v2989_v26  ;;  %v466_v38 = vld [vmem:[%s3732_s29 + $0x78] sm:$0xff]  ;;  %v465_v41 = vld [vmem:[%s3732_s29 + $0x70] sm:$0xff]  ;;  %v436_v44 = vld [vmem:[%s3720_s24 + $0x8] sm:$0xff] }
  0x72   : > { %2998 = vmatpush1.bf16.msra.mxu1 %v2997_v31  ;;  %v2999_v40 = vpack.c.bf16 %v466_v38, %v462_v37  ;;  %2992 = vmatprep.subr.bf16.mxu0 %v2991_v35  ;;  %v3001_v42 = vpack.c.bf16 %v465_v41, %v461_v39  ;;  %v437_v45 = vld [vmem:[%s3720_s24 + $0x10] sm:$0xff]  ;;  %v438_v46 = vld [vmem:[%s3720_s24 + $0x18] sm:$0xff]  ;;  %v439_v47 = vld [vmem:[%s3720_s24 + $0x20] sm:$0xff]  ;;  %v3538_v35 = vmov 0  }
  0x73   : > { %v440_v48 = vld [vmem:[%s3720_s24 + $0x28] sm:$0xff]  ;;  %v441_v49 = vld [vmem:[%s3720_s24 + $0x30] sm:$0xff]  ;;  %v442_v50 = vld [vmem:[%s3720_s24 + $0x38] sm:$0xff]  ;;  %3179 = vset.pattern.permute.xlu0 %v3538_v35  ;;  %3180 = vset.pattern.permute.xlu1 %v3538_v35 }
  0x74   : > { %3000 = vmatprep.subr.bf16.mxu1 %v2999_v40  ;;  %v443_v51 = vld [vmem:[%s3720_s24 + $0x40] sm:$0xff]  ;;  %v444_v52 = vld [vmem:[%s3720_s24 + $0x48] sm:$0xff]  ;;  %v445_v53 = vld [vmem:[%s3720_s24 + $0x50] sm:$0xff] }
  0x75   : > { %2994 = vmatpush1.bf16.msra.mxu0 %v2993_v36  ;;  %v446_v54 = vld [vmem:[%s3720_s24 + $0x58] sm:$0xff]  ;;  %v447_v55 = vld [vmem:[%s3720_s24 + $0x60] sm:$0xff]  ;;  %v448_v56 = vld [vmem:[%s3720_s24 + $0x68] sm:$0xff] }
  0x76   : > { %3002 = vmatpush1.bf16.msra.mxu1 %v3001_v42  ;;  %v449_v57 = vld [vmem:[%s3720_s24 + $0x70] sm:$0xff]  ;;  %v450_v58 = vld [vmem:[%s3720_s24 + $0x78] sm:$0xff] }
  0x78   : > { %2788 = vmatmul.mubr.msk.f32.vlgmr.msra.gmra.mrb[0].mxu0 %vm467_vm2, %v435_v43 }
  0x79   : > { %2804 = vmatmul.mubr.msk.f32.vlgmr.msra.gmra.mrb[0].mxu1 %vm467_vm2, %v435_v43  ;;  %586 = vmatprep.mubr.f32.mxu0 %v3537_v25 }
  0x7a   : > { %747 = vmatprep.mubr.f32.mxu1 %v3537_v25 }
  0x7c   : > { %2789 = vmatmul.mubr.msk.f32.gmra.mrb[2].mxu0 %vm467_vm2, %v436_v44 }
  0x7d   : > { %2805 = vmatmul.mubr.msk.f32.gmra.mrb[2].mxu1 %vm467_vm2, %v436_v44  ;;  %592 = vmatprep.mubr.f32.mxu0 %v3537_v25 }
  0x7e   : > { %753 = vmatprep.mubr.f32.mxu1 %v3537_v25 }
  0x80   : > { %2790 = vmatmul.mubr.msk.f32.gmra.mrb[4].mxu0 %vm467_vm2, %v437_v45 }
  0x81   : > { %2806 = vmatmul.mubr.msk.f32.gmra.mrb[4].mxu1 %vm467_vm2, %v437_v45  ;;  %598 = vmatprep.mubr.f32.mxu0 %v3537_v25 }
  0x82   : > { %759 = vmatprep.mubr.f32.mxu1 %v3537_v25 }
  0x84   : > { %2791 = vmatmul.mubr.msk.f32.gmra.mrb[6].mxu0 %vm467_vm2, %v438_v46 }
  0x85   : > { %2807 = vmatmul.mubr.msk.f32.gmra.mrb[6].mxu1 %vm467_vm2, %v438_v46  ;;  %604 = vmatprep.mubr.f32.mxu0 %v3537_v25 }
  0x86   : > { %765 = vmatprep.mubr.f32.mxu1 %v3537_v25 }
  0x88   : > { %2792 = vmatmul.mubr.msk.f32.gmra.mrb[8].mxu0 %vm467_vm2, %v439_v47 }
  0x89   : > { %2808 = vmatmul.mubr.msk.f32.gmra.mrb[8].mxu1 %vm467_vm2, %v439_v47  ;;  %610 = vmatprep.mubr.f32.mxu0 %v3537_v25 }
  0x8a   : > { %771 = vmatprep.mubr.f32.mxu1 %v3537_v25 }
  0x8c   : > { %2793 = vmatmul.mubr.msk.f32.gmra.mrb[10].mxu0 %vm467_vm2, %v440_v48 }
  0x8d   : > { %2809 = vmatmul.mubr.msk.f32.gmra.mrb[10].mxu1 %vm467_vm2, %v440_v48  ;;  %616 = vmatprep.mubr.f32.mxu0 %v3537_v25 }
  0x8e   : > { %777 = vmatprep.mubr.f32.mxu1 %v3537_v25 }
  0x90   : > { %2794 = vmatmul.mubr.msk.f32.gmra.mrb[12].mxu0 %vm467_vm2, %v441_v49 }
  0x91   : > { %2810 = vmatmul.mubr.msk.f32.gmra.mrb[12].mxu1 %vm467_vm2, %v441_v49  ;;  %622 = vmatprep.mubr.f32.mxu0 %v3537_v25 }
  0x92   : > { %783 = vmatprep.mubr.f32.mxu1 %v3537_v25 }
  0x94   : > { %2795 = vmatmul.mubr.msk.f32.gmra.mrb[14].mxu0 %vm467_vm2, %v442_v50 }
  0x95   : > { %2811 = vmatmul.mubr.msk.f32.gmra.mrb[14].mxu1 %vm467_vm2, %v442_v50  ;;  %628 = vmatprep.mubr.f32.mxu0 %v3537_v25 }
  0x96   : > { %789 = vmatprep.mubr.f32.mxu1 %v3537_v25 }
  0x98   : > { %2796 = vmatmul.mubr.msk.f32.gmra.mrb[16].mxu0 %vm467_vm2, %v443_v51 }
  0x99   : > { %2812 = vmatmul.mubr.msk.f32.gmra.mrb[16].mxu1 %vm467_vm2, %v443_v51  ;;  %634 = vmatprep.mubr.f32.mxu0 %v3537_v25 }
  0x9a   : > { %795 = vmatprep.mubr.f32.mxu1 %v3537_v25 }
  0x9c   : > { %2797 = vmatmul.mubr.msk.f32.gmra.mrb[18].mxu0 %vm467_vm2, %v444_v52 }
  0x9d   : > { %2813 = vmatmul.mubr.msk.f32.gmra.mrb[18].mxu1 %vm467_vm2, %v444_v52  ;;  %640 = vmatprep.mubr.f32.mxu0 %v3537_v25 }
  0x9e   : > { %801 = vmatprep.mubr.f32.mxu1 %v3537_v25 }
  0xa0   : > { %2798 = vmatmul.mubr.msk.f32.gmra.mrb[20].mxu0 %vm467_vm2, %v445_v53 }
  0xa1   : > { %2814 = vmatmul.mubr.msk.f32.gmra.mrb[20].mxu1 %vm467_vm2, %v445_v53  ;;  %646 = vmatprep.mubr.f32.mxu0 %v3537_v25 }
  0xa2   : > { %807 = vmatprep.mubr.f32.mxu1 %v3537_v25 }
  0xa4   : > { %2799 = vmatmul.mubr.msk.f32.gmra.mrb[22].mxu0 %vm467_vm2, %v446_v54 }
  0xa5   : > { %2815 = vmatmul.mubr.msk.f32.gmra.mrb[22].mxu1 %vm467_vm2, %v446_v54  ;;  %652 = vmatprep.mubr.f32.mxu0 %v3537_v25 }
  0xa6   : > { %813 = vmatprep.mubr.f32.mxu1 %v3537_v25 }
  0xa8   : > { %2800 = vmatmul.mubr.msk.f32.gmra.mrb[24].mxu0 %vm467_vm2, %v447_v55 }
  0xa9   : > { %2816 = vmatmul.mubr.msk.f32.gmra.mrb[24].mxu1 %vm467_vm2, %v447_v55  ;;  %658 = vmatprep.mubr.f32.mxu0 %v3537_v25 }
  0xaa   : > { %819 = vmatprep.mubr.f32.mxu1 %v3537_v25 }
  0xac   : > { %2801 = vmatmul.mubr.msk.f32.gmra.mrb[26].mxu0 %vm467_vm2, %v448_v56 }
  0xad   : > { %2817 = vmatmul.mubr.msk.f32.gmra.mrb[26].mxu1 %vm467_vm2, %v448_v56  ;;  %664 = vmatprep.mubr.f32.mxu0 %v3537_v25 }
  0xae   : > { %825 = vmatprep.mubr.f32.mxu1 %v3537_v25 }
  0xb0   : > { %2802 = vmatmul.mubr.msk.f32.gmra.mrb[28].mxu0 %vm467_vm2, %v449_v57 }
  0xb1   : > { %2818 = vmatmul.mubr.msk.f32.gmra.mrb[28].mxu1 %vm467_vm2, %v449_v57  ;;  %670 = vmatprep.mubr.f32.mxu0 %v3537_v25 }
  0xb2   : > { %831 = vmatprep.mubr.f32.mxu1 %v3537_v25 }
  0xb4   : > { %2803 = vmatmul.mubr.msk.f32.gmra.mrb[30].mxu0 %vm467_vm2, %v450_v58 }
  0xb5   : > { %2819 = vmatmul.mubr.msk.f32.gmra.mrb[30].mxu1 %vm467_vm2, %v450_v58 }
 0x14b   : > { %v3881_v59 = vpop.f32.mrb[0].mxu0 }
 0x14c   : > { %v3883_v60 = vpop.f32.mrb[1].mxu0  ;;  %v3885_v61 = vpop.f32.mrb[0].mxu1 }
 0x14d   : > { %v854_v62 = vmax.f32 %v3881_v59, %v3883_v60  ;;  %v3889_v63 = vpop.f32.mrb[1].mxu1 }
 0x14f   : > { %v855_v0 = vmax.f32 %v854_v62, %v3885_v61  ;;  %v3892_v1 = vpop.f32.mrb[2].mxu0 }
 0x150   : > { %v3894_v2 = vpop.f32.mrb[3].mxu0  ;;  %v3896_v3 = vpop.f32.mrb[2].mxu1 }
 0x151   : > { %v859_v4 = vmax.f32 %v3892_v1, %v3894_v2  ;;  %v3900_v5 = vpop.f32.mrb[3].mxu1  ;;  %v856_v6 = vmax.f32 %v855_v0, %v3889_v63 }
 0x153   : > { %v860_v7 = vmax.f32 %v859_v4, %v3896_v3  ;;  %857 = vmax.xlane.f32.xlu0 %v856_v6  ;;  %v3904_v8 = vpop.f32.mrb[4].mxu0 }
 0x154   : > { %v3906_v9 = vpop.f32.mrb[5].mxu0  ;;  %v3908_v10 = vpop.f32.mrb[4].mxu1 }
 0x155   : > { %v864_v11 = vmax.f32 %v3904_v8, %v3906_v9  ;;  %v3912_v12 = vpop.f32.mrb[5].mxu1  ;;  %v861_v13 = vmax.f32 %v860_v7, %v3900_v5 }
 0x157   : > { %v865_v14 = vmax.f32 %v864_v11, %v3908_v10  ;;  %862 = vmax.xlane.f32.xlu0 %v861_v13  ;;  %v3916_v15 = vpop.f32.mrb[6].mxu0 }
 0x158   : > { %v3918_v16 = vpop.f32.mrb[7].mxu0  ;;  %v3920_v17 = vpop.f32.mrb[6].mxu1 }
 0x159   : > { %v869_v18 = vmax.f32 %v3916_v15, %v3918_v16  ;;  %v3924_v19 = vpop.f32.mrb[7].mxu1  ;;  %v866_v20 = vmax.f32 %v865_v14, %v3912_v12 }
 0x15b   : > { %v870_v21 = vmax.f32 %v869_v18, %v3920_v17  ;;  %867 = vmax.xlane.f32.xlu1 %v866_v20  ;;  %v3928_v22 = vpop.f32.mrb[8].mxu0 }
 0x15c   : > { %v3930_v23 = vpop.f32.mrb[9].mxu0  ;;  %v3932_v24 = vpop.f32.mrb[8].mxu1 }
 0x15d   : > { %v874_v25 = vmax.f32 %v3928_v22, %v3930_v23  ;;  %v3936_v26 = vpop.f32.mrb[9].mxu1  ;;  %v871_v27 = vmax.f32 %v870_v21, %v3924_v19 }
 0x15f   : > { %v875_v28 = vmax.f32 %v874_v25, %v3932_v24  ;;  %872 = vmax.xlane.f32.xlu1 %v871_v27  ;;  %v3940_v29 = vpop.f32.mrb[10].mxu0 }
 0x160   : > { %v3942_v30 = vpop.f32.mrb[11].mxu0  ;;  %v3944_v31 = vpop.f32.mrb[10].mxu1 }
 0x161   : > { %v879_v32 = vmax.f32 %v3940_v29, %v3942_v30  ;;  %v3948_v33 = vpop.f32.mrb[11].mxu1  ;;  %v876_v34 = vmax.f32 %v875_v28, %v3936_v26 }
 0x163   : > { %v880_v36 = vmax.f32 %v879_v32, %v3944_v31  ;;  %877 = vmax.xlane.f32.xlu0 %v876_v34  ;;  %v3952_v37 = vpop.f32.mrb[12].mxu0 }
 0x164   : > { %v3954_v38 = vpop.f32.mrb[13].mxu0  ;;  %v3956_v39 = vpop.f32.mrb[12].mxu1 }
 0x165   : > { %v884_v40 = vmax.f32 %v3952_v37, %v3954_v38  ;;  %v3960_v41 = vpop.f32.mrb[13].mxu1  ;;  %v881_v42 = vmax.f32 %v880_v36, %v3948_v33 }
 0x167   : > { %v885_v43 = vmax.f32 %v884_v40, %v3956_v39  ;;  %882 = vmax.xlane.f32.xlu1 %v881_v42  ;;  %v3964_v44 = vpop.f32.mrb[14].mxu0 }
 0x168   : > { %v3966_v45 = vpop.f32.mrb[15].mxu0  ;;  %v3968_v46 = vpop.f32.mrb[14].mxu1 }
 0x169   : > { %v889_v47 = vmax.f32 %v3964_v44, %v3966_v45  ;;  %v3972_v48 = vpop.f32.mrb[15].mxu1  ;;  %v886_v49 = vmax.f32 %v885_v43, %v3960_v41 }
 0x16b   : > { %v890_v50 = vmax.f32 %v889_v47, %v3968_v46  ;;  %887 = vmax.xlane.f32.xlu0 %v886_v49  ;;  %v3976_v51 = vpop.f32.mrb[16].mxu0 }
 0x16c   : > { %5055 = vst [vmem:[#allocation20_spill] sm:$0xff] %v3976_v51  ;;  %v3978_v52 = vpop.f32.mrb[17].mxu0  ;;  %v3980_v53 = vpop.f32.mrb[16].mxu1 }
 0x16d   : > { %5056 = vst [vmem:[#allocation21_spill] sm:$0xff] %v3978_v52  ;;  %5057 = vst [vmem:[#allocation22_spill] sm:$0xff] %v3980_v53  ;;  %v894_v54 = vmax.f32 %v3976_v51, %v3978_v52  ;;  %v3984_v55 = vpop.f32.mrb[17].mxu1  ;;  %v891_v56 = vmax.f32 %v890_v50, %v3972_v48 }
 0x16e   : > { %5058 = vst [vmem:[#allocation23_spill] sm:$0xff] %v3984_v55 }
 0x16f   : > { %v895_v57 = vmax.f32 %v894_v54, %v3980_v53  ;;  %892 = vmax.xlane.f32.xlu1 %v891_v56  ;;  %v3988_v58 = vpop.f32.mrb[18].mxu0 }
 0x170   : > { %5059 = vst [vmem:[#allocation24_spill] sm:$0xff] %v3988_v58  ;;  %v3990_v62 = vpop.f32.mrb[19].mxu0  ;;  %v3992_v0 = vpop.f32.mrb[18].mxu1 }
 0x171   : > { %5060 = vst [vmem:[#allocation25_spill] sm:$0xff] %v3990_v62  ;;  %5061 = vst [vmem:[#allocation26_spill] sm:$0xff] %v3992_v0  ;;  %v899_v4 = vmax.f32 %v3988_v58, %v3990_v62  ;;  %v3996_v6 = vpop.f32.mrb[19].mxu1  ;;  %v896_v7 = vmax.f32 %v895_v57, %v3984_v55  ;;  %v4232_v58 = vld [vmem:[#allocation2 + $0x60] sm:$0xff] }
 0x172   : > { %5062 = vst [vmem:[#allocation27_spill] sm:$0xff] %v3996_v6 }
 0x173   : > { %v900_v11 = vmax.f32 %v899_v4, %v3992_v0  ;;  %897 = vmax.xlane.f32.xlu0 %v896_v7  ;;  %v4000_v13 = vpop.f32.mrb[20].mxu0 }
 0x174   : > { %5063 = vst [vmem:[#allocation28_spill] sm:$0xff] %v4000_v13  ;;  %v4002_v14 = vpop.f32.mrb[21].mxu0  ;;  %v4004_v18 = vpop.f32.mrb[20].mxu1 }
 0x175   : > { %5064 = vst [vmem:[#allocation29_spill] sm:$0xff] %v4002_v14  ;;  %5065 = vst [vmem:[#allocation30_spill] sm:$0xff] %v4004_v18  ;;  %v904_v20 = vmax.f32 %v4000_v13, %v4002_v14  ;;  %v4008_v21 = vpop.f32.mrb[21].mxu1  ;;  %v901_v25 = vmax.f32 %v900_v11, %v3996_v6  ;;  %v4222_v6 = vld [vmem:[#allocation2 + $0x58] sm:$0xff] }
 0x176   : > { %5066 = vst [vmem:[#allocation31_spill] sm:$0xff] %v4008_v21 }
 0x177   : > { %v905_v27 = vmax.f32 %v904_v20, %v4004_v18  ;;  %902 = vmax.xlane.f32.xlu1 %v901_v25  ;;  %v4012_v28 = vpop.f32.mrb[22].mxu0 }
 0x178   : > { %5067 = vst [vmem:[#allocation32_spill] sm:$0xff] %v4012_v28  ;;  %v4014_v32 = vpop.f32.mrb[23].mxu0  ;;  %v4016_v34 = vpop.f32.mrb[22].mxu1 }
 0x179   : > { %5068 = vst [vmem:[#allocation33_spill] sm:$0xff] %v4014_v32  ;;  %5069 = vst [vmem:[#allocation34_spill] sm:$0xff] %v4016_v34  ;;  %v909_v35 = vmax.f32 %v4012_v28, %v4014_v32  ;;  %v4020_v36 = vpop.f32.mrb[23].mxu1  ;;  %v906_v40 = vmax.f32 %v905_v27, %v4008_v21  ;;  %v1569_v32 = vld [vmem:[%s3730_s11 + $0x150] sm:$0xff]  ;;  %v1570_v28 = vld [vmem:[%s3730_s11 + $0x158] sm:$0xff] }
 0x17a   : > { %5070 = vst [vmem:[#allocation35_spill] sm:$0xff] %v4020_v36  ;;  %v1556_v21 = vld [vmem:[%s3730_s11 + $0xe8] sm:$0xff]  ;;  %v3057_v14 = vpack.c.bf16 %v1570_v28, %v1569_v32 }
 0x17b   : > { %v910_v42 = vmax.f32 %v909_v35, %v4016_v34  ;;  %907 = vmax.xlane.f32.xlu0 %v906_v40  ;;  %v4024_v43 = vpop.f32.mrb[24].mxu0 }
 0x17c   : > { %5071 = vst [vmem:[#allocation36_spill] sm:$0xff] %v4024_v43  ;;  %v4026_v47 = vpop.f32.mrb[25].mxu0  ;;  %v4028_v49 = vpop.f32.mrb[24].mxu1 }
 0x17d   : > { %5072 = vst [vmem:[#allocation37_spill] sm:$0xff] %v4026_v47  ;;  %5073 = vst [vmem:[#allocation38_spill] sm:$0xff] %v4028_v49  ;;  %v914_v50 = vmax.f32 %v4024_v43, %v4026_v47  ;;  %v4032_v54 = vpop.f32.mrb[25].mxu1  ;;  %v911_v56 = vmax.f32 %v910_v42, %v4020_v36  ;;  %v1528_v47 = vld [vmem:[%s3730_s11 + $0x8] sm:$0xff]  ;;  %v1581_v43 = vld [vmem:[%s3730_s11 + $0x1b0] sm:$0xff] }
 0x17e   : > { %5074 = vst [vmem:[#allocation39_spill] sm:$0xff] %v4032_v54  ;;  %v1536_v36 = vld [vmem:[%s3730_s11 + $0x48] sm:$0xff] }
 0x17f   : > { %v915_v57 = vmax.f32 %v914_v50, %v4028_v49  ;;  %912 = vmax.xlane.f32.xlu1 %v911_v56  ;;  %v4036_v4 = vpop.f32.mrb[26].mxu0 }
 0x180   : > { %5075 = vst [vmem:[#allocation40_spill] sm:$0xff] %v4036_v4  ;;  %v4038_v7 = vpop.f32.mrb[27].mxu0  ;;  %v4040_v11 = vpop.f32.mrb[26].mxu1 }
 0x181   : > { %5076 = vst [vmem:[#allocation41_spill] sm:$0xff] %v4038_v7  ;;  %5077 = vst [vmem:[#allocation42_spill] sm:$0xff] %v4040_v11  ;;  %v919_v20 = vmax.f32 %v4036_v4, %v4038_v7  ;;  %v4044_v25 = vpop.f32.mrb[27].mxu1  ;;  %v916_v27 = vmax.f32 %v915_v57, %v4032_v54  ;;  %v1575_v4 = vld [vmem:[%s3730_s11 + $0x180] sm:$0xff] }
 0x182   : > { %5078 = vst [vmem:[#allocation43_spill] sm:$0xff] %v4044_v25 }
 0x183   : > { %v920_v35 = vmax.f32 %v919_v20, %v4040_v11  ;;  %917 = vmax.xlane.f32.xlu0 %v916_v27  ;;  %v4048_v40 = vpop.f32.mrb[28].mxu0 }
 0x184   : > { %5079 = vst [vmem:[#allocation44_spill] sm:$0xff] %v4048_v40  ;;  %v4050_v42 = vpop.f32.mrb[29].mxu0  ;;  %v4052_v50 = vpop.f32.mrb[28].mxu1 }
 0x185   : > { %5080 = vst [vmem:[#allocation45_spill] sm:$0xff] %v4050_v42  ;;  %5081 = vst [vmem:[#allocation46_spill] sm:$0xff] %v4052_v50  ;;  %v924_v56 = vmax.f32 %v4048_v40, %v4050_v42  ;;  %v4056_v49 = vpop.f32.mrb[29].mxu1  ;;  %v921_v7 = vmax.f32 %v920_v35, %v4044_v25  ;;  %v1544_v25 = vld [vmem:[%s3730_s11 + $0x88] sm:$0xff] }
 0x186   : > { %5082 = vst [vmem:[#allocation47_spill] sm:$0xff] %v4056_v49 }
 0x187   : > { %v925_v57 = vmax.f32 %v924_v56, %v4052_v50  ;;  %922 = vmax.xlane.f32.xlu1 %v921_v7  ;;  %v4060_v20 = vpop.f32.mrb[30].mxu0  ;;  %v1543_v50 = vld [vmem:[%s3730_s11 + $0x80] sm:$0xff] }
 0x188   : > { %5083 = vst [vmem:[#allocation48_spill] sm:$0xff] %v4060_v20  ;;  %v4062_v27 = vpop.f32.mrb[31].mxu0  ;;  %v4064_v11 = vpop.f32.mrb[30].mxu1  ;;  %v3003_v54 = vpack.c.bf16 %v1544_v25, %v1543_v50  ;;  %v1546_v25 = vld [vmem:[%s3730_s11 + $0x98] sm:$0xff]  ;;  %v1577_v50 = vld [vmem:[%s3730_s11 + $0x190] sm:$0xff] }
 0x189   : > { %5084 = vst [vmem:[#allocation49_spill] sm:$0xff] %v4062_v27  ;;  %5085 = vst [vmem:[#allocation50_spill] sm:$0xff] %v4064_v11  ;;  %v929_v42 = vmax.f32 %v4060_v20, %v4062_v27  ;;  %v4068_v40 = vpop.f32.mrb[31].mxu1  ;;  %v926_v35 = vmax.f32 %v925_v57, %v4056_v49  ;;  %v1576_v27 = vld [vmem:[%s3730_s11 + $0x188] sm:$0xff]  ;;  %v1527_v20 = vld [vmem:[%s3730_s11] sm:$0xff] }
 0x18a   : > { %5086 = vst [vmem:[#allocation51_spill] sm:$0xff] %v4068_v40  ;;  %v3035_v57 = vpack.c.bf16 %v1576_v27, %v1575_v4  ;;  %v3005_v49 = vpack.c.bf16 %v1528_v47, %v1527_v20  ;;  %3004 = vmatprep.subr.bf16.mxu0 %v3003_v54  ;;  %v1529_v4 = vld [vmem:[%s3730_s11 + $0x10] sm:$0xff]  ;;  %v1530_v47 = vld [vmem:[%s3730_s11 + $0x18] sm:$0xff] }
 0x18b   : > { %v930_v56 = vmax.f32 %v929_v42, %v4064_v11  ;;  %927 = vmax.xlane.f32.xlu0 %v926_v35  ;;  %v1559_v42 = vld [vmem:[%s3730_s11 + $0x100] sm:$0xff]  ;;  %v1560_v35 = vld [vmem:[%s3730_s11 + $0x108] sm:$0xff]  ;;  %v1578_v11 = vld [vmem:[%s3730_s11 + $0x198] sm:$0xff]  ;;  %v3009_v27 = vpack.c.bf16 %v1530_v47, %v1529_v4 }
 0x18c   : > { %3036 = vmatprep.subr.bf16.mxu1 %v3035_v57  ;;  %3006 = vmatpush3.bf16.msra.mxu0 %v3005_v49  ;;  %v3039_v20 = vpack.c.bf16 %v1578_v11, %v1577_v50  ;;  %v1561_v54 = vld [vmem:[%s3730_s11 + $0x110] sm:$0xff]  ;;  %v1562_v57 = vld [vmem:[%s3730_s11 + $0x118] sm:$0xff]  ;;  %v1531_v11 = vld [vmem:[%s3730_s11 + $0x20] sm:$0xff] }
 0x18d   : > { %v931_v7 = vmax.f32 %v930_v56, %v4068_v40  ;;  %v3037_v56 = vpack.c.bf16 %v1560_v35, %v1559_v42  ;;  %v3041_v49 = vpack.c.bf16 %v1562_v57, %v1561_v54  ;;  %v1547_v42 = vld [vmem:[%s3730_s11 + $0xa0] sm:$0xff]  ;;  %v1548_v35 = vld [vmem:[%s3730_s11 + $0xa8] sm:$0xff]  ;;  %v1550_v57 = vld [vmem:[%s3730_s11 + $0xb8] sm:$0xff] }
 0x18e   : > { %v1532_v50 = vld [vmem:[%s3730_s11 + $0x28] sm:$0xff]  ;;  %v1563_v47 = vld [vmem:[%s3730_s11 + $0x120] sm:$0xff] }
 0x18f   : > { %932 = vmax.xlane.f32.xlu1 %v931_v7  ;;  %3038 = vmatpush3.bf16.msra.mxu1 %v3037_v56  ;;  %v1545_v7 = vld [vmem:[%s3730_s11 + $0x90] sm:$0xff]  ;;  %v1579_v56 = vld [vmem:[%s3730_s11 + $0x1a0] sm:$0xff]  ;;  %v1564_v54 = vld [vmem:[%s3730_s11 + $0x128] sm:$0xff] }
 0x190   : > { %v3007_v40 = vpack.c.bf16 %v1546_v25, %v1545_v7  ;;  %3040 = vmatprep.subr.bf16.mxu1 %v3039_v20  ;;  %v3011_v7 = vpack.c.bf16 %v1548_v35, %v1547_v42  ;;  %v1580_v25 = vld [vmem:[%s3730_s11 + $0x1a8] sm:$0xff]  ;;  %v1549_v20 = vld [vmem:[%s3730_s11 + $0xb0] sm:$0xff] }
 0x191   : > { %v3043_v4 = vpack.c.bf16 %v1580_v25, %v1579_v56  ;;  %v3015_v42 = vpack.c.bf16 %v1550_v57, %v1549_v20  ;;  %v1533_v56 = vld [vmem:[%s3730_s11 + $0x30] sm:$0xff]  ;;  %v1534_v25 = vld [vmem:[%s3730_s11 + $0x38] sm:$0xff]  ;;  %v1583_v20 = vld [vmem:[%s3730_s11 + $0x1c0] sm:$0xff] }
 0x192   : > { %3008 = vmatprep.subr.bf16.mxu0 %v3007_v40  ;;  %v3013_v40 = vpack.c.bf16 %v1532_v50, %v1531_v11  ;;  %v1565_v11 = vld [vmem:[%s3730_s11 + $0x130] sm:$0xff]  ;;  %v1566_v50 = vld [vmem:[%s3730_s11 + $0x138] sm:$0xff]  ;;  %v1535_v57 = vld [vmem:[%s3730_s11 + $0x40] sm:$0xff] }
 0x193   : > { %3010 = vmatpush3.bf16.msra.mxu0 %v3009_v27  ;;  %3042 = vmatpush3.bf16.msra.mxu1 %v3041_v49  ;;  %v3045_v27 = vpack.c.bf16 %v1564_v54, %v1563_v47  ;;  %v1582_v49 = vld [vmem:[%s3730_s11 + $0x1b8] sm:$0xff]  ;;  %v1551_v47 = vld [vmem:[%s3730_s11 + $0xc0] sm:$0xff]  ;;  %v1552_v54 = vld [vmem:[%s3730_s11 + $0xc8] sm:$0xff] }
 0x194   : > { %3012 = vmatprep.subr.bf16.mxu0 %v3011_v7  ;;  %3044 = vmatprep.subr.bf16.mxu1 %v3043_v4  ;;  %v3047_v35 = vpack.c.bf16 %v1582_v49, %v1581_v43  ;;  %v3017_v7 = vpack.c.bf16 %v1534_v25, %v1533_v56  ;;  %v3049_v4 = vpack.c.bf16 %v1566_v50, %v1565_v11  ;;  %v1584_v43 = vld [vmem:[%s3730_s11 + $0x1c8] sm:$0xff]  ;;  %v1585_v11 = vld [vmem:[%s3730_s11 + $0x1d0] sm:$0xff] }
 0x195   : > { %v3051_v49 = vpack.c.bf16 %v1584_v43, %v1583_v20  ;;  %v1568_v56 = vld [vmem:[%s3730_s11 + $0x148] sm:$0xff]  ;;  %v3021_v25 = vpack.c.bf16 %v1536_v36, %v1535_v57  ;;  %v1537_v20 = vld [vmem:[%s3730_s11 + $0x50] sm:$0xff]  ;;  %v1538_v43 = vld [vmem:[%s3730_s11 + $0x58] sm:$0xff] }
 0x196   : > { %v1587_v36 = vld [vmem:[%s3730_s11 + $0x1e0] sm:$0xff]  ;;  %v1588_v57 = vld [vmem:[%s3730_s11 + $0x1e8] sm:$0xff]  ;;  %v3025_v18 = vpack.c.bf16 %v1538_v43, %v1537_v20 }
 0x197   : > { %3014 = vmatpush3.bf16.msra.mxu0 %v3013_v40  ;;  %3046 = vmatpush3.bf16.msra.mxu1 %v3045_v27  ;;  %v3019_v40 = vpack.c.bf16 %v1552_v54, %v1551_v47  ;;  %v1567_v27 = vld [vmem:[%s3730_s11 + $0x140] sm:$0xff]  ;;  %v1586_v54 = vld [vmem:[%s3730_s11 + $0x1d8] sm:$0xff] }
 0x198   : > { %3016 = vmatprep.subr.bf16.mxu0 %v3015_v42  ;;  %3048 = vmatprep.subr.bf16.mxu1 %v3047_v35  ;;  %v1553_v42 = vld [vmem:[%s3730_s11 + $0xd0] sm:$0xff]  ;;  %v1554_v35 = vld [vmem:[%s3730_s11 + $0xd8] sm:$0xff]  ;;  %v3053_v50 = vpack.c.bf16 %v1568_v56, %v1567_v27  ;;  %v3055_v34 = vpack.c.bf16 %v1586_v54, %v1585_v11  ;;  %v1571_v11 = vld [vmem:[%s3730_s11 + $0x160] sm:$0xff] }
 0x199   : > { %v3023_v47 = vpack.c.bf16 %v1554_v35, %v1553_v42  ;;  %v1539_v42 = vld [vmem:[%s3730_s11 + $0x60] sm:$0xff]  ;;  %v1540_v35 = vld [vmem:[%s3730_s11 + $0x68] sm:$0xff] }
 0x19b   : > { %3018 = vmatpush3.bf16.msra.mxu0 %v3017_v7  ;;  %3050 = vmatpush3.bf16.msra.mxu1 %v3049_v4  ;;  %v1555_v7 = vld [vmem:[%s3730_s11 + $0xe0] sm:$0xff] }
 0x19c   : > { %3020 = vmatprep.subr.bf16.mxu0 %v3019_v40  ;;  %3052 = vmatprep.subr.bf16.mxu1 %v3051_v49  ;;  %v3027_v4 = vpack.c.bf16 %v1556_v21, %v1555_v7  ;;  %v3059_v40 = vpack.c.bf16 %v1588_v57, %v1587_v36  ;;  %v4125_v49 = vld [vmem:[#allocation2] sm:$0xff]  ;;  %v4138_v21 = vld [vmem:[#allocation2 + $0x10] sm:$0xff]  ;;  %v1558_v57 = vld [vmem:[%s3730_s11 + $0xf8] sm:$0xff] }
 0x19d   : > { %v4158_v7 = vld [vmem:[#allocation2 + $0x20] sm:$0xff]  ;;  %v1557_v36 = vld [vmem:[%s3730_s11 + $0xf0] sm:$0xff] }
 0x19f   : > { %3022 = vmatpush3.bf16.msra.mxu0 %v3021_v25  ;;  %3054 = vmatpush3.bf16.msra.mxu1 %v3053_v50  ;;  %v4130_v25 = vld [vmem:[#allocation2 + $0x8] sm:$0xff]  ;;  %v3029_v50 = vpack.c.bf16 %v1540_v35, %v1539_v42  ;;  %v1541_v42 = vld [vmem:[%s3730_s11 + $0x70] sm:$0xff]  ;;  %v1542_v35 = vld [vmem:[%s3730_s11 + $0x78] sm:$0xff] }
 0x1a0   : > { %3024 = vmatprep.subr.bf16.mxu0 %v3023_v47  ;;  %3056 = vmatprep.subr.bf16.mxu1 %v3055_v34  ;;  %v4146_v34 = vld [vmem:[#allocation2 + $0x18] sm:$0xff]  ;;  %v1572_v47 = vld [vmem:[%s3730_s11 + $0x168] sm:$0xff] }
 0x1a1   : > { %v3061_v20 = vpack.c.bf16 %v1572_v47, %v1571_v11  ;;  %v1573_v11 = vld [vmem:[%s3730_s11 + $0x170] sm:$0xff] }
 0x1a3   : > { %3026 = vmatpush3.bf16.msra.mxu0 %v3025_v18  ;;  %3058 = vmatpush3.bf16.msra.mxu1 %v3057_v14 }
 0x1a4   : > { %3028 = vmatprep.subr.bf16.mxu0 %v3027_v4  ;;  %3060 = vmatprep.subr.bf16.mxu1 %v3059_v40  ;;  %v1589_v4 = vld [vmem:[%s3730_s11 + $0x1f0] sm:$0xff]  ;;  %v3031_v40 = vpack.c.bf16 %v1558_v57, %v1557_v36 }
 0x1a7   : > { %3030 = vmatpush3.bf16.msra.mxu0 %v3029_v50  ;;  %3062 = vmatpush3.bf16.msra.mxu1 %v3061_v20  ;;  %v3033_v50 = vpack.c.bf16 %v1542_v35, %v1541_v42  ;;  %v4174_v20 = vld [vmem:[#allocation2 + $0x28] sm:$0xff]  ;;  %v4198_v42 = vld [vmem:[#allocation2 + $0x40] sm:$0xff] }
 0x1a8   : > { %3032 = vmatprep.subr.bf16.mxu0 %v3031_v40 }
 0x1ab   : > { %3034 = vmatpush3.bf16.msra.mxu0 %v3033_v50  ;;  %v4206_v50 = vld [vmem:[#allocation2 + $0x48] sm:$0xff] }
 0x1e0   : > { %v858_v27 = vpop.xlane.xlu0 %857 }
 0x1e1   : > { %v4128_v56 = vmax.f32 %v4125_v49, %v858_v27  ;;  %v1590_v27 = vld [vmem:[%s3730_s11 + $0x1f8] sm:$0xff] }
 0x1e3   : > { %1914 = vst.msk [vmem:[#allocation2] sm:$0xff] %vm1398_vm3, %v4128_v56  ;;  %1000 = vperm.xlu0 %3179, %v4128_v56  }
 0x1e4   : > { %v863_v14 = vpop.xlane.xlu0 %862 }
 0x1e5   : > { %v4136_v18 = vmax.f32 %v4130_v25, %v863_v14 }
 0x1e7   : > { %1915 = vst.msk [vmem:[#allocation2 + $0x8] sm:$0xff] %vm1398_vm3, %v4136_v18  ;;  %1005 = vperm.xlu1 %3180, %v4136_v18  }
 0x1e8   : > { %v868_v28 = vpop.xlane.xlu1 %867 }
 0x1e9   : > { %v4144_v32 = vmax.f32 %v4138_v21, %v868_v28  ;;  %v3063_v28 = vpack.c.bf16 %v1590_v27, %v1589_v4  ;;  %v4182_v4 = vld [vmem:[#allocation2 + $0x30] sm:$0xff] }
 0x1eb   : > { %1916 = vst.msk [vmem:[#allocation2 + $0x10] sm:$0xff] %vm1398_vm3, %v4144_v32  ;;  %1010 = vperm.xlu1 %3180, %v4144_v32   ;;  %3064 = vmatprep.subr.bf16.mxu1 %v3063_v28  ;;  %v952_v53 = vsub.f32 %v4138_v21, %v4144_v32  ;;  %v4250_v32 = vld [vmem:[#allocation2 + $0x70] sm:$0xff] }
 0x1ec   : > { %v873_v54 = vpop.xlane.xlu1 %872 }
 0x1ed   : > { %v4156_v43 = vmax.f32 %v4146_v34, %v873_v54  ;;  %v1574_v54 = vld [vmem:[%s3730_s11 + $0x178] sm:$0xff] }
 0x1ee   : > { %v3065_v13 = vpack.c.bf16 %v1574_v54, %v1573_v11 }
 0x1ef   : > { %1917 = vst.msk [vmem:[#allocation2 + $0x18] sm:$0xff] %vm1398_vm3, %v4156_v43  ;;  %1015 = vperm.xlu1 %3180, %v4156_v43   ;;  %v953_v51 = vsub.f32 %v4146_v34, %v4156_v43 }
 0x1f0   : > { %v878_v14 = vpop.xlane.xlu0 %877  ;;  %3066 = vmatpush3.bf16.msra.mxu1 %v3065_v13 }
 0x1f1   : > { %v4171_v47 = vmax.f32 %v4158_v7, %v878_v14  ;;  %v4190_v14 = vld [vmem:[#allocation2 + $0x38] sm:$0xff] }
 0x1f3   : > { %1918 = vst.msk [vmem:[#allocation2 + $0x20] sm:$0xff] %vm1398_vm3, %v4171_v47  ;;  %1020 = vperm.xlu1 %3180, %v4171_v47  }
 0x1f4   : > { %v883_v36 = vpop.xlane.xlu1 %882 }
 0x1f5   : > { %v4180_v57 = vmax.f32 %v4174_v20, %v883_v36 }
 0x1f7   : > { %1919 = vst.msk [vmem:[#allocation2 + $0x28] sm:$0xff] %vm1398_vm3, %v4180_v57  ;;  %1025 = vperm.xlu1 %3180, %v4180_v57  }
 0x1f8   : > { %v888_v40 = vpop.xlane.xlu0 %887 }
 0x1f9   : > { %v4188_v27 = vmax.f32 %v4182_v4, %v888_v40  ;;  %v4214_v40 = vld [vmem:[#allocation2 + $0x50] sm:$0xff] }
 0x1fb   : > { %1920 = vst.msk [vmem:[#allocation2 + $0x30] sm:$0xff] %vm1398_vm3, %v4188_v27  ;;  %1030 = vperm.xlu1 %3180, %v4188_v27  }
 0x1fc   : > { %v893_v13 = vpop.xlane.xlu1 %892 }
 0x1fd   : > { %v4196_v28 = vmax.f32 %v4190_v14, %v893_v13 }
 0x1ff   : > { %1921 = vst.msk [vmem:[#allocation2 + $0x38] sm:$0xff] %vm1398_vm3, %v4196_v28  ;;  %1035 = vperm.xlu1 %3180, %v4196_v28  }
 0x200   : > { %v898_v35 = vpop.xlane.xlu0 %897 }
 0x201   : > { %v4204_v11 = vmax.f32 %v4198_v42, %v898_v35 }
 0x203   : > { %1922 = vst.msk [vmem:[#allocation2 + $0x40] sm:$0xff] %vm1398_vm3, %v4204_v11  ;;  %1040 = vperm.xlu1 %3180, %v4204_v11  }
 0x204   : > { %v903_v54 = vpop.xlane.xlu1 %902 }
 0x205   : > { %v4212_v36 = vmax.f32 %v4206_v50, %v903_v54  ;;  %v951_v54 = vsub.f32 %v4130_v25, %v4136_v18  ;;  %v4242_v18 = vld [vmem:[#allocation2 + $0x68] sm:$0xff] }
 0x207   : > { %1923 = vst.msk [vmem:[#allocation2 + $0x48] sm:$0xff] %vm1398_vm3, %v4212_v36  ;;  %1045 = vperm.xlu0 %3179, %v4212_v36   ;;  %v968_v55 = vmul.f32 1.442695, %v951_v54 }
 0x208   : > { %v908_v13 = vpop.xlane.xlu0 %907 }
 0x209   : > { %v4220_v35 = vmax.f32 %v4214_v40, %v908_v13  ;;  %v950_v13 = vsub.f32 %v4125_v49, %v4128_v56  ;;  %3181 = vpow2.f32 %v968_v55  ;;  %v970_v49 = vmul.f32 1.442695, %v952_v53 }
 0x20a   : > { %v954_v56 = vsub.f32 %v4158_v7, %v4171_v47  ;;  %v956_v53 = vsub.f32 %v4182_v4, %v4188_v27  ;;  %v4260_v7 = vld [vmem:[#allocation2 + $0x78] sm:$0xff]  ;;  %v958_v4 = vsub.f32 %v4198_v42, %v4204_v11 }
 0x20b   : > { %1924 = vst.msk [vmem:[#allocation2 + $0x50] sm:$0xff] %vm1398_vm3, %v4220_v35  ;;  %1050 = vperm.xlu1 %3180, %v4220_v35   ;;  %v960_v11 = vsub.f32 %v4214_v40, %v4220_v35 }
 0x20c   : > { %v913_v0 = vpop.xlane.xlu1 %912  ;;  %v974_v34 = vmul.f32 1.442695, %v954_v56  ;;  %v982_v42 = vmul.f32 1.442695, %v958_v4 }
 0x20d   : > { %v4230_v62 = vmax.f32 %v4222_v6, %v913_v0  ;;  %v966_v0 = vmul.f32 1.442695, %v950_v13  ;;  %v955_v13 = vsub.f32 %v4174_v20, %v4180_v57  ;;  %v978_v57 = vmul.f32 1.442695, %v956_v53 }
 0x20f   : > { %1925 = vst.msk [vmem:[#allocation2 + $0x58] sm:$0xff] %vm1398_vm3, %v4230_v62  ;;  %1055 = vperm.xlu0 %3179, %v4230_v62   ;;  %3183 = vpow2.f32 %v966_v0  ;;  %v976_v47 = vmul.f32 1.442695, %v955_v13  ;;  %v986_v13 = vmul.f32 1.442695, %v960_v11 }
 0x210   : > { %v918_v52 = vpop.xlane.xlu0 %917  ;;  %3185 = vpow2.f32 %v970_v49 }
 0x211   : > { %v946_v25 = vmax.f32 %v4232_v58, %v918_v52  ;;  %v972_v52 = vmul.f32 1.442695, %v953_v51  ;;  %v957_v51 = vsub.f32 %v4190_v14, %v4196_v28  ;;  %v959_v28 = vsub.f32 %v4206_v50, %v4212_v36 }
 0x212   : > { %v961_v36 = vsub.f32 %v4222_v6, %v4230_v62 }
 0x213   : > { %1926 = vst.msk [vmem:[#allocation2 + $0x60] sm:$0xff] %vm1398_vm3, %v946_v25  ;;  %1060 = vperm.xlu1 %3180, %v946_v25   ;;  %3187 = vpow2.f32 %v972_v52  ;;  %v4274_v49 = vpop.eup %3181  ;;  %v980_v14 = vmul.f32 1.442695, %v957_v51  ;;  %v984_v50 = vmul.f32 1.442695, %v959_v28 }
 0x214   : > { %v923_v54 = vpop.xlane.xlu1 %922  ;;  %3189 = vpow2.f32 %v974_v34  ;;  %v962_v34 = vsub.f32 %v4232_v58, %v946_v25  ;;  %v988_v35 = vmul.f32 1.442695, %v961_v36 }
 0x215   : > { %v947_v21 = vmax.f32 %v4242_v18, %v923_v54  ;;  %3191 = vpow2.f32 %v976_v47 }
 0x216   : > { %3193 = vpow2.f32 %v978_v57  ;;  %v990_v62 = vmul.f32 1.442695, %v962_v34 }
 0x217   : > { %1927 = vst.msk [vmem:[#allocation2 + $0x68] sm:$0xff] %vm1398_vm3, %v947_v21  ;;  %1065 = vperm.xlu0 %3179, %v947_v21   ;;  %3195 = vpow2.f32 %v980_v14  ;;  %v963_v6 = vsub.f32 %v4242_v18, %v947_v21 }
 0x218   : > { %v928_v55 = vpop.xlane.xlu0 %927  ;;  %3197 = vpow2.f32 %v982_v42 }
 0x219   : > { %v4258_v43 = vmax.f32 %v4250_v32, %v928_v55  ;;  %v4286_v54 = vpop.eup %3183  ;;  %3199 = vpow2.f32 %v984_v50  ;;  %v992_v58 = vmul.f32 1.442695, %v963_v6 }
 0x21a   : > { %v4288_v52 = vpop.eup %3185  ;;  %3201 = vpow2.f32 %v986_v13 }
 0x21b   : > { %1928 = vst.msk [vmem:[#allocation2 + $0x70] sm:$0xff] %vm1398_vm3, %v4258_v43  ;;  %1070 = vperm.xlu1 %3180, %v4258_v43   ;;  %3203 = vpow2.f32 %v988_v35 }
 0x21c   : > { %v933_v27 = vpop.xlane.xlu1 %932  ;;  %3205 = vpow2.f32 %v990_v62 }
 0x21d   : > { %v4272_v0 = vmax.f32 %v4260_v7, %v933_v27  ;;  %v4295_v53 = vpop.eup %3187  ;;  %3207 = vpow2.f32 %v992_v58 }
 0x21e   : > { %v4297_v40 = vpop.eup %3189 }
 0x21f   : > { %1929 = vst.msk [vmem:[#allocation2 + $0x78] sm:$0xff] %vm1398_vm3, %v4272_v0  ;;  %1438 = vperm.xlu1 %3180, %v4274_v49   ;;  %1075 = vperm.xlu0 %3179, %v4272_v0   ;;  %v4302_v55 = vpop.eup %3191 }
 0x220   : > { %v4304_v47 = vpop.eup %3193 }
 0x221   : > { %v4308_v25 = vpop.eup %3195 }
 0x222   : > { %v4310_v51 = vpop.eup %3197 }
 0x223   : > { %1443 = vperm.xlu1 %3180, %v4288_v52   ;;  %1433 = vperm.xlu0 %3179, %v4286_v54   ;;  %v4314_v18 = vpop.eup %3199 }
 0x224   : > { %v4316_v21 = vpop.eup %3201 }
 0x225   : > { %v4320_v57 = vpop.eup %3203 }
 0x226   : > { %v4322_v4 = vpop.eup %3205 }
 0x227   : > { %1453 = vperm.xlu1 %3180, %v4297_v40   ;;  %1448 = vperm.xlu0 %3179, %v4295_v53   ;;  %v4326_v27 = vpop.eup %3207 }
 0x22b   : > { %1463 = vperm.xlu1 %3180, %v4304_v47   ;;  %1458 = vperm.xlu0 %3179, %v4302_v55  }
 0x22f   : > { %1473 = vperm.xlu1 %3180, %v4310_v51   ;;  %1468 = vperm.xlu0 %3179, %v4308_v25  }
 0x233   : > { %1483 = vperm.xlu1 %3180, %v4316_v21   ;;  %1478 = vperm.xlu0 %3179, %v4314_v18  }
 0x237   : > { %1493 = vperm.xlu1 %3180, %v4322_v4   ;;  %1488 = vperm.xlu0 %3179, %v4320_v57  }
 0x23b   : > { %1498 = vperm.xlu0 %3179, %v4326_v27  }
 0x262   : > { %v1001_v14 = vpop.permute.xlu0 %1000 }
 0x263   : > { %v1078_v28 = vsub.f32 %v3881_v59, %v1001_v14  ;;  %v1079_v42 = vsub.f32 %v3883_v60, %v1001_v14  ;;  %v1080_v11 = vsub.f32 %v3885_v61, %v1001_v14  ;;  %v1081_v50 = vsub.f32 %v3889_v63, %v1001_v14 }
 0x265   : > { %v1142_v36 = vmul.f32 1.442695, %v1078_v28  ;;  %v1144_v13 = vmul.f32 1.442695, %v1079_v42  ;;  %v1146_v34 = vmul.f32 1.442695, %v1080_v11 }
 0x266   : > { %v1148_v35 = vmul.f32 1.442695, %v1081_v50  ;;  %v1006_v62 = vpop.permute.xlu1 %1005 }
 0x267   : > { %3209 = vpow2.f32 %v1142_v36  ;;  %v1082_v6 = vsub.f32 %v3892_v1, %v1006_v62  ;;  %v1083_v58 = vsub.f32 %v3894_v2, %v1006_v62  ;;  %v1084_v56 = vsub.f32 %v3896_v3, %v1006_v62 }
 0x268   : > { %3211 = vpow2.f32 %v1144_v13  ;;  %v1085_v59 = vsub.f32 %v3900_v5, %v1006_v62 }
 0x269   : > { %3213 = vpow2.f32 %v1146_v34  ;;  %v1150_v60 = vmul.f32 1.442695, %v1082_v6  ;;  %v1152_v61 = vmul.f32 1.442695, %v1083_v58  ;;  %v1154_v20 = vmul.f32 1.442695, %v1084_v56 }
 0x26a   : > { %3215 = vpow2.f32 %v1148_v35  ;;  %v1156_v63 = vmul.f32 1.442695, %v1085_v59  ;;  %v1011_v14 = vpop.permute.xlu1 %1010 }
 0x26b   : > { %3217 = vpow2.f32 %v1150_v60  ;;  %v1086_v28 = vsub.f32 %v3904_v8, %v1011_v14  ;;  %v1087_v42 = vsub.f32 %v3906_v9, %v1011_v14  ;;  %v1088_v1 = vsub.f32 %v3908_v10, %v1011_v14 }
 0x26c   : > { %3219 = vpow2.f32 %v1152_v61  ;;  %v1089_v2 = vsub.f32 %v3912_v12, %v1011_v14 }
 0x26d   : > { %3221 = vpow2.f32 %v1154_v20  ;;  %v1158_v3 = vmul.f32 1.442695, %v1086_v28  ;;  %v1160_v5 = vmul.f32 1.442695, %v1087_v42  ;;  %v1162_v11 = vmul.f32 1.442695, %v1088_v1 }
 0x26e   : > { %3223 = vpow2.f32 %v1156_v63  ;;  %v1164_v50 = vmul.f32 1.442695, %v1089_v2  ;;  %v1016_v56 = vpop.permute.xlu1 %1015 }
 0x26f   : > { %3225 = vpow2.f32 %v1158_v3  ;;  %v1090_v36 = vsub.f32 %v3916_v15, %v1016_v56  ;;  %v1091_v13 = vsub.f32 %v3918_v16, %v1016_v56  ;;  %v1092_v8 = vsub.f32 %v3920_v17, %v1016_v56 }
 0x270   : > { %3227 = vpow2.f32 %v1160_v5  ;;  %v1093_v9 = vsub.f32 %v3924_v19, %v1016_v56 }
 0x271   : > { %v3210_v10 = vpop.eup %3209  ;;  %3229 = vpow2.f32 %v1162_v11  ;;  %v1166_v12 = vmul.f32 1.442695, %v1090_v36  ;;  %v1168_v20 = vmul.f32 1.442695, %v1091_v13  ;;  %v1170_v34 = vmul.f32 1.442695, %v1092_v8 }
 0x272   : > { %v3212_v35 = vpop.eup %3211  ;;  %3231 = vpow2.f32 %v1164_v50  ;;  %v1172_v62 = vmul.f32 1.442695, %v1093_v9  ;;  %v1021_v6 = vpop.permute.xlu1 %1020 }
 0x273   : > { %v3214_v58 = vpop.eup %3213  ;;  %3233 = vpow2.f32 %v1166_v12  ;;  %1655 = vmatprep.mubr.f32.mxu0 %v3212_v35  ;;  %v1094_v15 = vsub.f32 %v3928_v22, %v1021_v6  ;;  %v1095_v16 = vsub.f32 %v3930_v23, %v1021_v6  ;;  %v1096_v17 = vsub.f32 %v3932_v24, %v1021_v6 }
 0x274   : > { %v3216_v59 = vpop.eup %3215  ;;  %3235 = vpow2.f32 %v1168_v20  ;;  %v1097_v19 = vsub.f32 %v3936_v26, %v1021_v6  ;;  %1656 = vmatmul.mubr.f32.vlgmr.msra.gmra.mrb[32].mxu0 %v3210_v10  ;;  %v1302_v60 = vadd.f32 %v3212_v35, %v3210_v10 }
 0x275   : > { %v3218_v61 = vpop.eup %3217  ;;  %3237 = vpow2.f32 %v1170_v34  ;;  %1800 = vmatprep.mubr.f32.mxu1 %v3216_v59  ;;  %v1174_v63 = vmul.f32 1.442695, %v1094_v15  ;;  %v1176_v14 = vmul.f32 1.442695, %v1095_v16  ;;  %v1178_v28 = vmul.f32 1.442695, %v1096_v17 }
 0x276   : > { %v3220_v42 = vpop.eup %3219  ;;  %3239 = vpow2.f32 %v1172_v62  ;;  %v1180_v1 = vmul.f32 1.442695, %v1097_v19  ;;  %1801 = vmatmul.mubr.f32.vlgmr.msra.gmra.mrb[32].mxu1 %v3214_v58  ;;  %v1026_v22 = vpop.permute.xlu1 %1025  ;;  %v1303_v23 = vadd.f32 %v3214_v58, %v1302_v60 }
 0x277   : > { %v3222_v2 = vpop.eup %3221  ;;  %3241 = vpow2.f32 %v1174_v63  ;;  %1660 = vmatprep.mubr.f32.mxu0 %v3220_v42  ;;  %v1098_v24 = vsub.f32 %v3940_v29, %v1026_v22  ;;  %v1099_v26 = vsub.f32 %v3942_v30, %v1026_v22  ;;  %v1100_v3 = vsub.f32 %v3944_v31, %v1026_v22 }
 0x278   : > { %v3224_v5 = vpop.eup %3223  ;;  %3243 = vpow2.f32 %v1176_v14  ;;  %v1101_v11 = vsub.f32 %v3948_v33, %v1026_v22  ;;  %1661 = vmatmul.mubr.f32.gmra.mrb[34].mxu0 %v3218_v61  ;;  %v1304_v50 = vadd.f32 %v3216_v59, %v1303_v23  ;;  %v1307_v56 = vadd.f32 %v3220_v42, %v3218_v61 }
 0x279   : > { %v3226_v36 = vpop.eup %3225  ;;  %3245 = vpow2.f32 %v1178_v28  ;;  %1805 = vmatprep.mubr.f32.mxu1 %v3224_v5  ;;  %v1182_v13 = vmul.f32 1.442695, %v1098_v24  ;;  %v1184_v8 = vmul.f32 1.442695, %v1099_v26  ;;  %v1186_v9 = vmul.f32 1.442695, %v1100_v3 }
 0x27a   : > { %v3228_v10 = vpop.eup %3227  ;;  %3247 = vpow2.f32 %v1180_v1  ;;  %v1188_v29 = vmul.f32 1.442695, %v1101_v11  ;;  %1806 = vmatmul.mubr.f32.gmra.mrb[34].mxu1 %v3222_v2  ;;  %1305 = vadd.xlane.f32.xlu1 %v1304_v50  ;;  %v1031_v30 = vpop.permute.xlu1 %1030  ;;  %v1308_v31 = vadd.f32 %v3222_v2, %v1307_v56  ;;  %v5088_v11 = vld [vmem:[#allocation21_spill] sm:$0xff]  ;;  %v5089_v56 = vld [vmem:[#allocation22_spill] sm:$0xff] }
 0x27b   : > { %v3230_v12 = vpop.eup %3229  ;;  %3249 = vpow2.f32 %v1182_v13  ;;  %1665 = vmatprep.mubr.f32.mxu0 %v3228_v10  ;;  %v1102_v33 = vsub.f32 %v3952_v37, %v1031_v30  ;;  %v1103_v20 = vsub.f32 %v3954_v38, %v1031_v30  ;;  %v1104_v34 = vsub.f32 %v3956_v39, %v1031_v30 }
 0x27c   : > { %v3232_v35 = vpop.eup %3231  ;;  %3251 = vpow2.f32 %v1184_v8  ;;  %v1105_v62 = vsub.f32 %v3960_v41, %v1031_v30  ;;  %1666 = vmatmul.mubr.f32.gmra.mrb[36].mxu0 %v3226_v36  ;;  %v1309_v6 = vadd.f32 %v3224_v5, %v1308_v31  ;;  %v1312_v58 = vadd.f32 %v3228_v10, %v3226_v36  ;;  %v5090_v8 = vld [vmem:[#allocation23_spill] sm:$0xff] }
 0x27d   : > { %v3234_v15 = vpop.eup %3233  ;;  %3253 = vpow2.f32 %v1186_v9  ;;  %1810 = vmatprep.mubr.f32.mxu1 %v3232_v35  ;;  %v1190_v16 = vmul.f32 1.442695, %v1102_v33  ;;  %v1192_v17 = vmul.f32 1.442695, %v1103_v20  ;;  %v1194_v59 = vmul.f32 1.442695, %v1104_v34 }
 0x27e   : > { %v3236_v19 = vpop.eup %3235  ;;  %3255 = vpow2.f32 %v1188_v29  ;;  %v1196_v37 = vmul.f32 1.442695, %v1105_v62  ;;  %1811 = vmatmul.mubr.f32.gmra.mrb[36].mxu1 %v3230_v12  ;;  %1310 = vadd.xlane.f32.xlu0 %v1309_v6  ;;  %v1036_v38 = vpop.permute.xlu1 %1035  ;;  %v1313_v39 = vadd.f32 %v3230_v12, %v1312_v58  ;;  %v5091_v58 = vld [vmem:[#allocation24_spill] sm:$0xff] }
 0x27f   : > { %v3238_v60 = vpop.eup %3237  ;;  %3257 = vpow2.f32 %v1190_v16  ;;  %1670 = vmatprep.mubr.f32.mxu0 %v3236_v19  ;;  %v1106_v41 = vsub.f32 %v3964_v44, %v1036_v38  ;;  %v1107_v61 = vsub.f32 %v3966_v45, %v1036_v38  ;;  %v1108_v63 = vsub.f32 %v3968_v46, %v1036_v38  ;;  %v5092_v16 = vld [vmem:[#allocation25_spill] sm:$0xff] }
 0x280   : > { %v3240_v14 = vpop.eup %3239  ;;  %3259 = vpow2.f32 %v1192_v17  ;;  %v1109_v28 = vsub.f32 %v3972_v48, %v1036_v38  ;;  %1671 = vmatmul.mubr.f32.gmra.mrb[38].mxu0 %v3234_v15  ;;  %v1314_v42 = vadd.f32 %v3232_v35, %v1313_v39  ;;  %v1317_v1 = vadd.f32 %v3236_v19, %v3234_v15  ;;  %v5087_v48 = vld [vmem:[#allocation20_spill] sm:$0xff]  ;;  %v5094_v38 = vld [vmem:[#allocation27_spill] sm:$0xff] }
 0x281   : > { %v3242_v22 = vpop.eup %3241  ;;  %3261 = vpow2.f32 %v1194_v59  ;;  %1815 = vmatprep.mubr.f32.mxu1 %v3240_v14  ;;  %v1198_v23 = vmul.f32 1.442695, %v1106_v41  ;;  %v1200_v2 = vmul.f32 1.442695, %v1107_v61  ;;  %v1202_v24 = vmul.f32 1.442695, %v1108_v63 }
 0x282   : > { %v3244_v26 = vpop.eup %3243  ;;  %3263 = vpow2.f32 %v1196_v37  ;;  %v1204_v44 = vmul.f32 1.442695, %v1109_v28  ;;  %1816 = vmatmul.mubr.f32.gmra.mrb[38].mxu1 %v3238_v60  ;;  %1315 = vadd.xlane.f32.xlu0 %v1314_v42  ;;  %v1041_v45 = vpop.permute.xlu1 %1040  ;;  %v1318_v46 = vadd.f32 %v3238_v60, %v1317_v1  ;;  %v5093_v59 = vld [vmem:[#allocation26_spill] sm:$0xff] }
 0x283   : > { %v3246_v3 = vpop.eup %3245  ;;  %3265 = vpow2.f32 %v1198_v23  ;;  %1675 = vmatprep.mubr.f32.mxu0 %v3244_v26  ;;  %v1110_v5 = vsub.f32 %v5087_v48, %v1041_v45  ;;  %v1111_v50 = vsub.f32 %v5088_v11, %v1041_v45  ;;  %v1112_v36 = vsub.f32 %v5089_v56, %v1041_v45 }
 0x284   : > { %v3248_v13 = vpop.eup %3247  ;;  %3267 = vpow2.f32 %v1200_v2  ;;  %v1113_v9 = vsub.f32 %v5090_v8, %v1041_v45  ;;  %1676 = vmatmul.mubr.f32.gmra.mrb[40].mxu0 %v3242_v22  ;;  %v1319_v10 = vadd.f32 %v3240_v14, %v1318_v46  ;;  %v1322_v29 = vadd.f32 %v3244_v26, %v3242_v22  ;;  %v5097_v46 = vld [vmem:[#allocation30_spill] sm:$0xff] }
 0x285   : > { %v3250_v30 = vpop.eup %3249  ;;  %3269 = vpow2.f32 %v1202_v24  ;;  %1820 = vmatprep.mubr.f32.mxu1 %v3248_v13  ;;  %v1206_v31 = vmul.f32 1.442695, %v1110_v5  ;;  %v1208_v12 = vmul.f32 1.442695, %v1111_v50  ;;  %v1210_v33 = vmul.f32 1.442695, %v1112_v36 }
 0x286   : > { %v3252_v20 = vpop.eup %3251  ;;  %3271 = vpow2.f32 %v1204_v44  ;;  %v1212_v34 = vmul.f32 1.442695, %v1113_v9  ;;  %1821 = vmatmul.mubr.f32.gmra.mrb[40].mxu1 %v3246_v3  ;;  %1320 = vadd.xlane.f32.xlu1 %v1319_v10  ;;  %v1046_v35 = vpop.permute.xlu0 %1045  ;;  %v1323_v62 = vadd.f32 %v3246_v3, %v1322_v29  ;;  %v5095_v24 = vld [vmem:[#allocation28_spill] sm:$0xff]  ;;  %v5096_v44 = vld [vmem:[#allocation29_spill] sm:$0xff]  ;;  %v5098_v5 = vld [vmem:[#allocation31_spill] sm:$0xff] }
 0x287   : > { %v3254_v6 = vpop.eup %3253  ;;  %3273 = vpow2.f32 %v1206_v31  ;;  %v1114_v15 = vsub.f32 %v5091_v58, %v1046_v35  ;;  %v1115_v17 = vsub.f32 %v5092_v16, %v1046_v35  ;;  %v1116_v19 = vsub.f32 %v5093_v59, %v1046_v35  ;;  %1680 = vmatprep.mubr.f32.mxu0 %v3252_v20 }
 0x288   : > { %v3256_v37 = vpop.eup %3255  ;;  %3275 = vpow2.f32 %v1208_v12  ;;  %v1117_v39 = vsub.f32 %v5094_v38, %v1046_v35  ;;  %1681 = vmatmul.mubr.f32.gmra.mrb[42].mxu0 %v3250_v30  ;;  %v1324_v60 = vadd.f32 %v3248_v13, %v1323_v62  ;;  %v1327_v41 = vadd.f32 %v3252_v20, %v3250_v30  ;;  %v5101_v62 = vld [vmem:[#allocation34_spill] sm:$0xff] }
 0x289   : > { %v3258_v61 = vpop.eup %3257  ;;  %3277 = vpow2.f32 %v1210_v33  ;;  %v1214_v63 = vmul.f32 1.442695, %v1114_v15  ;;  %v1216_v14 = vmul.f32 1.442695, %v1115_v17  ;;  %v1218_v28 = vmul.f32 1.442695, %v1116_v19  ;;  %1825 = vmatprep.mubr.f32.mxu1 %v3256_v37 }
 0x28a   : > { %v3260_v42 = vpop.eup %3259  ;;  %3279 = vpow2.f32 %v1212_v34  ;;  %v1220_v1 = vmul.f32 1.442695, %v1117_v39  ;;  %1826 = vmatmul.mubr.f32.gmra.mrb[42].mxu1 %v3254_v6  ;;  %1325 = vadd.xlane.f32.xlu0 %v1324_v60  ;;  %v1051_v22 = vpop.permute.xlu1 %1050  ;;  %v1328_v23 = vadd.f32 %v3254_v6, %v1327_v41  ;;  %v5099_v33 = vld [vmem:[#allocation32_spill] sm:$0xff]  ;;  %v5100_v34 = vld [vmem:[#allocation33_spill] sm:$0xff]  ;;  %v5102_v15 = vld [vmem:[#allocation35_spill] sm:$0xff] }
 0x28b   : > { %v3262_v2 = vpop.eup %3261  ;;  %3281 = vpow2.f32 %v1214_v63  ;;  %1685 = vmatprep.mubr.f32.mxu0 %v3260_v42  ;;  %v1118_v26 = vsub.f32 %v5095_v24, %v1051_v22  ;;  %v1119_v45 = vsub.f32 %v5096_v44, %v1051_v22  ;;  %v1120_v3 = vsub.f32 %v5097_v46, %v1051_v22 }
 0x28c   : > { %v3264_v48 = vpop.eup %3263  ;;  %3283 = vpow2.f32 %v1216_v14  ;;  %v1121_v11 = vsub.f32 %v5098_v5, %v1051_v22  ;;  %1686 = vmatmul.mubr.f32.gmra.mrb[44].mxu0 %v3258_v61  ;;  %v1329_v50 = vadd.f32 %v3256_v37, %v1328_v23  ;;  %v1332_v56 = vadd.f32 %v3260_v42, %v3258_v61  ;;  %v5105_v23 = vld [vmem:[#allocation38_spill] sm:$0xff] }
 0x28d   : > { %v3266_v36 = vpop.eup %3265  ;;  %3285 = vpow2.f32 %v1218_v28  ;;  %1830 = vmatprep.mubr.f32.mxu1 %v3264_v48  ;;  %v1222_v13 = vmul.f32 1.442695, %v1118_v26  ;;  %v1224_v8 = vmul.f32 1.442695, %v1119_v45  ;;  %v1226_v9 = vmul.f32 1.442695, %v1120_v3 }
 0x28e   : > { %v3268_v10 = vpop.eup %3267  ;;  %3287 = vpow2.f32 %v1220_v1  ;;  %v1228_v29 = vmul.f32 1.442695, %v1121_v11  ;;  %1831 = vmatmul.mubr.f32.gmra.mrb[44].mxu1 %v3262_v2  ;;  %1330 = vadd.xlane.f32.xlu1 %v1329_v50  ;;  %v1056_v30 = vpop.permute.xlu0 %1055  ;;  %v1333_v31 = vadd.f32 %v3262_v2, %v1332_v56  ;;  %v5103_v28 = vld [vmem:[#allocation36_spill] sm:$0xff]  ;;  %v5104_v1 = vld [vmem:[#allocation37_spill] sm:$0xff]  ;;  %v5106_v26 = vld [vmem:[#allocation39_spill] sm:$0xff] }
 0x28f   : > { %v3270_v12 = vpop.eup %3269  ;;  %3289 = vpow2.f32 %v1222_v13  ;;  %v1122_v20 = vsub.f32 %v5099_v33, %v1056_v30  ;;  %v1123_v35 = vsub.f32 %v5100_v34, %v1056_v30  ;;  %v1124_v6 = vsub.f32 %v5101_v62, %v1056_v30  ;;  %1690 = vmatprep.mubr.f32.mxu0 %v3268_v10 }
 0x290   : > { %v3272_v58 = vpop.eup %3271  ;;  %3291 = vpow2.f32 %v1224_v8  ;;  %v1125_v16 = vsub.f32 %v5102_v15, %v1056_v30  ;;  %1691 = vmatmul.mubr.f32.gmra.mrb[46].mxu0 %v3266_v36  ;;  %v1334_v17 = vadd.f32 %v3264_v48, %v1333_v31  ;;  %v1337_v59 = vadd.f32 %v3268_v10, %v3266_v36  ;;  %v5109_v31 = vld [vmem:[#allocation42_spill] sm:$0xff] }
 0x291   : > { %v3274_v19 = vpop.eup %3273  ;;  %3293 = vpow2.f32 %v1226_v9  ;;  %v1230_v37 = vmul.f32 1.442695, %v1122_v20  ;;  %v1232_v38 = vmul.f32 1.442695, %v1123_v35  ;;  %v1234_v39 = vmul.f32 1.442695, %v1124_v6  ;;  %1835 = vmatprep.mubr.f32.mxu1 %v3272_v58 }
 0x292   : > { %v3276_v60 = vpop.eup %3275  ;;  %3295 = vpow2.f32 %v1228_v29  ;;  %v1236_v41 = vmul.f32 1.442695, %v1125_v16  ;;  %1836 = vmatmul.mubr.f32.gmra.mrb[46].mxu1 %v3270_v12  ;;  %1335 = vadd.xlane.f32.xlu0 %v1334_v17  ;;  %v1061_v61 = vpop.permute.xlu1 %1060  ;;  %v1338_v63 = vadd.f32 %v3270_v12, %v1337_v59  ;;  %v5107_v9 = vld [vmem:[#allocation40_spill] sm:$0xff]  ;;  %v5108_v29 = vld [vmem:[#allocation41_spill] sm:$0xff]  ;;  %v5110_v20 = vld [vmem:[#allocation43_spill] sm:$0xff] }
 0x293   : > { %v3278_v14 = vpop.eup %3277  ;;  %3297 = vpow2.f32 %v1230_v37  ;;  %1695 = vmatprep.mubr.f32.mxu0 %v3276_v60  ;;  %v1126_v42 = vsub.f32 %v5103_v28, %v1061_v61  ;;  %v1127_v22 = vsub.f32 %v5104_v1, %v1061_v61  ;;  %v1128_v2 = vsub.f32 %v5105_v23, %v1061_v61 }
 0x294   : > { %v3280_v24 = vpop.eup %3279  ;;  %3299 = vpow2.f32 %v1232_v38  ;;  %v1129_v44 = vsub.f32 %v5106_v26, %v1061_v61  ;;  %1696 = vmatmul.mubr.f32.gmra.mrb[48].mxu0 %v3274_v19  ;;  %v1339_v45 = vadd.f32 %v3272_v58, %v1338_v63  ;;  %v1342_v46 = vadd.f32 %v3276_v60, %v3274_v19  ;;  %v5113_v63 = vld [vmem:[#allocation46_spill] sm:$0xff] }
 0x295   : > { %v3282_v3 = vpop.eup %3281  ;;  %3301 = vpow2.f32 %v1234_v39  ;;  %1840 = vmatprep.mubr.f32.mxu1 %v3280_v24  ;;  %v1238_v48 = vmul.f32 1.442695, %v1126_v42  ;;  %v1240_v5 = vmul.f32 1.442695, %v1127_v22  ;;  %v1242_v11 = vmul.f32 1.442695, %v1128_v2 }
 0x296   : > { %v3284_v50 = vpop.eup %3283  ;;  %3303 = vpow2.f32 %v1236_v41  ;;  %v1244_v56 = vmul.f32 1.442695, %v1129_v44  ;;  %1841 = vmatmul.mubr.f32.gmra.mrb[48].mxu1 %v3278_v14  ;;  %1340 = vadd.xlane.f32.xlu1 %v1339_v45  ;;  %v1066_v36 = vpop.permute.xlu0 %1065  ;;  %v1343_v13 = vadd.f32 %v3278_v14, %v1342_v46  ;;  %v5111_v39 = vld [vmem:[#allocation44_spill] sm:$0xff]  ;;  %v5112_v41 = vld [vmem:[#allocation45_spill] sm:$0xff]  ;;  %v5114_v42 = vld [vmem:[#allocation47_spill] sm:$0xff] }
 0x297   : > { %v3286_v8 = vpop.eup %3285  ;;  %3305 = vpow2.f32 %v1238_v48  ;;  %v1130_v10 = vsub.f32 %v5107_v9, %v1066_v36  ;;  %v1131_v30 = vsub.f32 %v5108_v29, %v1066_v36  ;;  %v1132_v12 = vsub.f32 %v5109_v31, %v1066_v36  ;;  %1700 = vmatprep.mubr.f32.mxu0 %v3284_v50 }
 0x298   : > { %v3288_v33 = vpop.eup %3287  ;;  %3307 = vpow2.f32 %v1240_v5  ;;  %v1133_v34 = vsub.f32 %v5110_v20, %v1066_v36  ;;  %1701 = vmatmul.mubr.f32.gmra.mrb[50].mxu0 %v3282_v3  ;;  %v1344_v35 = vadd.f32 %v3280_v24, %v1343_v13  ;;  %v1347_v62 = vadd.f32 %v3284_v50, %v3282_v3  ;;  %v5117_v13 = vld [vmem:[#allocation50_spill] sm:$0xff] }
 0x299   : > { %v3290_v6 = vpop.eup %3289  ;;  %3309 = vpow2.f32 %v1242_v11  ;;  %v1246_v58 = vmul.f32 1.442695, %v1130_v10  ;;  %v1248_v15 = vmul.f32 1.442695, %v1131_v30  ;;  %v1250_v16 = vmul.f32 1.442695, %v1132_v12  ;;  %1845 = vmatprep.mubr.f32.mxu1 %v3288_v33 }
 0x29a   : > { %v3292_v17 = vpop.eup %3291  ;;  %3311 = vpow2.f32 %v1244_v56  ;;  %v1252_v59 = vmul.f32 1.442695, %v1133_v34  ;;  %1846 = vmatmul.mubr.f32.gmra.mrb[50].mxu1 %v3286_v8  ;;  %1345 = vadd.xlane.f32.xlu0 %v1344_v35  ;;  %v1071_v19 = vpop.permute.xlu1 %1070  ;;  %v1348_v37 = vadd.f32 %v3286_v8, %v1347_v62  ;;  %v5115_v11 = vld [vmem:[#allocation48_spill] sm:$0xff]  ;;  %v5116_v56 = vld [vmem:[#allocation49_spill] sm:$0xff]  ;;  %v5118_v10 = vld [vmem:[#allocation51_spill] sm:$0xff] }
 0x29b   : > { %v3294_v38 = vpop.eup %3293  ;;  %3313 = vpow2.f32 %v1246_v58  ;;  %1705 = vmatprep.mubr.f32.mxu0 %v3292_v17  ;;  %v1134_v60 = vsub.f32 %v5111_v39, %v1071_v19  ;;  %v1135_v61 = vsub.f32 %v5112_v41, %v1071_v19  ;;  %v1136_v14 = vsub.f32 %v5113_v63, %v1071_v19 }
 0x29c   : > { %v3296_v28 = vpop.eup %3295  ;;  %3315 = vpow2.f32 %v1248_v15  ;;  %v1137_v1 = vsub.f32 %v5114_v42, %v1071_v19  ;;  %1706 = vmatmul.mubr.f32.gmra.mrb[52].mxu0 %v3290_v6  ;;  %v1349_v22 = vadd.f32 %v3288_v33, %v1348_v37  ;;  %v1352_v23 = vadd.f32 %v3292_v17, %v3290_v6 }
 0x29d   : > { %v3298_v2 = vpop.eup %3297  ;;  %3317 = vpow2.f32 %v1250_v16  ;;  %1850 = vmatprep.mubr.f32.mxu1 %v3296_v28  ;;  %v1254_v24 = vmul.f32 1.442695, %v1134_v60  ;;  %v1256_v26 = vmul.f32 1.442695, %v1135_v61  ;;  %v1258_v44 = vmul.f32 1.442695, %v1136_v14 }
 0x29e   : > { %v3300_v45 = vpop.eup %3299  ;;  %3319 = vpow2.f32 %v1252_v59  ;;  %v1260_v46 = vmul.f32 1.442695, %v1137_v1  ;;  %1851 = vmatmul.mubr.f32.gmra.mrb[52].mxu1 %v3294_v38  ;;  %1350 = vadd.xlane.f32.xlu1 %v1349_v22  ;;  %v1076_v3 = vpop.permute.xlu0 %1075  ;;  %v1353_v48 = vadd.f32 %v3294_v38, %v1352_v23 }
 0x29f   : > { %v3302_v5 = vpop.eup %3301  ;;  %3321 = vpow2.f32 %v1254_v24  ;;  %v1138_v50 = vsub.f32 %v5115_v11, %v1076_v3  ;;  %v1139_v36 = vsub.f32 %v5116_v56, %v1076_v3  ;;  %v1140_v8 = vsub.f32 %v5117_v13, %v1076_v3  ;;  %1710 = vmatprep.mubr.f32.mxu0 %v3300_v45 }
 0x2a0   : > { %v3304_v9 = vpop.eup %3303  ;;  %3323 = vpow2.f32 %v1256_v26  ;;  %v1141_v29 = vsub.f32 %v5118_v10, %v1076_v3  ;;  %1711 = vmatmul.mubr.f32.gmra.mrb[54].mxu0 %v3298_v2  ;;  %v1354_v30 = vadd.f32 %v3296_v28, %v1353_v48  ;;  %v1357_v62 = vadd.f32 %v3300_v45, %v3298_v2 }
 0x2a1   : > { %v3306_v31 = vpop.eup %3305  ;;  %3325 = vpow2.f32 %v1258_v44  ;;  %v1262_v12 = vmul.f32 1.442695, %v1138_v50  ;;  %v1264_v33 = vmul.f32 1.442695, %v1139_v36  ;;  %v1266_v20 = vmul.f32 1.442695, %v1140_v8  ;;  %1855 = vmatprep.mubr.f32.mxu1 %v3304_v9  ;;  %v4405_v8 = vpop.permute.xlu1 %1438 }
 0x2a2   : > { %v3308_v34 = vpop.eup %3307  ;;  %3327 = vpow2.f32 %v1260_v46  ;;  %v1268_v35 = vmul.f32 1.442695, %v1141_v29  ;;  %1856 = vmatmul.mubr.f32.gmra.mrb[54].mxu1 %v3302_v5  ;;  %1355 = vadd.xlane.f32.xlu0 %v1354_v30  ;;  %v1358_v16 = vadd.f32 %v3302_v5, %v1357_v62  ;;  %v5119_v5 = vsub.f32 %v4250_v32, %v4258_v43 }
 0x2a3   : > { %v3310_v6 = vpop.eup %3309  ;;  %3329 = vpow2.f32 %v1262_v12  ;;  %1715 = vmatprep.mubr.f32.mxu0 %v3308_v34  ;;  %v1362_v58 = vadd.f32 %v3308_v34, %v3306_v31  ;;  %v5120_v50 = vsub.f32 %v4260_v7, %v4272_v0  ;;  %v1270_v34 = vld [vmem:[#allocation3] sm:$0xff] }
 0x2a4   : > { %v3312_v15 = vpop.eup %3311  ;;  %3331 = vpow2.f32 %v1264_v33  ;;  %1716 = vmatmul.mubr.f32.gmra.mrb[56].mxu0 %v3306_v31  ;;  %v1359_v37 = vadd.f32 %v3304_v9, %v1358_v16  ;;  %v994_v11 = vmul.f32 1.442695, %v5119_v5  ;;  %v4407_v9 = vpop.permute.xlu0 %1433 }
 0x2a5   : > { %v3314_v17 = vpop.eup %3313  ;;  %3333 = vpow2.f32 %v1266_v20  ;;  %1860 = vmatprep.mubr.f32.mxu1 %v3312_v15  ;;  %v1363_v59 = vadd.f32 %v3310_v6, %v1362_v58  ;;  %v996_v56 = vmul.f32 1.442695, %v5120_v50  ;;  %v4409_v32 = vpop.permute.xlu1 %1443  ;;  %v1271_v58 = vld [vmem:[#allocation3 + $0x8] sm:$0xff]  ;;  %v1280_v50 = vld [vmem:[#allocation3 + $0x50] sm:$0xff] }
 0x2a6   : > { %v3316_v19 = vpop.eup %3315  ;;  %3335 = vpow2.f32 %v1268_v35  ;;  %1861 = vmatmul.mubr.f32.gmra.mrb[56].mxu1 %v3310_v6  ;;  %1360 = vadd.xlane.f32.xlu1 %v1359_v37  ;;  %v1286_v35 = vmul.f32 %v4286_v54, %v1270_v34  ;;  %v1287_v16 = vmul.f32 %v4274_v49, %v1271_v58 }
 0x2a7   : > { %v3318_v38 = vpop.eup %3317  ;;  %1720 = vmatprep.mubr.f32.mxu0 %v3316_v19  ;;  %v1364_v39 = vadd.f32 %v3312_v15, %v1363_v59  ;;  %v1367_v60 = vadd.f32 %v3316_v19, %v3314_v17  ;;  %3337 = vpow2.f32 %v994_v11  ;;  %v1272_v59 = vld [vmem:[#allocation3 + $0x10] sm:$0xff] }
 0x2a8   : > { %v3320_v41 = vpop.eup %3319  ;;  %1721 = vmatmul.mubr.f32.gmra.mrb[58].mxu0 %v3314_v17  ;;  %3339 = vpow2.f32 %v996_v56  ;;  %v4411_v43 = vpop.permute.xlu0 %1448  ;;  %v1288_v37 = vmul.f32 %v4288_v52, %v1272_v59  ;;  %v1283_v59 = vld [vmem:[#allocation3 + $0x68] sm:$0xff] }
 0x2a9   : > { %v3322_v61 = vpop.eup %3321  ;;  %1865 = vmatprep.mubr.f32.mxu1 %v3320_v41  ;;  %1365 = vadd.xlane.f32.xlu0 %v1364_v39  ;;  %v1368_v63 = vadd.f32 %v3318_v38, %v1367_v60  ;;  %v4413_v7 = vpop.permute.xlu1 %1453  ;;  %v1273_v39 = vld [vmem:[#allocation3 + $0x18] sm:$0xff] }
 0x2aa   : > { %v3324_v14 = vpop.eup %3323  ;;  %1866 = vmatmul.mubr.f32.gmra.mrb[58].mxu1 %v3318_v38  ;;  %v1289_v54 = vmul.f32 %v4295_v53, %v1273_v39 }
 0x2ab   : > { %v3326_v28 = vpop.eup %3325  ;;  %1725 = vmatprep.mubr.f32.mxu0 %v3324_v14  ;;  %v1369_v42 = vadd.f32 %v3320_v41, %v1368_v63  ;;  %v1372_v1 = vadd.f32 %v3324_v14, %v3322_v61 }
 0x2ac   : > { %v3328_v22 = vpop.eup %3327  ;;  %1726 = vmatmul.mubr.f32.gmra.mrb[60].mxu0 %v3322_v61  ;;  %v4415_v0 = vpop.permute.xlu0 %1458  ;;  %v1274_v61 = vld [vmem:[#allocation3 + $0x20] sm:$0xff] }
 0x2ad   : > { %v3330_v23 = vpop.eup %3329  ;;  %1870 = vmatprep.mubr.f32.mxu1 %v3328_v22  ;;  %1370 = vadd.xlane.f32.xlu1 %v1369_v42  ;;  %v1373_v2 = vadd.f32 %v3326_v28, %v1372_v1  ;;  %v4417_v10 = vpop.permute.xlu1 %1463  ;;  %v1290_v49 = vmul.f32 %v4297_v40, %v1274_v61 }
 0x2ae   : > { %v3332_v24 = vpop.eup %3331  ;;  %1871 = vmatmul.mubr.f32.gmra.mrb[60].mxu1 %v3326_v28  ;;  %v1275_v28 = vld [vmem:[#allocation3 + $0x28] sm:$0xff] }
 0x2af   : > { %v3334_v26 = vpop.eup %3333  ;;  %1730 = vmatprep.mubr.f32.mxu0 %v3332_v24  ;;  %v1374_v44 = vadd.f32 %v3328_v22, %v1373_v2  ;;  %v1377_v45 = vadd.f32 %v3332_v24, %v3330_v23  ;;  %v1291_v52 = vmul.f32 %v4302_v55, %v1275_v28  ;;  %v1276_v22 = vld [vmem:[#allocation3 + $0x30] sm:$0xff]  ;;  %v1277_v24 = vld [vmem:[#allocation3 + $0x38] sm:$0xff] }
 0x2b0   : > { %v3336_v46 = vpop.eup %3335  ;;  %1731 = vmatmul.mubr.f32.gmra.mrb[62].mxu0 %v3330_v23  ;;  %v4419_v29 = vpop.permute.xlu0 %1468  ;;  %v1292_v53 = vmul.f32 %v4304_v47, %v1276_v22  ;;  %v1293_v40 = vmul.f32 %v4308_v25, %v1277_v24  ;;  %v1296_v25 = vmul.f32 %v4316_v21, %v1280_v50  ;;  %v1299_v21 = vmul.f32 %v4326_v27, %v1283_v59 }
 0x2b1   : > { %1875 = vmatprep.mubr.f32.mxu1 %v3336_v46  ;;  %1375 = vadd.xlane.f32.xlu0 %v1374_v44  ;;  %v1378_v3 = vadd.f32 %v3334_v26, %v1377_v45  ;;  %v4399_v36 = vpop.eup %3337  ;;  %v4421_v30 = vpop.permute.xlu1 %1473  ;;  %v1278_v45 = vld [vmem:[#allocation3 + $0x40] sm:$0xff] }
 0x2b2   : > { %1876 = vmatmul.mubr.f32.gmra.mrb[62].mxu1 %v3334_v26  ;;  %v4401_v13 = vpop.eup %3339  ;;  %v1294_v55 = vmul.f32 %v4310_v51, %v1278_v45  ;;  %v1282_v51 = vld [vmem:[#allocation3 + $0x60] sm:$0xff] }
 0x2b3   : > { %v1379_v48 = vadd.f32 %v3336_v46, %v1378_v3 }
 0x2b4   : > { %v4423_v31 = vpop.permute.xlu0 %1478 }
 0x2b5   : > { %1380 = vadd.xlane.f32.xlu1 %v1379_v48  ;;  %v4425_v12 = vpop.permute.xlu1 %1483  ;;  %v1279_v48 = vld [vmem:[#allocation3 + $0x48] sm:$0xff] }
 0x2b6   : > { %v1295_v47 = vmul.f32 %v4314_v18, %v1279_v48 }
 0x2b8   : > { %v4427_v33 = vpop.permute.xlu0 %1488 }
 0x2b9   : > { %v4429_v20 = vpop.permute.xlu1 %1493 }
 0x2bc   : > { %v4432_v62 = vpop.permute.xlu0 %1498 }
 0x2c6   : > { %1503 = vperm.xlu1 %3180, %v4399_v36  }
 0x2c7   : > { %1508 = vperm.xlu0 %3179, %v4401_v13  }
 0x307   : > { %v1306_v6 = vpop.xlane.xlu1 %1305 }
 0x308   : > { %v1382_v15 = vadd.f32 %v1306_v6, %v1286_v35  ;;  %v1281_v6 = vld [vmem:[#allocation3 + $0x58] sm:$0xff] }
 0x309   : > { %v1297_v58 = vmul.f32 %v4320_v57, %v1281_v6 }
 0x30a   : > { %1399 = vst.msk [vmem:[#allocation3] sm:$0xff] %vm1398_vm3, %v1382_v15 }
 0x30b   : > { %v1311_v17 = vpop.xlane.xlu0 %1310 }
 0x30c   : > { %v1383_v19 = vadd.f32 %v1311_v17, %v1287_v16  ;;  %v1298_v16 = vmul.f32 %v4322_v4, %v1282_v51 }
 0x30e   : > { %1400 = vst.msk [vmem:[#allocation3 + $0x8] sm:$0xff] %vm1398_vm3, %v1383_v19 }
 0x30f   : > { %v1316_v38 = vpop.xlane.xlu0 %1315 }
 0x310   : > { %v1384_v60 = vadd.f32 %v1316_v38, %v1288_v37  ;;  %v1284_v38 = vld [vmem:[#allocation3 + $0x70] sm:$0xff] }
 0x311   : > { %v1300_v57 = vmul.f32 %v4399_v36, %v1284_v38  ;;  %v1419_v38 = vld [vmem:[#allocation4 + $0x20] sm:$0xff] }
 0x312   : > { %1401 = vst.msk [vmem:[#allocation3 + $0x10] sm:$0xff] %vm1398_vm3, %v1384_v60 }
 0x313   : > { %v1321_v41 = vpop.xlane.xlu1 %1320 }
 0x314   : > { %v1385_v63 = vadd.f32 %v1321_v41, %v1289_v54  ;;  %v1285_v54 = vld [vmem:[#allocation3 + $0x78] sm:$0xff] }
 0x315   : > { %v1301_v41 = vmul.f32 %v4401_v13, %v1285_v54 }
 0x316   : > { %1402 = vst.msk [vmem:[#allocation3 + $0x18] sm:$0xff] %vm1398_vm3, %v1385_v63 }
 0x317   : > { %v1326_v14 = vpop.xlane.xlu0 %1325 }
 0x318   : > { %v1386_v42 = vadd.f32 %v1326_v14, %v1290_v49 }
 0x31a   : > { %1403 = vst.msk [vmem:[#allocation3 + $0x20] sm:$0xff] %vm1398_vm3, %v1386_v42  ;;  %v1415_v42 = vld [vmem:[#allocation4] sm:$0xff] }
 0x31b   : > { %v1331_v1 = vpop.xlane.xlu1 %1330 }
 0x31c   : > { %v1387_v23 = vadd.f32 %v1331_v1, %v1291_v52 }
 0x31e   : > { %1404 = vst.msk [vmem:[#allocation3 + $0x28] sm:$0xff] %vm1398_vm3, %v1387_v23  ;;  %v1511_v23 = vmul.f32 %v4407_v9, %v1415_v42 }
 0x31f   : > { %v1336_v2 = vpop.xlane.xlu0 %1335 }
 0x320   : > { %v1388_v26 = vadd.f32 %v1336_v2, %v1292_v53 }
 0x322   : > { %1405 = vst.msk [vmem:[#allocation3 + $0x30] sm:$0xff] %vm1398_vm3, %v1388_v26  ;;  %v1416_v26 = vld [vmem:[#allocation4 + $0x8] sm:$0xff] }
 0x323   : > { %v1341_v44 = vpop.xlane.xlu1 %1340 }
 0x324   : > { %v1389_v46 = vadd.f32 %v1341_v44, %v1293_v40 }
 0x326   : > { %1406 = vst.msk [vmem:[#allocation3 + $0x38] sm:$0xff] %vm1398_vm3, %v1389_v46 }
 0x327   : > { %v1346_v3 = vpop.xlane.xlu0 %1345 }
 0x328   : > { %v1390_v5 = vadd.f32 %v1346_v3, %v1294_v55  ;;  %v1512_v55 = vmul.f32 %v4405_v8, %v1416_v26 }
 0x32a   : > { %1407 = vst.msk [vmem:[#allocation3 + $0x40] sm:$0xff] %vm1398_vm3, %v1390_v5 }
 0x32b   : > { %v1351_v11 = vpop.xlane.xlu1 %1350 }
 0x32c   : > { %v1391_v56 = vadd.f32 %v1351_v11, %v1295_v47  ;;  %v1417_v47 = vld [vmem:[#allocation4 + $0x10] sm:$0xff] }
 0x32e   : > { %1408 = vst.msk [vmem:[#allocation3 + $0x48] sm:$0xff] %vm1398_vm3, %v1391_v56 }
 0x32f   : > { %v1356_v34 = vpop.xlane.xlu0 %1355 }
 0x330   : > { %v1392_v35 = vadd.f32 %v1356_v34, %v1296_v25  ;;  %v1513_v34 = vmul.f32 %v4409_v32, %v1417_v47 }
 0x332   : > { %1409 = vst.msk [vmem:[#allocation3 + $0x50] sm:$0xff] %vm1398_vm3, %v1392_v35 }
 0x333   : > { %v1361_v15 = vpop.xlane.xlu1 %1360 }
 0x334   : > { %v1393_v17 = vadd.f32 %v1361_v15, %v1297_v58  ;;  %v1418_v58 = vld [vmem:[#allocation4 + $0x18] sm:$0xff] }
 0x335   : > { %v1514_v59 = vmul.f32 %v4411_v43, %v1418_v58 }
 0x336   : > { %v1366_v18 = vpop.xlane.xlu0 %1365  ;;  %1410 = vst.msk [vmem:[#allocation3 + $0x58] sm:$0xff] %vm1398_vm3, %v1393_v17 }
 0x337   : > { %v1394_v19 = vadd.f32 %v1366_v18, %v1298_v16 }
 0x339   : > { %1411 = vst.msk [vmem:[#allocation3 + $0x60] sm:$0xff] %vm1398_vm3, %v1394_v19 }
 0x33a   : > { %v1371_v37 = vpop.xlane.xlu1 %1370 }
 0x33b   : > { %v1395_v39 = vadd.f32 %v1371_v37, %v1299_v21 }
 0x33d   : > { %1412 = vst.msk [vmem:[#allocation3 + $0x68] sm:$0xff] %vm1398_vm3, %v1395_v39 }
 0x33e   : > { %v1376_v60 = vpop.xlane.xlu0 %1375 }
 0x33f   : > { %v1396_v4 = vadd.f32 %v1376_v60, %v1300_v57 }
 0x341   : > { %1413 = vst.msk [vmem:[#allocation3 + $0x70] sm:$0xff] %vm1398_vm3, %v1396_v4  ;;  %v1515_v4 = vmul.f32 %v4413_v7, %v1419_v38 }
 0x342   : > { %v1381_v61 = vpop.xlane.xlu1 %1380 }
 0x343   : > { %v1397_v63 = vadd.f32 %v1381_v61, %v1301_v41 }
 0x345   : > { %1414 = vst.msk [vmem:[#allocation3 + $0x78] sm:$0xff] %vm1398_vm3, %v1397_v63 }
 0x347   : > { %v2859_v49 = vpop.f32.mrb[32].mxu0 }
 0x348   : > { %v2860_v27 = vpop.f32.mrb[33].mxu0 }
 0x349   : > { %v2939_v14 = vpop.f32.mrb[32].mxu1  ;;  %v2861_v28 = vadd.f32 %v2860_v27, %v2859_v49  ;;  %v1420_v49 = vld [vmem:[#allocation4 + $0x28] sm:$0xff] }
 0x34a   : > { %v2940_v52 = vpop.f32.mrb[33].mxu1 }
 0x34b   : > { %v2941_v1 = vadd.f32 %v2940_v52, %v2939_v14  ;;  %v2862_v22 = vpop.f32.mrb[34].mxu0  ;;  %v1516_v52 = vmul.f32 %v4415_v0, %v1420_v49 }
 0x34c   : > { %v2863_v36 = vpop.f32.mrb[35].mxu0 }
 0x34d   : > { %v1803_v53 = vadd.f32 %v2941_v1, %v2861_v28  ;;  %v2942_v2 = vpop.f32.mrb[34].mxu1  ;;  %v2864_v24 = vadd.f32 %v2863_v36, %v2862_v22 }
 0x34e   : > { %v2943_v13 = vpop.f32.mrb[35].mxu1 }
 0x34f   : > { %v1881_v40 = vadd.f32 %v1803_v53, %v1511_v23  ;;  %v2944_v44 = vadd.f32 %v2943_v13, %v2942_v2  ;;  %v2865_v45 = vpop.f32.mrb[36].mxu0  ;;  %v1421_v23 = vld [vmem:[#allocation4 + $0x30] sm:$0xff] }
 0x350   : > { %v2866_v46 = vpop.f32.mrb[37].mxu0  ;;  %v1517_v13 = vmul.f32 %v4417_v10, %v1421_v23  ;;  %v1427_v23 = vld [vmem:[#allocation4 + $0x60] sm:$0xff] }
 0x351   : > { %1898 = vst.msk [vmem:[#allocation4] sm:$0xff] %vm1897_vm4, %v1881_v40  ;;  %v1808_v3 = vadd.f32 %v2944_v44, %v2864_v24  ;;  %v2945_v48 = vpop.f32.mrb[36].mxu1  ;;  %v2867_v5 = vadd.f32 %v2866_v46, %v2865_v45  ;;  %v1422_v46 = vld [vmem:[#allocation4 + $0x38] sm:$0xff] }
 0x352   : > { %v2946_v11 = vpop.f32.mrb[37].mxu1  ;;  %v1518_v47 = vmul.f32 %v4419_v29, %v1422_v46 }
 0x353   : > { %v1882_v9 = vadd.f32 %v1808_v3, %v1512_v55  ;;  %v2947_v50 = vadd.f32 %v2946_v11, %v2945_v48  ;;  %v2868_v56 = vpop.f32.mrb[38].mxu0 }
 0x354   : > { %v2869_v25 = vpop.f32.mrb[39].mxu0 }
 0x355   : > { %1899 = vst.msk [vmem:[#allocation4 + $0x8] sm:$0xff] %vm1897_vm4, %v1882_v9  ;;  %v1813_v35 = vadd.f32 %v2947_v50, %v2867_v5  ;;  %v2948_v6 = vpop.f32.mrb[38].mxu1  ;;  %v2870_v51 = vadd.f32 %v2869_v25, %v2868_v56  ;;  %v1423_v56 = vld [vmem:[#allocation4 + $0x40] sm:$0xff] }
 0x356   : > { %v2949_v8 = vpop.f32.mrb[39].mxu1 }
 0x357   : > { %v1883_v15 = vadd.f32 %v1813_v35, %v1513_v34  ;;  %v2950_v16 = vadd.f32 %v2949_v8, %v2948_v6  ;;  %v2871_v17 = vpop.f32.mrb[40].mxu0 }
 0x358   : > { %v2872_v18 = vpop.f32.mrb[41].mxu0 }
 0x359   : > { %1900 = vst.msk [vmem:[#allocation4 + $0x10] sm:$0xff] %vm1897_vm4, %v1883_v15  ;;  %v1818_v19 = vadd.f32 %v2950_v16, %v2870_v51  ;;  %v2951_v21 = vpop.f32.mrb[40].mxu1  ;;  %v2873_v37 = vadd.f32 %v2872_v18, %v2871_v17  ;;  %v1519_v51 = vmul.f32 %v4421_v30, %v1423_v56  ;;  %v1424_v16 = vld [vmem:[#allocation4 + $0x48] sm:$0xff] }
 0x35a   : > { %v2952_v32 = vpop.f32.mrb[41].mxu1 }
 0x35b   : > { %v1884_v39 = vadd.f32 %v1818_v19, %v1514_v59  ;;  %v2953_v57 = vadd.f32 %v2952_v32, %v2951_v21  ;;  %v2874_v60 = vpop.f32.mrb[42].mxu0  ;;  %v1520_v21 = vmul.f32 %v4423_v31, %v1424_v16 }
 0x35c   : > { %v2875_v54 = vpop.f32.mrb[43].mxu0 }
 0x35d   : > { %1901 = vst.msk [vmem:[#allocation4 + $0x18] sm:$0xff] %vm1897_vm4, %v1884_v39  ;;  %v1823_v41 = vadd.f32 %v2953_v57, %v2873_v37  ;;  %v2954_v61 = vpop.f32.mrb[42].mxu1  ;;  %v2876_v63 = vadd.f32 %v2875_v54, %v2874_v60  ;;  %v1425_v39 = vld [vmem:[#allocation4 + $0x50] sm:$0xff] }
 0x35e   : > { %v2955_v43 = vpop.f32.mrb[43].mxu1 }
 0x35f   : > { %v1885_v27 = vadd.f32 %v1823_v41, %v1515_v4  ;;  %v2956_v14 = vadd.f32 %v2955_v43, %v2954_v61  ;;  %v2877_v28 = vpop.f32.mrb[44].mxu0  ;;  %v1521_v41 = vmul.f32 %v4425_v12, %v1425_v39  ;;  %v1426_v43 = vld [vmem:[#allocation4 + $0x58] sm:$0xff]  ;;  %v1939_v39 = vld [vmem:[#allocation3 + $0x28] sm:$0xff] (!%p2820_p8) }
 0x360   : > { %v2878_v42 = vpop.f32.mrb[45].mxu0 }
 0x361   : > { %1902 = vst.msk [vmem:[#allocation4 + $0x20] sm:$0xff] %vm1897_vm4, %v1885_v27  ;;  %v1828_v1 = vadd.f32 %v2956_v14, %v2876_v63  ;;  %v2957_v22 = vpop.f32.mrb[44].mxu1  ;;  %v2879_v36 = vadd.f32 %v2878_v42, %v2877_v28 }
 0x362   : > { %v2958_v7 = vpop.f32.mrb[45].mxu1 }
 0x363   : > { %v1886_v53 = vadd.f32 %v1828_v1, %v1516_v52  ;;  %v2959_v2 = vadd.f32 %v2958_v7, %v2957_v22  ;;  %v2880_v24 = vpop.f32.mrb[46].mxu0  ;;  %v1522_v52 = vmul.f32 %v4427_v33, %v1426_v43 }
 0x364   : > { %v2881_v26 = vpop.f32.mrb[47].mxu0 }
 0x365   : > { %1903 = vst.msk [vmem:[#allocation4 + $0x28] sm:$0xff] %vm1897_vm4, %v1886_v53  ;;  %v1833_v40 = vadd.f32 %v2959_v2, %v2879_v36  ;;  %v2960_v44 = vpop.f32.mrb[46].mxu1  ;;  %v2882_v45 = vadd.f32 %v2881_v26, %v2880_v24  ;;  %v1523_v26 = vmul.f32 %v4429_v20, %v1427_v23  ;;  %v1504_v20 = vpop.permute.xlu1 %1503  ;;  %v1946_v23 = vld [vmem:[#allocation3 + $0x60] sm:$0xff] (!%p2820_p8) }
 0x366   : > { %v2961_v0 = vpop.f32.mrb[47].mxu1 }
 0x367   : > { %v1887_v55 = vadd.f32 %v1833_v40, %v1517_v13  ;;  %v2962_v3 = vadd.f32 %v2961_v0, %v2960_v44  ;;  %v2883_v48 = vpop.f32.mrb[48].mxu0 }
 0x368   : > { %v2884_v5 = vpop.f32.mrb[49].mxu0 }
 0x369   : > { %1904 = vst.msk [vmem:[#allocation4 + $0x30] sm:$0xff] %vm1897_vm4, %v1887_v55  ;;  %v1838_v11 = vadd.f32 %v2962_v3, %v2882_v45  ;;  %v2963_v9 = vpop.f32.mrb[48].mxu1  ;;  %v2885_v50 = vadd.f32 %v2884_v5, %v2883_v48  ;;  %v1428_v45 = vld [vmem:[#allocation4 + $0x68] sm:$0xff] }
 0x36a   : > { %v2964_v10 = vpop.f32.mrb[49].mxu1  ;;  %v1524_v48 = vmul.f32 %v4432_v62, %v1428_v45  ;;  %v1509_v62 = vpop.permute.xlu0 %1508 }
 0x36b   : > { %v1888_v25 = vadd.f32 %v1838_v11, %v1518_v47  ;;  %v2965_v34 = vadd.f32 %v2964_v10, %v2963_v9  ;;  %v2886_v35 = vpop.f32.mrb[50].mxu0  ;;  %v1429_v9 = vld [vmem:[#allocation4 + $0x70] sm:$0xff] }
 0x36c   : > { %v2887_v6 = vpop.f32.mrb[51].mxu0 }
 0x36d   : > { %1905 = vst.msk [vmem:[#allocation4 + $0x38] sm:$0xff] %vm1897_vm4, %v1888_v25  ;;  %v1843_v58 = vadd.f32 %v2965_v34, %v2885_v50  ;;  %v2966_v8 = vpop.f32.mrb[50].mxu1  ;;  %v2888_v15 = vadd.f32 %v2887_v6, %v2886_v35  ;;  %v1525_v35 = vmul.f32 %v1504_v20, %v1429_v9 }
 0x36e   : > { %v2967_v29 = vpop.f32.mrb[51].mxu1 }
 0x36f   : > { %v1889_v17 = vadd.f32 %v1843_v58, %v1519_v51  ;;  %v2968_v18 = vadd.f32 %v2967_v29, %v2966_v8  ;;  %v2889_v59 = vpop.f32.mrb[52].mxu0  ;;  %v1430_v8 = vld [vmem:[#allocation4 + $0x78] sm:$0xff] }
 0x370   : > { %v2890_v19 = vpop.f32.mrb[53].mxu0 }
 0x371   : > { %1906 = vst.msk [vmem:[#allocation4 + $0x40] sm:$0xff] %vm1897_vm4, %v1889_v17  ;;  %v1848_v37 = vadd.f32 %v2968_v18, %v2888_v15  ;;  %v2969_v38 = vpop.f32.mrb[52].mxu1  ;;  %v2891_v32 = vadd.f32 %v2890_v19, %v2889_v59  ;;  %v1526_v17 = vmul.f32 %v1509_v62, %v1430_v8  ;;  %v1936_v19 = vld [vmem:[#allocation3 + $0x10] sm:$0xff] (!%p2820_p8) }
 0x372   : > { %v2970_v30 = vpop.f32.mrb[53].mxu1  ;;  %3343 = vrcp.f32 (!%p2820_p8), %v1936_v19 }
 0x373   : > { %v1890_v57 = vadd.f32 %v1848_v37, %v1520_v21  ;;  %v2971_v60 = vadd.f32 %v2970_v30, %v2969_v38  ;;  %v2892_v54 = vpop.f32.mrb[54].mxu0  ;;  %v1934_v21 = vld [vmem:[#allocation3] sm:$0xff] (!%p2820_p8)  ;;  %v1937_v37 = vld [vmem:[#allocation3 + $0x18] sm:$0xff] (!%p2820_p8)  ;;  %v3539_v38 = vmov (!%p2820_p8), 0  }
 0x374   : > { %v2893_v4 = vpop.f32.mrb[55].mxu0  ;;  %3342 = vset.pattern.permute.xlu1 (!%p2820_p8), %v3539_v38  ;;  %3341 = vset.pattern.permute.xlu0 (!%p2820_p8), %v3539_v38  ;;  %3345 = vrcp.f32 (!%p2820_p8), %v1934_v21  ;;  %v1938_v30 = vld [vmem:[#allocation3 + $0x20] sm:$0xff] (!%p2820_p8) }
 0x375   : > { %1907 = vst.msk [vmem:[#allocation4 + $0x48] sm:$0xff] %vm1897_vm4, %v1890_v57  ;;  %v1853_v61 = vadd.f32 %v2971_v60, %v2891_v32  ;;  %v2972_v63 = vpop.f32.mrb[54].mxu1  ;;  %v2894_v49 = vadd.f32 %v2893_v4, %v2892_v54  ;;  %v1935_v32 = vld [vmem:[#allocation3 + $0x8] sm:$0xff] (!%p2820_p8)  ;;  %3347 = vrcp.f32 (!%p2820_p8), %v1937_v37  ;;  %v1941_v57 = vld [vmem:[#allocation3 + $0x38] sm:$0xff] (!%p2820_p8)  ;;  %v1940_v60 = vld [vmem:[#allocation3 + $0x30] sm:$0xff] (!%p2820_p8) }
 0x376   : > { %v2973_v31 = vpop.f32.mrb[55].mxu1  ;;  %3349 = vrcp.f32 (!%p2820_p8), %v1935_v32  ;;  %v1943_v54 = vld [vmem:[#allocation3 + $0x48] sm:$0xff] (!%p2820_p8)  ;;  %v1942_v4 = vld [vmem:[#allocation3 + $0x40] sm:$0xff] (!%p2820_p8) }
 0x377   : > { %v1891_v27 = vadd.f32 %v1853_v61, %v1521_v41  ;;  %v2974_v14 = vadd.f32 %v2973_v31, %v2972_v63  ;;  %v2895_v28 = vpop.f32.mrb[56].mxu0  ;;  %3351 = vrcp.f32 (!%p2820_p8), %v1939_v39  ;;  %v1945_v41 = vld [vmem:[#allocation3 + $0x58] sm:$0xff] (!%p2820_p8)  ;;  %v1944_v63 = vld [vmem:[#allocation3 + $0x50] sm:$0xff] (!%p2820_p8) }
 0x378   : > { %v2896_v42 = vpop.f32.mrb[57].mxu0  ;;  %3353 = vrcp.f32 (!%p2820_p8), %v1938_v30 }
 0x379   : > { %1908 = vst.msk [vmem:[#allocation4 + $0x50] sm:$0xff] %vm1897_vm4, %v1891_v27  ;;  %v1858_v1 = vadd.f32 %v2974_v14, %v2894_v49  ;;  %v2975_v22 = vpop.f32.mrb[56].mxu1  ;;  %v2897_v36 = vadd.f32 %v2896_v42, %v2895_v28  ;;  %3355 = vrcp.f32 (!%p2820_p8), %v1941_v57 }
 0x37a   : > { %v2976_v12 = vpop.f32.mrb[57].mxu1  ;;  %3357 = vrcp.f32 (!%p2820_p8), %v1940_v60 }
 0x37b   : > { %v1892_v7 = vadd.f32 %v1858_v1, %v1522_v52  ;;  %v2977_v53 = vadd.f32 %v2976_v12, %v2975_v22  ;;  %v2898_v2 = vpop.f32.mrb[58].mxu0  ;;  %3359 = vrcp.f32 (!%p2820_p8), %v1943_v54  ;;  %v1947_v52 = vld [vmem:[#allocation3 + $0x68] sm:$0xff] (!%p2820_p8) }
 0x37c   : > { %v2899_v24 = vpop.f32.mrb[59].mxu0  ;;  %3361 = vrcp.f32 (!%p2820_p8), %v1942_v4  ;;  %v3344_v61 = vpop.eup (!%p2820_p8), %3343 }
 0x37d   : > { %1909 = vst.msk [vmem:[#allocation4 + $0x58] sm:$0xff] %vm1897_vm4, %v1892_v7  ;;  %v1863_v13 = vadd.f32 %v2977_v53, %v2897_v36  ;;  %v2978_v40 = vpop.f32.mrb[58].mxu1  ;;  %v2900_v44 = vadd.f32 %v2899_v24, %v2898_v2  ;;  %v1968_v43 = vmul.f32 (!%p2820_p8), %v3344_v61, %v1936_v19  ;;  %3363 = vrcp.f32 (!%p2820_p8), %v1945_v41 }
 0x37e   : > { %v2979_v33 = vpop.f32.mrb[59].mxu1  ;;  %v3346_v49 = vpop.eup (!%p2820_p8), %3345  ;;  %3365 = vrcp.f32 (!%p2820_p8), %v1944_v63 }
 0x37f   : > { %v1893_v46 = vadd.f32 %v1863_v13, %v1523_v26  ;;  %v2980_v0 = vadd.f32 %v2979_v33, %v2978_v40  ;;  %v2901_v55 = vpop.f32.mrb[60].mxu0  ;;  %v3348_v31 = vpop.eup (!%p2820_p8), %3347  ;;  %v1966_v27 = vmul.f32 (!%p2820_p8), %v3346_v49, %v1934_v21  ;;  %v1984_v28 = vsub.f32 (!%p2820_p8), 2.0, %v1968_v43 }
 0x380   : > { %v2902_v3 = vpop.f32.mrb[61].mxu0  ;;  %v3350_v14 = vpop.eup (!%p2820_p8), %3349  ;;  %v1969_v42 = vmul.f32 (!%p2820_p8), %v3348_v31, %v1937_v37  ;;  %3367 = vrcp.f32 (!%p2820_p8), %v1947_v52 }
 0x381   : > { %1910 = vst.msk [vmem:[#allocation4 + $0x60] sm:$0xff] %vm1897_vm4, %v1893_v46  ;;  %v1868_v5 = vadd.f32 %v2980_v0, %v2900_v44  ;;  %v2981_v47 = vpop.f32.mrb[60].mxu1  ;;  %v2903_v11 = vadd.f32 %v2902_v3, %v2901_v55  ;;  %v3352_v1 = vpop.eup (!%p2820_p8), %3351  ;;  %v1982_v22 = vsub.f32 (!%p2820_p8), 2.0, %v1966_v27  ;;  %v1967_v36 = vmul.f32 (!%p2820_p8), %v3350_v14, %v1935_v32  ;;  %v1949_v0 = vld [vmem:[#allocation3 + $0x78] sm:$0xff] (!%p2820_p8)  ;;  %v2351_v27 = vld [vmem:[%s3725_s23 + $0x8] sm:$0xff] (!%p2820_p8) }
 0x382   : > { %v2982_v50 = vpop.f32.mrb[61].mxu1  ;;  %v3354_v12 = vpop.eup (!%p2820_p8), %3353  ;;  %v2000_v7 = vmul.f32 (!%p2820_p8), %v3344_v61, %v1984_v28  ;;  %v1985_v53 = vsub.f32 (!%p2820_p8), 2.0, %v1969_v42  ;;  %v1971_v2 = vmul.f32 (!%p2820_p8), %v3352_v1, %v1939_v39  ;;  %3369 = vrcp.f32 (!%p2820_p8), %v1946_v23  ;;  %v2353_v28 = vld [vmem:[%s3725_s23 + $0x18] sm:$0xff] (!%p2820_p8)  ;;  %v2352_v42 = vld [vmem:[%s3725_s23 + $0x10] sm:$0xff] (!%p2820_p8) }
 0x383   : > { %v1894_v56 = vadd.f32 %v1868_v5, %v1524_v48  ;;  %v2983_v10 = vadd.f32 %v2982_v50, %v2981_v47  ;;  %v2904_v25 = vpop.f32.mrb[62].mxu0  ;;  %v3356_v24 = vpop.eup (!%p2820_p8), %3355  ;;  %v1998_v26 = vmul.f32 (!%p2820_p8), %v3346_v49, %v1982_v22  ;;  %v1983_v13 = vsub.f32 (!%p2820_p8), 2.0, %v1967_v36  ;;  %v1948_v47 = vld [vmem:[#allocation3 + $0x70] sm:$0xff] (!%p2820_p8)  ;;  %v2357_v22 = vld [vmem:[%s3725_s23 + $0x38] sm:$0xff] (!%p2820_p8) }
 0x384   : > { %v2905_v34 = vpop.f32.mrb[63].mxu0  ;;  %v1970_v40 = vmul.f32 (!%p2820_p8), %v3354_v12, %v1938_v30  ;;  %v3358_v44 = vpop.eup (!%p2820_p8), %3357  ;;  %2042 = vperm.xlu1 (!%p2820_p8), %3342, %v2000_v7   ;;  %v2001_v45 = vmul.f32 (!%p2820_p8), %v3348_v31, %v1985_v53  ;;  %v1987_v33 = vsub.f32 (!%p2820_p8), 2.0, %v1971_v2  ;;  %v1973_v46 = vmul.f32 (!%p2820_p8), %v3356_v24, %v1941_v57  ;;  %v2356_v36 = vld [vmem:[%s3725_s23 + $0x30] sm:$0xff] (!%p2820_p8)  ;;  %v2361_v7 = vld [vmem:[%s3725_s23 + $0x58] sm:$0xff] (!%p2820_p8)  ;;  %v2363_v2 = vld [vmem:[%s3725_s23 + $0x68] sm:$0xff] (!%p2820_p8) }
 0x385   : > { %1911 = vst.msk [vmem:[#allocation4 + $0x68] sm:$0xff] %vm1897_vm4, %v1894_v56  ;;  %v1873_v6 = vadd.f32 %v2983_v10, %v2903_v11  ;;  %v2984_v51 = vpop.f32.mrb[62].mxu1  ;;  %v2906_v58 = vadd.f32 %v2905_v34, %v2904_v25  ;;  %v3360_v55 = vpop.eup (!%p2820_p8), %3359  ;;  %2032 = vperm.xlu0 (!%p2820_p8), %3341, %v1998_v26   ;;  %v1999_v3 = vmul.f32 (!%p2820_p8), %v3350_v14, %v1983_v13  ;;  %3371 = vrcp.f32 (!%p2820_p8), %v1949_v0  ;;  %v2350_v14 = vld [vmem:[%s3725_s23] sm:$0xff] (!%p2820_p8)  ;;  %v2360_v53 = vld [vmem:[%s3725_s23 + $0x50] sm:$0xff] (!%p2820_p8)  ;;  %v2365_v26 = vld [vmem:[%s3725_s23 + $0x78] sm:$0xff] (!%p2820_p8) }
 0x386   : > { %v2985_v15 = vpop.f32.mrb[63].mxu1  ;;  %v1986_v48 = vsub.f32 (!%p2820_p8), 2.0, %v1970_v40  ;;  %v1972_v5 = vmul.f32 (!%p2820_p8), %v3358_v44, %v1940_v60  ;;  %v3362_v11 = vpop.eup (!%p2820_p8), %3361  ;;  %v2003_v9 = vmul.f32 (!%p2820_p8), %v3352_v1, %v1987_v33  ;;  %v1989_v20 = vsub.f32 (!%p2820_p8), 2.0, %v1973_v46  ;;  %v2354_v1 = vld [vmem:[%s3725_s23 + $0x20] sm:$0xff] (!%p2820_p8)  ;;  %v2364_v13 = vld [vmem:[%s3725_s23 + $0x70] sm:$0xff] (!%p2820_p8) }
 0x387   : > { %v1895_v16 = vadd.f32 %v1873_v6, %v1525_v35  ;;  %v2986_v29 = vadd.f32 %v2985_v15, %v2984_v51  ;;  %1933 = sbr.rel (%p2820_p8) target bundleno = 1328 (0x530), region = 67  ;;  %v1975_v50 = vmul.f32 (!%p2820_p8), %v3360_v55, %v1943_v54  ;;  %3373 = vrcp.f32 (!%p2820_p8), %v1948_v47  ;;  %v3364_v56 = vpop.eup (!%p2820_p8), %3363  ;;  %v2014_v40 = vld [vmem:[#allocation4] sm:$0xff] (!%p2820_p8) }
 0x388   : > { %2047 = vperm.xlu1 (!%p2820_p8), %3342, %v2001_v45   ;;  %v2002_v10 = vmul.f32 (!%p2820_p8), %v3354_v12, %v1986_v48  ;;  %v1988_v25 = vsub.f32 (!%p2820_p8), 2.0, %v1972_v5  ;;  %v1974_v34 = vmul.f32 (!%p2820_p8), %v3362_v11, %v1942_v4  ;;  %v3366_v35 = vpop.eup (!%p2820_p8), %3365  ;;  %v2005_v6 = vmul.f32 (!%p2820_p8), %v3356_v24, %v1989_v20  ;;  %v2358_v12 = vld [vmem:[%s3725_s23 + $0x40] sm:$0xff] (!%p2820_p8)  ;;  %v2016_v45 = vld [vmem:[#allocation4 + $0x10] sm:$0xff] (!%p2820_p8) }
 0x389   : > { %1912 = vst.msk [vmem:[#allocation4 + $0x70] sm:$0xff] %vm1897_vm4, %v1895_v16  ;;  %v1878_v18 = vadd.f32 %v2986_v29, %v2906_v58  ;;  %2037 = vperm.xlu0 (!%p2820_p8), %3341, %v1999_v3   ;;  %v1991_v51 = vsub.f32 (!%p2820_p8), 2.0, %v1975_v50  ;;  %v1977_v58 = vmul.f32 (!%p2820_p8), %v3364_v56, %v1945_v41  ;;  %v1976_v16 = vmul.f32 (!%p2820_p8), %v3366_v35, %v1944_v63  ;;  %v2362_v24 = vld [vmem:[%s3725_s23 + $0x60] sm:$0xff] (!%p2820_p8) }
 0x38a   : > { %v3368_v8 = vpop.eup (!%p2820_p8), %3367  ;;  %v2004_v62 = vmul.f32 (!%p2820_p8), %v3358_v44, %v1988_v25  ;;  %v1990_v15 = vsub.f32 (!%p2820_p8), 2.0, %v1974_v34 }
 0x38b   : > { %v1896_v59 = vadd.f32 %v1878_v18, %v1526_v17  ;;  %v2007_v17 = vmul.f32 (!%p2820_p8), %v3360_v55, %v1991_v51  ;;  %v1993_v18 = vsub.f32 (!%p2820_p8), 2.0, %v1977_v58  ;;  %v1992_v37 = vsub.f32 (!%p2820_p8), 2.0, %v1976_v16  ;;  %v2019_v51 = vld [vmem:[#allocation4 + $0x28] sm:$0xff] (!%p2820_p8)  ;;  %v2020_v58 = vld [vmem:[#allocation4 + $0x30] sm:$0xff] (!%p2820_p8) }
 0x38c   : > { %2057 = vperm.xlu1 (!%p2820_p8), %3342, %v2003_v9   ;;  %v3370_v29 = vpop.eup (!%p2820_p8), %3369  ;;  %v2006_v21 = vmul.f32 (!%p2820_p8), %v3362_v11, %v1990_v15 }
 0x38d   : > { %1913 = vst.msk [vmem:[#allocation4 + $0x78] sm:$0xff] %vm1897_vm4, %v1896_v59  ;;  %2052 = vperm.xlu0 (!%p2820_p8), %3341, %v2002_v10   ;;  %v1979_v59 = vmul.f32 (!%p2820_p8), %v3368_v8, %v1947_v52  ;;  %v1978_v38 = vmul.f32 (!%p2820_p8), %v3370_v29, %v1946_v23  ;;  %v2009_v39 = vmul.f32 (!%p2820_p8), %v3364_v56, %v1993_v18  ;;  %v2355_v52 = vld [vmem:[%s3725_s23 + $0x28] sm:$0xff] (!%p2820_p8)  ;;  %v2018_v56 = vld [vmem:[#allocation4 + $0x20] sm:$0xff] (!%p2820_p8)  ;;  %v2021_v18 = vld [vmem:[#allocation4 + $0x38] sm:$0xff] (!%p2820_p8) }
 0x38e   : > { %v2008_v60 = vmul.f32 %v3366_v35, %v1992_v37  ;;  %v2359_v23 = vld [vmem:[%s3725_s23 + $0x48] sm:$0xff] }
 0x38f   : > { %v3372_v19 = vpop.eup %3371  ;;  %v1995_v30 = vsub.f32 2.0, %v1979_v59  ;;  %v1994_v54 = vsub.f32 2.0, %v1978_v38  ;;  %v2022_v59 = vld [vmem:[#allocation4 + $0x40] sm:$0xff] }
 0x390   : > { %2067 = vperm.xlu1 %3342, %v2005_v6   ;;  %v1981_v57 = vmul.f32 %v3372_v19, %v1949_v0  ;;  %v2015_v0 = vld [vmem:[#allocation4 + $0x8] sm:$0xff] }
 0x391   : > { %2062 = vperm.xlu0 %3341, %v2004_v62   ;;  %v3374_v32 = vpop.eup %3373  ;;  %v2011_v41 = vmul.f32 %v3368_v8, %v1995_v30  ;;  %v2010_v63 = vmul.f32 %v3370_v29, %v1994_v54 }
 0x392   : > { %v1980_v4 = vmul.f32 %v3374_v32, %v1948_v47  ;;  %v1997_v61 = vsub.f32 2.0, %v1981_v57  ;;  %v2017_v47 = vld [vmem:[#allocation4 + $0x18] sm:$0xff]  ;;  %v2024_v57 = vld [vmem:[#allocation4 + $0x50] sm:$0xff] }
 0x394   : > { %2077 = vperm.xlu1 %3342, %v2007_v17   ;;  %v1996_v49 = vsub.f32 2.0, %v1980_v4  ;;  %v2013_v43 = vmul.f32 %v3372_v19, %v1997_v61 }
 0x395   : > { %2072 = vperm.xlu0 %3341, %v2006_v21  }
 0x396   : > { %v2012_v31 = vmul.f32 %v3374_v32, %v1996_v49  ;;  %v2026_v49 = vld [vmem:[#allocation4 + $0x60] sm:$0xff] }
 0x398   : > { %2087 = vperm.xlu1 %3342, %v2009_v39   ;;  %v2023_v39 = vld [vmem:[#allocation4 + $0x48] sm:$0xff] }
 0x399   : > { %2082 = vperm.xlu0 %3341, %v2008_v60  }
 0x39c   : > { %2097 = vperm.xlu1 %3342, %v2011_v41  }
 0x39d   : > { %2092 = vperm.xlu0 %3341, %v2010_v63   ;;  %v2025_v63 = vld [vmem:[#allocation4 + $0x58] sm:$0xff] }
 0x3a0   : > { %2107 = vperm.xlu1 %3342, %v2013_v43  }
 0x3a1   : > { %2102 = vperm.xlu0 %3341, %v2012_v31  }
 0x3a4   : > { %2384 = vrot.lane.b32.xlu1 %v2351_v27, %s3540_s1 }
 0x3a5   : > { %2382 = vrot.lane.b32.xlu0 %v2350_v14, %s3540_s1 }
 0x3a8   : > { %2388 = vrot.lane.b32.xlu1 %v2353_v28, %s3540_s1 }
 0x3a9   : > { %2386 = vrot.lane.b32.xlu0 %v2352_v42, %s3540_s1  ;;  %v2027_v42 = vld [vmem:[#allocation4 + $0x68] sm:$0xff] }
 0x3ac   : > { %2392 = vrot.lane.b32.xlu1 %v2355_v52, %s3540_s1  ;;  %v2028_v52 = vld [vmem:[#allocation4 + $0x70] sm:$0xff] }
 0x3ad   : > { %2390 = vrot.lane.b32.xlu0 %v2354_v1, %s3540_s1 }
 0x3b0   : > { %2396 = vrot.lane.b32.xlu1 %v2357_v22, %s3540_s1 }
 0x3b1   : > { %2394 = vrot.lane.b32.xlu0 %v2356_v36, %s3540_s1 }
 0x3b4   : > { %2400 = vrot.lane.b32.xlu1 %v2359_v23, %s3540_s1 }
 0x3b5   : > { %2398 = vrot.lane.b32.xlu0 %v2358_v12, %s3540_s1 }
 0x3b8   : > { %2404 = vrot.lane.b32.xlu1 %v2361_v7, %s3540_s1  ;;  %v2029_v7 = vld [vmem:[#allocation4 + $0x78] sm:$0xff] }
 0x3b9   : > { %2402 = vrot.lane.b32.xlu0 %v2360_v53, %s3540_s1 }
 0x3bc   : > { %2408 = vrot.lane.b32.xlu1 %v2363_v2, %s3540_s1 }
 0x3bd   : > { %2406 = vrot.lane.b32.xlu0 %v2362_v24, %s3540_s1 }
 0x3c0   : > { %2412 = vrot.lane.b32.xlu1 %v2365_v26, %s3540_s1 }
 0x3c1   : > { %2410 = vrot.lane.b32.xlu0 %v2364_v13, %s3540_s1 }
 0x403   : > { %v2043_v44 = vpop.permute.xlu1 %2042 }
 0x404   : > { %v2033_v33 = vpop.permute.xlu0 %2032  ;;  %v4530_v55 = vmul.f32 %v2043_v44, %v2016_v45 }
 0x405   : > { %v4528_v46 = vmul.f32 %v2033_v33, %v2014_v40 }
 0x406   : > { %v2128_v35 = vmul.f32 %v4530_v55, %v4530_v55 }
 0x407   : > { %2462 = vrot.lane.b32.xlu0 %v4528_v46, %s3540_s1  ;;  %v2048_v3 = vpop.permute.xlu1 %2047  ;;  %v2126_v50 = vmul.f32 %v4528_v46, %v4528_v46 }
 0x408   : > { %v2038_v48 = vpop.permute.xlu0 %2037  ;;  %v4540_v20 = vmul.f32 %v2048_v3, %v2017_v47 }
 0x409   : > { %v4534_v5 = vmul.f32 %v2038_v48, %v2015_v0 }
 0x40a   : > { %v2129_v29 = vmul.f32 %v4540_v20, %v4540_v20 }
 0x40b   : > { %2466 = vrot.lane.b32.xlu0 %v4530_v55, %s3540_s1  ;;  %2464 = vrot.lane.b32.xlu1 %v4534_v5, %s3540_s1  ;;  %v2058_v11 = vpop.permute.xlu1 %2057  ;;  %v2127_v6 = vmul.f32 %v4534_v5, %v4534_v5 }
 0x40c   : > { %v2053_v9 = vpop.permute.xlu0 %2052  ;;  %v4555_v15 = vmul.f32 %v2058_v11, %v2019_v51 }
 0x40d   : > { %v4547_v34 = vmul.f32 %v2053_v9, %v2018_v56 }
 0x40e   : > { %v2131_v38 = vmul.f32 %v4555_v15, %v4555_v15 }
 0x40f   : > { %2158 = vrot.lane.b32.xlu0 %v2126_v50, %s3540_s1  ;;  %2468 = vrot.lane.b32.xlu1 %v4540_v20, %s3540_s1  ;;  %v2068_v10 = vpop.permute.xlu1 %2067  ;;  %v2130_v17 = vmul.f32 %v4547_v34, %v4547_v34 }
 0x410   : > { %v2063_v25 = vpop.permute.xlu0 %2062  ;;  %v4565_v21 = vmul.f32 %v2068_v10, %v2021_v18 }
 0x411   : > { %v4557_v16 = vmul.f32 %v2063_v25, %v2020_v58 }
 0x412   : > { %v2133_v41 = vmul.f32 %v4565_v21, %v4565_v21 }
 0x413   : > { %2162 = vrot.lane.b32.xlu0 %v2128_v35, %s3540_s1  ;;  %2160 = vrot.lane.b32.xlu1 %v2127_v6, %s3540_s1  ;;  %v2078_v8 = vpop.permute.xlu1 %2077  ;;  %v2132_v32 = vmul.f32 %v4557_v16, %v4557_v16 }
 0x414   : > { %v2073_v62 = vpop.permute.xlu0 %2072  ;;  %v4575_v54 = vmul.f32 %v2078_v8, %v2023_v39 }
 0x415   : > { %v4567_v37 = vmul.f32 %v2073_v62, %v2022_v59 }
 0x416   : > { %v2135_v14 = vmul.f32 %v4575_v54, %v4575_v54 }
 0x417   : > { %2164 = vrot.lane.b32.xlu1 %v2129_v29, %s3540_s1  ;;  %2166 = vrot.lane.b32.xlu0 %v2130_v17, %s3540_s1  ;;  %v2088_v30 = vpop.permute.xlu1 %2087  ;;  %v2134_v61 = vmul.f32 %v4567_v37, %v4567_v37 }
 0x418   : > { %v2083_v19 = vpop.permute.xlu0 %2082  ;;  %v4585_v31 = vmul.f32 %v2088_v30, %v2025_v63 }
 0x419   : > { %v4577_v4 = vmul.f32 %v2083_v19, %v2024_v57 }
 0x41a   : > { %v2137_v23 = vmul.f32 %v4585_v31, %v4585_v31 }
 0x41b   : > { %2168 = vrot.lane.b32.xlu1 %v2131_v38, %s3540_s1  ;;  %2170 = vrot.lane.b32.xlu0 %v2132_v32, %s3540_s1  ;;  %v2098_v43 = vpop.permute.xlu1 %2097  ;;  %v2136_v28 = vmul.f32 %v4577_v4, %v4577_v4 }
 0x41c   : > { %v2093_v60 = vpop.permute.xlu0 %2092  ;;  %v4595_v22 = vmul.f32 %v2098_v43, %v2027_v42 }
 0x41d   : > { %v4587_v27 = vmul.f32 %v2093_v60, %v2026_v49 }
 0x41e   : > { %v2139_v24 = vmul.f32 %v4595_v22, %v4595_v22 }
 0x41f   : > { %2172 = vrot.lane.b32.xlu1 %v2133_v41, %s3540_s1  ;;  %2174 = vrot.lane.b32.xlu0 %v2134_v61, %s3540_s1  ;;  %v2138_v12 = vmul.f32 %v4587_v27, %v4587_v27  ;;  %v2108_v53 = vpop.permute.xlu1 %2107 }
 0x420   : > { %v2103_v1 = vpop.permute.xlu0 %2102  ;;  %v4605_v2 = vmul.f32 %v2108_v53, %v2029_v7 }
 0x421   : > { %v4597_v36 = vmul.f32 %v2103_v1, %v2028_v52 }
 0x422   : > { %v2141_v13 = vmul.f32 %v4605_v2, %v4605_v2 }
 0x423   : > { %2176 = vrot.lane.b32.xlu1 %v2135_v14, %s3540_s1  ;;  %2178 = vrot.lane.b32.xlu0 %v2136_v28, %s3540_s1  ;;  %v2140_v26 = vmul.f32 %v4597_v36, %v4597_v36  ;;  %v4642_v44 = vpop.permute.xlu1 %2384 }
 0x424   : > { %v4640_v40 = vpop.permute.xlu0 %2382 }
 0x427   : > { %2180 = vrot.lane.b32.xlu1 %v2137_v23, %s3540_s1  ;;  %2182 = vrot.lane.b32.xlu0 %v2138_v12, %s3540_s1  ;;  %v4646_v33 = vpop.permute.xlu1 %2388 }
 0x428   : > { %v4644_v45 = vpop.permute.xlu0 %2386 }
 0x42b   : > { %2184 = vrot.lane.b32.xlu1 %v2139_v24, %s3540_s1  ;;  %2186 = vrot.lane.b32.xlu0 %v2140_v26, %s3540_s1  ;;  %v4650_v3 = vpop.permute.xlu1 %2392 }
 0x42c   : > { %v4648_v0 = vpop.permute.xlu0 %2390 }
 0x42f   : > { %2188 = vrot.lane.b32.xlu1 %v2141_v13, %s3540_s1  ;;  %2470 = vrot.lane.b32.xlu0 %v4547_v34, %s3540_s1  ;;  %v4654_v47 = vpop.permute.xlu1 %2396 }
 0x430   : > { %v4652_v48 = vpop.permute.xlu0 %2394 }
 0x433   : > { %2472 = vrot.lane.b32.xlu1 %v4555_v15, %s3540_s1  ;;  %2474 = vrot.lane.b32.xlu0 %v4557_v16, %s3540_s1  ;;  %v4658_v9 = vpop.permute.xlu1 %2400 }
 0x434   : > { %v4656_v11 = vpop.permute.xlu0 %2398 }
 0x437   : > { %2476 = vrot.lane.b32.xlu1 %v4565_v21, %s3540_s1  ;;  %2478 = vrot.lane.b32.xlu0 %v4567_v37, %s3540_s1  ;;  %v4662_v56 = vpop.permute.xlu1 %2404 }
 0x438   : > { %v4660_v50 = vpop.permute.xlu0 %2402 }
 0x43b   : > { %2480 = vrot.lane.b32.xlu1 %v4575_v54, %s3540_s1  ;;  %2482 = vrot.lane.b32.xlu0 %v4577_v4, %s3540_s1  ;;  %v4666_v25 = vpop.permute.xlu1 %2408 }
 0x43c   : > { %v4664_v10 = vpop.permute.xlu0 %2406 }
 0x43f   : > { %2484 = vrot.lane.b32.xlu1 %v4585_v31, %s3540_s1  ;;  %2486 = vrot.lane.b32.xlu0 %v4587_v27, %s3540_s1  ;;  %v4670_v6 = vpop.permute.xlu1 %2412 }
 0x440   : > { %v4668_v35 = vpop.permute.xlu0 %2410 }
 0x443   : > { %2488 = vrot.lane.b32.xlu1 %v4595_v22, %s3540_s1  ;;  %2490 = vrot.lane.b32.xlu0 %v4597_v36, %s3540_s1 }
 0x447   : > { %2492 = vrot.lane.b32.xlu1 %v4605_v2, %s3540_s1 }
 0x479   : > { %v4672_v51 = vpop.permute.xlu0 %2462 }
 0x47d   : > { %v4674_v58 = vpop.permute.xlu1 %2464  ;;  %v4676_v8 = vpop.permute.xlu0 %2466 }
 0x481   : > { %v4678_v62 = vpop.permute.xlu1 %2468  ;;  %v2159_v29 = vpop.permute.xlu0 %2158 }
 0x482   : > { %v2206_v17 = vsub.f32 %v4528_v46, %v2159_v29 }
 0x484   : > { %v2222_v18 = vmax.f32 %v2206_v17, 0.0 }
 0x485   : > { %v2161_v59 = vpop.permute.xlu1 %2160  ;;  %v2163_v19 = vpop.permute.xlu0 %2162 }
 0x486   : > { %3375 = vrsqrt.f32 %v2222_v18  ;;  %v2207_v38 = vsub.f32 %v4534_v5, %v2161_v59  ;;  %v2208_v32 = vsub.f32 %v4530_v55, %v2163_v19  ;;  %vm2240_vm5 = vcmp.eq.f32.partialorder %v2222_v18, inf }
 0x487   : > { %vm2242_vm6 = vcmp.eq.f32.partialorder %v2222_v18, 0.0 }
 0x488   : > { %v4683_v39 = vmax.f32 %v2207_v38, 0.0  ;;  %v4685_v30 = vmax.f32 %v2208_v32, 0.0 }
 0x489   : > { %v2165_v57 = vpop.permute.xlu1 %2164  ;;  %v2167_v60 = vpop.permute.xlu0 %2166 }
 0x48a   : > { %3377 = vrsqrt.f32 %v4683_v39  ;;  %v2209_v41 = vsub.f32 %v4540_v20, %v2165_v57  ;;  %v2210_v46 = vsub.f32 %v4547_v34, %v2167_v60  ;;  %v2243_v20 = vand.u32 2147483648, %v2222_v18 }
 0x48b   : > { %3379 = vrsqrt.f32 %v4685_v30  ;;  %vm2247_vm7 = vcmp.eq.f32.partialorder %v4683_v39, inf  ;;  %vm2249_vm8 = vcmp.eq.f32.partialorder %v4683_v39, 0.0  ;;  %v2250_v42 = vand.u32 2147483648, %v4683_v39 }
 0x48c   : > { %v4691_v61 = vmax.f32 %v2209_v41, 0.0  ;;  %v4693_v63 = vmax.f32 %v2210_v46, 0.0  ;;  %vm2254_vm9 = vcmp.eq.f32.partialorder %v4685_v30, inf  ;;  %vm2256_vm10 = vcmp.eq.f32.partialorder %v4685_v30, 0.0 }
 0x48d   : > { %v2169_v5 = vpop.permute.xlu1 %2168  ;;  %v2171_v55 = vpop.permute.xlu0 %2170 }
 0x48e   : > { %3381 = vrsqrt.f32 %v4691_v61  ;;  %v2211_v49 = vsub.f32 %v4555_v15, %v2169_v5  ;;  %v2212_v43 = vsub.f32 %v4557_v16, %v2171_v55  ;;  %v2257_v16 = vand.u32 2147483648, %v4685_v30 }
 0x48f   : > { %3383 = vrsqrt.f32 %v4693_v63  ;;  %vm2261_vm11 = vcmp.eq.f32.partialorder %v4691_v61, inf  ;;  %vm2263_vm12 = vcmp.eq.f32.partialorder %v4691_v61, 0.0  ;;  %v2264_v53 = vand.u32 2147483648, %v4691_v61 }
 0x490   : > { %v3376_v34 = vpop.eup %3375  ;;  %v4700_v14 = vmax.f32 %v2211_v49, 0.0  ;;  %v4702_v28 = vmax.f32 %v2212_v43, 0.0  ;;  %vm2268_vm13 = vcmp.eq.f32.partialorder %v4693_v63, inf  ;;  %vm2270_vm14 = vcmp.eq.f32.partialorder %v4693_v63, 0.0 }
 0x491   : > { %v2173_v52 = vpop.permute.xlu1 %2172  ;;  %v2175_v15 = vpop.permute.xlu0 %2174  ;;  %v2239_v1 = vmul.f32 %v3376_v34, %v2222_v18  ;;  %v2271_v38 = vand.u32 2147483648, %v4693_v63 }
 0x492   : > { %3385 = vrsqrt.f32 %v4700_v14  ;;  %v2213_v23 = vsub.f32 %v4565_v21, %v2173_v52  ;;  %v2214_v12 = vsub.f32 %v4567_v37, %v2175_v15  ;;  %vm2275_vm15 = vcmp.eq.f32.partialorder %v4700_v14, inf }
 0x493   : > { %3387 = vrsqrt.f32 %v4702_v28  ;;  %v2241_v7 = vsel %vm2240_vm5, %v2222_v18, %v2239_v1  ;;  %vm2277_vm0 = vcmp.eq.f32.partialorder %v4700_v14, 0.0  ;;  %v2278_v41 = vand.u32 2147483648, %v4700_v14 }
 0x494   : > { %v3378_v24 = vpop.eup %3377  ;;  %v4717_v26 = vmax.f32 %v2213_v23, 0.0  ;;  %v4719_v13 = vmax.f32 %v2214_v12, 0.0  ;;  %v2244_v29 = vsel %vm2242_vm6, %v2243_v20, %v2241_v7  ;;  %vm2282_vm1 = vcmp.eq.f32.partialorder %v4702_v28, inf }
 0x495   : > { %v3380_v21 = vpop.eup %3379  ;;  %v2177_v37 = vpop.permute.xlu1 %2176  ;;  %v2430_v59 = vmul.f32 %v4640_v40, %v2244_v29  ;;  %v2246_v19 = vmul.f32 %v3378_v24, %v4683_v39  ;;  %vm2284_vm3 = vcmp.eq.f32.partialorder %v4702_v28, 0.0 }
 0x496   : > { %v2179_v17 = vpop.permute.xlu0 %2178  ;;  %3389 = vrsqrt.f32 %v4717_v26  ;;  %v2215_v32 = vsub.f32 %v4575_v54, %v2177_v37  ;;  %v2253_v57 = vmul.f32 %v3380_v21, %v4685_v30  ;;  %vm2289_vm4 = vcmp.eq.f32.partialorder %v4717_v26, inf }
 0x497   : > { %v2216_v18 = vsub.f32 %v4577_v4, %v2179_v17  ;;  %3391 = vrsqrt.f32 %v4719_v13  ;;  %v2510_v40 = vadd.f32 %v4672_v51, %v2430_v59  ;;  %v2248_v60 = vsel %vm2247_vm7, %v4683_v39, %v2246_v19 }
 0x498   : > { %v3382_v46 = vpop.eup %3381  ;;  %v4739_v54 = vmax.f32 %v2215_v32, 0.0  ;;  %v2251_v5 = vsel %vm2249_vm8, %v2250_v42, %v2248_v60  ;;  %v2255_v51 = vsel %vm2254_vm9, %v4685_v30, %v2253_v57  ;;  %v2285_v39 = vand.u32 2147483648, %v4702_v28 }
 0x499   : > { %v4741_v4 = vmax.f32 %v2216_v18, 0.0  ;;  %v3384_v55 = vpop.eup %3383  ;;  %v2181_v49 = vpop.permute.xlu1 %2180  ;;  %2542 = vrot.lane.b32.xlu0 %v2510_v40, %s3541_s17  ;;  %v2431_v20 = vmul.f32 %v4642_v44, %v2251_v5  ;;  %v2258_v34 = vsel %vm2256_vm10, %v2257_v16, %v2255_v51  ;;  %v2260_v52 = vmul.f32 %v3382_v46, %v4691_v61 }
 0x49a   : > { %v2183_v43 = vpop.permute.xlu0 %2182  ;;  %3393 = vrsqrt.f32 %v4739_v54  ;;  %v2217_v42 = vsub.f32 %v4585_v31, %v2181_v49  ;;  %v2432_v1 = vmul.f32 %v4644_v45, %v2258_v34  ;;  %v2267_v16 = vmul.f32 %v3384_v55, %v4693_v63 }
 0x49b   : > { %v2218_v15 = vsub.f32 %v4587_v27, %v2183_v43  ;;  %3395 = vrsqrt.f32 %v4741_v4  ;;  %v2511_v44 = vadd.f32 %v4674_v58, %v2431_v20  ;;  %v2262_v30 = vsel %vm2261_vm11, %v4691_v61, %v2260_v52 }
 0x49c   : > { %v3386_v23 = vpop.eup %3385  ;;  %v4767_v31 = vmax.f32 %v2217_v42, 0.0  ;;  %v2512_v45 = vadd.f32 %v4676_v8, %v2432_v1  ;;  %v2265_v12 = vsel %vm2263_vm12, %v2264_v53, %v2262_v30  ;;  %v2269_v21 = vsel %vm2268_vm13, %v4693_v63, %v2267_v16 }
 0x49d   : > { %v4769_v27 = vmax.f32 %v2218_v15, 0.0  ;;  %v3388_v7 = vpop.eup %3387  ;;  %2544 = vrot.lane.b32.xlu1 %v2511_v44, %s3541_s17  ;;  %v2185_v58 = vpop.permute.xlu1 %2184  ;;  %v2433_v29 = vmul.f32 %v4646_v33, %v2265_v12  ;;  %v2274_v37 = vmul.f32 %v3386_v23, %v4700_v14  ;;  %vm2291_vm5 = vcmp.eq.f32.partialorder %v4717_v26, 0.0 }
 0x49e   : > { %v2187_v24 = vpop.permute.xlu0 %2186  ;;  %3397 = vrsqrt.f32 %v4767_v31  ;;  %v2219_v8 = vsub.f32 %v4595_v22, %v2185_v58  ;;  %2546 = vrot.lane.b32.xlu0 %v2512_v45, %s3541_s17  ;;  %v2272_v53 = vsel %vm2270_vm14, %v2271_v38, %v2269_v21  ;;  %v2281_v63 = vmul.f32 %v3388_v7, %v4702_v28 }
 0x49f   : > { %v2220_v61 = vsub.f32 %v4597_v36, %v2187_v24  ;;  %3399 = vrsqrt.f32 %v4769_v27  ;;  %v2513_v33 = vadd.f32 %v4678_v62, %v2433_v29  ;;  %v2434_v17 = vmul.f32 %v4648_v0, %v2272_v53 }
 0x4a0   : > { %v2276_v59 = vsel %vm2275_vm15, %v4700_v14, %v2274_v37  ;;  %v3390_v19 = vpop.eup %3389  ;;  %v4793_v32 = vmax.f32 %v2219_v8, 0.0  ;;  %v2292_v40 = vand.u32 2147483648, %v4717_v26  ;;  %vm2296_vm6 = vcmp.eq.f32.partialorder %v4719_v13, inf }
 0x4a1   : > { %v4795_v22 = vmax.f32 %v2220_v61, 0.0  ;;  %v2279_v36 = vsel %vm2277_vm0, %v2278_v41, %v2276_v59  ;;  %v3392_v38 = vpop.eup %3391  ;;  %2548 = vrot.lane.b32.xlu1 %v2513_v33, %s3541_s17  ;;  %v2189_v62 = vpop.permute.xlu1 %2188  ;;  %v2288_v57 = vmul.f32 %v3390_v19, %v4717_v26  ;;  %v2283_v41 = vsel %vm2282_vm1, %v4702_v28, %v2281_v63 }
 0x4a2   : > { %v2471_v18 = vpop.permute.xlu0 %2470  ;;  %v2435_v0 = vmul.f32 %v4650_v3, %v2279_v36  ;;  %3401 = vrsqrt.f32 %v4793_v32  ;;  %v2221_v14 = vsub.f32 %v4605_v2, %v2189_v62  ;;  %v2286_v3 = vsel %vm2284_vm3, %v2285_v39, %v2283_v41 }
 0x4a3   : > { %v2514_v60 = vadd.f32 %v2471_v18, %v2434_v17  ;;  %3403 = vrsqrt.f32 %v4795_v22  ;;  %v2290_v46 = vsel %vm2289_vm4, %v4717_v26, %v2288_v57  ;;  %v2295_v5 = vmul.f32 %v3392_v38, %v4719_v13 }
 0x4a4   : > { %v3394_v51 = vpop.eup %3393  ;;  %v4817_v55 = vmax.f32 %v2221_v14, 0.0  ;;  %v2436_v2 = vmul.f32 %v4652_v48, %v2286_v3  ;;  %v2293_v49 = vsel %vm2291_vm5, %v2292_v40, %v2290_v46  ;;  %v2299_v43 = vand.u32 2147483648, %v4719_v13 }
 0x4a5   : > { %2550 = vrot.lane.b32.xlu0 %v2514_v60, %s3541_s17  ;;  %v3396_v28 = vpop.eup %3395  ;;  %v2473_v20 = vpop.permute.xlu1 %2472  ;;  %v2297_v52 = vsel %vm2296_vm6, %v4719_v13, %v2295_v5  ;;  %vm2298_vm7 = vcmp.eq.f32.partialorder %v4719_v13, 0.0  ;;  %v2302_v39 = vmul.f32 %v3394_v51, %v4739_v54  ;;  %vm2303_vm8 = vcmp.eq.f32.partialorder %v4739_v54, inf }
 0x4a6   : > { %v2475_v34 = vpop.permute.xlu0 %2474  ;;  %3405 = vrsqrt.f32 %v4817_v55  ;;  %v2515_v48 = vadd.f32 %v2473_v20, %v2435_v0  ;;  %v2300_v42 = vsel %vm2298_vm7, %v2299_v43, %v2297_v52  ;;  %v2437_v15 = vmul.f32 %v4654_v47, %v2293_v49 }
 0x4a7   : > { %v2516_v26 = vadd.f32 %v2475_v34, %v2436_v2  ;;  %v2438_v1 = vmul.f32 %v4656_v11, %v2300_v42  ;;  %v2304_v44 = vsel %vm2303_vm8, %v4739_v54, %v2302_v39  ;;  %v2306_v30 = vand.u32 2147483648, %v4739_v54 }
 0x4a8   : > { %v3398_v16 = vpop.eup %3397  ;;  %2552 = vrot.lane.b32.xlu1 %v2515_v48, %s3541_s17  ;;  %vm2305_vm9 = vcmp.eq.f32.partialorder %v4739_v54, 0.0  ;;  %v2309_v13 = vmul.f32 %v3396_v28, %v4741_v4  ;;  %vm2310_vm10 = vcmp.eq.f32.partialorder %v4741_v4, inf  ;;  %vm2312_vm11 = vcmp.eq.f32.partialorder %v4741_v4, 0.0 }
 0x4a9   : > { %2554 = vrot.lane.b32.xlu0 %v2516_v26, %s3541_s17  ;;  %v3400_v47 = vpop.eup %3399  ;;  %v2477_v23 = vpop.permute.xlu1 %2476  ;;  %v2307_v45 = vsel %vm2305_vm9, %v2306_v30, %v2304_v44  ;;  %v2313_v12 = vand.u32 2147483648, %v4741_v4  ;;  %v2316_v7 = vmul.f32 %v3398_v16, %v4767_v31  ;;  %vm2317_vm12 = vcmp.eq.f32.partialorder %v4767_v31, inf }
 0x4aa   : > { %v2479_v11 = vpop.permute.xlu0 %2478  ;;  %v2517_v58 = vadd.f32 %v2477_v23, %v2437_v15  ;;  %v2311_v54 = vsel %vm2310_vm10, %v4741_v4, %v2309_v13  ;;  %vm2319_vm13 = vcmp.eq.f32.partialorder %v4767_v31, 0.0  ;;  %v2320_v37 = vand.u32 2147483648, %v4767_v31 }
 0x4ab   : > { %v2518_v24 = vadd.f32 %v2479_v11, %v2438_v1  ;;  %v2314_v29 = vsel %vm2312_vm11, %v2313_v12, %v2311_v54  ;;  %v2318_v21 = vsel %vm2317_vm12, %v4767_v31, %v2316_v7  ;;  %v2323_v8 = vmul.f32 %v3400_v47, %v4769_v27 }
 0x4ac   : > { %v3402_v61 = vpop.eup %3401  ;;  %2556 = vrot.lane.b32.xlu1 %v2517_v58, %s3541_s17  ;;  %v2439_v53 = vmul.f32 %v4658_v9, %v2307_v45  ;;  %v2440_v33 = vmul.f32 %v4660_v50, %v2314_v29  ;;  %vm2324_vm14 = vcmp.eq.f32.partialorder %v4769_v27, inf  ;;  %v2327_v4 = vand.u32 2147483648, %v4769_v27 }
 0x4ad   : > { %2558 = vrot.lane.b32.xlu0 %v2518_v24, %s3541_s17  ;;  %v3404_v17 = vpop.eup %3403  ;;  %v2481_v59 = vpop.permute.xlu1 %2480  ;;  %v2321_v36 = vsel %vm2319_vm13, %v2320_v37, %v2318_v21  ;;  %v2325_v31 = vsel %vm2324_vm14, %v4769_v27, %v2323_v8  ;;  %vm2326_vm15 = vcmp.eq.f32.partialorder %v4769_v27, 0.0  ;;  %v2330_v63 = vmul.f32 %v3402_v61, %v4793_v32 }
 0x4ae   : > { %v2483_v19 = vpop.permute.xlu0 %2482  ;;  %v2519_v38 = vadd.f32 %v2481_v59, %v2439_v53  ;;  %v2328_v18 = vsel %vm2326_vm15, %v2327_v4, %v2325_v31  ;;  %vm2331_vm0 = vcmp.eq.f32.partialorder %v4793_v32, inf  ;;  %v2441_v9 = vmul.f32 %v4662_v56, %v2321_v36 }
 0x4af   : > { %v2520_v62 = vadd.f32 %v2483_v19, %v2440_v33  ;;  %v2332_v50 = vsel %vm2331_vm0, %v4793_v32, %v2330_v63  ;;  %v2334_v0 = vand.u32 2147483648, %v4793_v32  ;;  %v2442_v27 = vmul.f32 %v4664_v10, %v2328_v18 }
 0x4b0   : > { %v3406_v57 = vpop.eup %3405  ;;  %2560 = vrot.lane.b32.xlu1 %v2519_v38, %s3541_s17  ;;  %vm2333_vm1 = vcmp.eq.f32.partialorder %v4793_v32, 0.0  ;;  %v2337_v40 = vmul.f32 %v3404_v17, %v4795_v22  ;;  %vm2338_vm3 = vcmp.eq.f32.partialorder %v4795_v22, inf  ;;  %vm2340_vm4 = vcmp.eq.f32.partialorder %v4795_v22, 0.0 }
 0x4b1   : > { %2562 = vrot.lane.b32.xlu0 %v2520_v62, %s3541_s17  ;;  %v2485_v14 = vpop.permute.xlu1 %2484  ;;  %v2335_v56 = vsel %vm2333_vm1, %v2334_v0, %v2332_v50  ;;  %v2341_v41 = vand.u32 2147483648, %v4795_v22  ;;  %v2344_v3 = vmul.f32 %v3406_v57, %v4817_v55  ;;  %vm2345_vm5 = vcmp.eq.f32.partialorder %v4817_v55, inf }
 0x4b2   : > { %v2487_v60 = vpop.permute.xlu0 %2486  ;;  %v2521_v46 = vadd.f32 %v2485_v14, %v2441_v9  ;;  %v2339_v51 = vsel %vm2338_vm3, %v4795_v22, %v2337_v40  ;;  %v2348_v2 = vand.u32 2147483648, %v4817_v55  ;;  %v2443_v49 = vmul.f32 %v4666_v25, %v2335_v56 }
 0x4b3   : > { %v2522_v5 = vadd.f32 %v2487_v60, %v2442_v27  ;;  %v2342_v10 = vsel %vm2340_vm4, %v2341_v41, %v2339_v51  ;;  %v2346_v32 = vsel %vm2345_vm5, %v4817_v55, %v2344_v3  ;;  %vm2347_vm6 = vcmp.eq.f32.partialorder %v4817_v55, 0.0 }
 0x4b4   : > { %2564 = vrot.lane.b32.xlu1 %v2521_v46, %s3541_s17  ;;  %v2444_v43 = vmul.f32 %v4668_v35, %v2342_v10  ;;  %v2349_v20 = vsel %vm2347_vm6, %v2348_v2, %v2346_v32 }
 0x4b5   : > { %2566 = vrot.lane.b32.xlu0 %v2522_v5, %s3541_s17  ;;  %v2489_v22 = vpop.permute.xlu1 %2488  ;;  %v2445_v39 = vmul.f32 %v4670_v6, %v2349_v20 }
 0x4b6   : > { %v2491_v28 = vpop.permute.xlu0 %2490  ;;  %v2523_v34 = vadd.f32 %v2489_v22, %v2443_v49 }
 0x4b7   : > { %v2524_v52 = vadd.f32 %v2491_v28, %v2444_v43 }
 0x4b8   : > { %2568 = vrot.lane.b32.xlu1 %v2523_v34, %s3541_s17 }
 0x4b9   : > { %2570 = vrot.lane.b32.xlu0 %v2524_v52, %s3541_s17  ;;  %v2493_v25 = vpop.permute.xlu1 %2492 }
 0x4ba   : > { %v2525_v35 = vadd.f32 %v2493_v25, %v2445_v39 }
 0x4bc   : > { %2572 = vrot.lane.b32.xlu1 %v2525_v35, %s3541_s17 }
 0x50b   : > { %v2543_v55 = vpop.permute.xlu0 %2542 }
 0x50c   : > { %2590 = vst.msk [vmem:[%s3734_s12] sm:$0xff] %vm467_vm2, %v2543_v55 }
 0x50f   : > { %v2545_v48 = vpop.permute.xlu1 %2544 }
 0x510   : > { %2591 = vst.msk [vmem:[%s3734_s12 + $0x8] sm:$0xff] %vm467_vm2, %v2545_v48  ;;  %v2547_v26 = vpop.permute.xlu0 %2546 }
 0x511   : > { %2592 = vst.msk [vmem:[%s3734_s12 + $0x10] sm:$0xff] %vm467_vm2, %v2547_v26 }
 0x513   : > { %v2549_v6 = vpop.permute.xlu1 %2548 }
 0x514   : > { %2593 = vst.msk [vmem:[%s3734_s12 + $0x18] sm:$0xff] %vm467_vm2, %v2549_v6 }
 0x517   : > { %v2551_v42 = vpop.permute.xlu0 %2550 }
 0x518   : > { %2594 = vst.msk [vmem:[%s3734_s12 + $0x20] sm:$0xff] %vm467_vm2, %v2551_v42 }
 0x51a   : > { %v2553_v15 = vpop.permute.xlu1 %2552 }
 0x51b   : > { %v2555_v1 = vpop.permute.xlu0 %2554  ;;  %2595 = vst.msk [vmem:[%s3734_s12 + $0x28] sm:$0xff] %vm467_vm2, %v2553_v15 }
 0x51c   : > { %2596 = vst.msk [vmem:[%s3734_s12 + $0x30] sm:$0xff] %vm467_vm2, %v2555_v1 }
 0x51e   : > { %v2557_v44 = vpop.permute.xlu1 %2556 }
 0x51f   : > { %v2559_v30 = vpop.permute.xlu0 %2558  ;;  %2597 = vst.msk [vmem:[%s3734_s12 + $0x38] sm:$0xff] %vm467_vm2, %v2557_v44 }
 0x520   : > { %2598 = vst.msk [vmem:[%s3734_s12 + $0x40] sm:$0xff] %vm467_vm2, %v2559_v30 }
 0x522   : > { %v2561_v16 = vpop.permute.xlu1 %2560 }
 0x523   : > { %v2563_v13 = vpop.permute.xlu0 %2562  ;;  %2599 = vst.msk [vmem:[%s3734_s12 + $0x48] sm:$0xff] %vm467_vm2, %v2561_v16 }
 0x524   : > { %2600 = vst.msk [vmem:[%s3734_s12 + $0x50] sm:$0xff] %vm467_vm2, %v2563_v13 }
 0x526   : > { %v2565_v47 = vpop.permute.xlu1 %2564 }
 0x527   : > { %v2567_v23 = vpop.permute.xlu0 %2566  ;;  %2601 = vst.msk [vmem:[%s3734_s12 + $0x58] sm:$0xff] %vm467_vm2, %v2565_v47 }
 0x528   : > { %2602 = vst.msk [vmem:[%s3734_s12 + $0x60] sm:$0xff] %vm467_vm2, %v2567_v23 }
 0x52a   : > { %v2569_v11 = vpop.permute.xlu1 %2568 }
 0x52b   : > { %v2571_v45 = vpop.permute.xlu0 %2570  ;;  %2603 = vst.msk [vmem:[%s3734_s12 + $0x68] sm:$0xff] %vm467_vm2, %v2569_v11 }
 0x52c   : > { %2604 = vst.msk [vmem:[%s3734_s12 + $0x70] sm:$0xff] %vm467_vm2, %v2571_v45 }
 0x52e   : > { %v2573_v12 = vpop.permute.xlu1 %2572 }
 0x52f   : > { %2605 = vst.msk [vmem:[%s3734_s12 + $0x78] sm:$0xff] %vm467_vm2, %v2573_v12 }
 0x530 PF: > { %s2823_s19 = sshll.u32 %s3517_s22, 5  ;;  %s2622_s23 = sshll.u32 %s3734_s12, 4  ;;  %s4919_s23 = int_to_ptr.vmem [resolvable:$true] %s2622_s23 }
 0x531   : > { %s2619_s20 = sadd.s32 %s2823_s19, %s3710_s6  ;;  %s5121_s5 = sand.u32 1, %s3493_s16  }
 0x532   : > { %s2824_s25 = sshll.u32 %s2619_s20, 7  ;;  %s4928_s14 = scalar_lea.sflag [#allocation7], %s5121_s5 }
 0x533   : > { %s4924_s27 = scalar_lea.hbm %s4996_s4, %s2824_s25  ;;  %s3407_s30 = scalar_lea.vmem %s4919_s23, 2048 }
 0x534   : > { %p3408_p10 = scmp.ne.s32.totalorder %s4919_s23, %s3407_s30  ;;  %s3542_s22 = smov [#allocation6]  }
 0x535   : > { %s3411_s6 = sshll.u32 %s3542_s22, 4  ;;  %s3412_s6 = int_to_ptr.vmem [resolvable:$false] %s3411_s6 }
 0x536   : > { %p3409_p12 = pnand %p3408_p10, %p3656_p9  ;;  %s3413_s8 = scalar_lea.vmem %s3412_s6, 4096 }
 0x537   : > { %p3414_p0 = scmp.lt.s32.totalorder %s4919_s23, %s3412_s6  ;;  %p3415_p1 = scmp.lt.s32.totalorder %s3413_s8, %s3407_s30 }
 0x538   : > { %p3410_p13 = pneg %p3409_p12 }
 0x539   : > { %p3416_p2 = por %p3415_p1, %p3414_p0 }
 0x53b   : > { %p3417_p3 = pnand %p3416_p2, %p3410_p13 }
 0x53d   : > { %3420 = shalt.err (!%p3417_p3)
}
 0x53e   : > { %s3421_s10 = scalar_lea.hbm %s4924_s27, 2048  ;;  %s3425_s18 = scalar_lea.hbm %s4996_s4, 8192 }
 0x53f   : > { %p3422_p4 = scmp.ne.s32.totalorder %s4924_s27, %s3421_s10  ;;  %p3426_p7 = scmp.lt.u32.totalorder %s4924_s27, %s4996_s4 }
 0x540   : > { %p3427_p8 = scmp.lt.u32.totalorder %s3425_s18, %s3421_s10  ;;  %p3429_p12 = scmp.lt.u32.totalorder %s3421_s10, %s4924_s27 }
 0x541   : > { %p3423_p5 = pnand %p3422_p4, %p3656_p9 }
 0x542   : > { %p3428_p10 = por %p3427_p8, %p3426_p7 }
 0x543   : > { %p3424_p6 = pneg %p3423_p5 }
 0x544   : > { %p3430_p13 = por %p3429_p12, %p3428_p10 }
 0x546   : > { %p3431_p0 = pnand %p3430_p13, %p3424_p6 }
 0x548   : > { %3434 = shalt.err (!%p3431_p0)
}
 0x549   : > { %s3543_s29 = smov 128   ;;  %s3544_s12 = smov 8  }
 0x54a   : > { %3067 = dma.vmem_to_hbm [thread:$0]  (%p3656_p9), %s4919_s23, 2048, %s4924_s27, %s4928_s14, %s3543_s29, %s3543_s29, %s3544_s12  }
 0x54b PF: > { %p3073_p1 = scmp.ge.s32.totalorder %s3533_s26, 2  ;;  %s2637_s17 = sand.u32 1, %s3489_s15  }
 0x54c   : > { %s2638_s19 = scalar_lea.sflag [#allocation7], %s2637_s17 }
 0x54d   : > { %p3070_p2 = pnand %p3073_p1, %p3663_p11 }
 0x54f   : > { %3484 = dma.done.wait (!%p3070_p2), %s2638_s19, 2048  }
 0x550   : > { %3486 = vsyncadd (!%p3070_p2), %s2638_s19, 4294965248  ;;  %s17_s26 = sadd.s32 1, %s3533_s26   ;;  %s5123_s20 = sld [smem:[#allocation9_spill]] }
 0x551   : > { %p14_p3 = scmp.ge.s32.totalorder %s17_s26, 10   ;;  %s5124_s17 = sld [smem:[#allocation19_spill]] }
 0x552   : > { %s5125_s18 = sld [smem:[#allocation10_spill]]  ;;  %s5126_s19 = sld [smem:[#allocation18_spill]] }
 0x553   : > { %s5127_s9 = sld [smem:[#allocation11_spill]]  ;;  %s5128_s21 = sld [smem:[#allocation12_spill]] }
 0x554   : > { %s5129_s22 = sld [smem:[#allocation13_spill]]  ;;  %s5130_s23 = sld [smem:[#allocation14_spill]] }
 0x555   : > { %s5131_s24 = sld [smem:[#allocation15_spill]]  ;;  %s5132_s25 = sld [smem:[#allocation16_spill]] }
 0x556   : > { %s5133_s15 = smov %s3493_s16  ;;  %s5134_s16 = smov %s5123_s20 }
 0x557   :  { %16 = sbr.rel (!%p14_p3) target bundleno = 9 (0x9), region = 116 }
 0x559   : > { %s5135_s20 = smov %s5127_s9 }
 0x55e   :  { %2643 = vsyncpa [#allocation7], 1 }
 0x55f   :  { %2645 = vsyncpa [#allocation7 + $0x1], 1 }

</bundles_post_ra>
